<compile_context>
chip_gen: v6e
topology: v6e:2x2x1
jax: 0.10.0
libtpu: 0.0.40
codegen_flags: <defaults>
</compile_context>

<pallas_src>
import numpy as np

import jax
import jax.numpy as jnp
from jax import lax
from jax.experimental import pallas as pl
from jax.experimental.pallas import tpu as pltpu

# ---- small shapes consistent with the PAAE module ----
BATCH = 2
P_DIM = 32          # p_dim
P0_DIM = 32         # p0_dim
CONV_DIM = 32       # conv_dim
IN_CHANNELS = 4     # in_channels
IN_SIZE = 16        # in_size
STEP = 8            # step
FCS = IN_SIZE // 2  # final_conv_size
KSIZE = 3           # all convs are 3x3

# Ordered list of packed parameters handed to the fused kernel (positional refs).
_PACK_ORDER = (
    "c1_A", "c1_B", "c1_b",
    "c2_A", "c2_B", "c2_b",
    "e_cfc1_w", "e_cfc1_b",
    "e_cfc2_w", "e_cfc2_b",
    "e_fc1_w", "e_fc1_b",
    "e_fc2_w", "e_fc2_b",
    "e_fc3_w", "e_fc3_b",
    "dec_fc1_w", "dec_fc1_b",
    "dec_fc2_w", "dec_fc2_b",
    "dec_fc3_w", "dec_fc3_b",
    "dec_dfc1_w", "dec_dfc1_b",
    "dec_dfc2_w", "dec_dfc2_b",
    "t1_A", "t1_B", "t1_b",
    "t2_A", "t2_B", "t2_b",
    "dis_fc1_w", "dis_fc1_b",
    "dis_fc2_w", "dis_fc2_b",
    "dis_fc3_w", "dis_fc3_b",
    "dis_fc4_w", "dis_fc4_b",
)


# --------------------------------------------------------------------------
# Init-time packing: convs -> per-kh factored matmuls on 2-D (H, W*C) slabs.
#   x2d[h, w*Cin + c]  == x_nhwc[h, w, c]
#   out2d = sum_kh (A_kh @ x2d) @ B_kh + bias_row   (out2d[oh, ow*Cout + co])
# --------------------------------------------------------------------------
def _pack_conv(w_oihw, bias, h_in, w_in, stride, padding):
    """PyTorch Conv2d, weight (Cout, Cin, k, k)."""
    cout, cin, k, _ = w_oihw.shape
    h_out = (h_in + 2 * padding - k) // stride + 1
    w_out = (w_in + 2 * padding - k) // stride + 1
    A = np.zeros((k, h_out, h_in), np.float32)
    Bm = np.zeros((k, w_in * cin, w_out * cout), np.float32)
    for kh in range(k):
        for oh in range(h_out):
            src = oh * stride + kh - padding
            if 0 <= src < h_in:
                A[kh, oh, src] = 1.0
        for kw in range(k):
            for ow in range(w_out):
                src = ow * stride + kw - padding
                if 0 <= src < w_in:
                    for c in range(cin):
                        Bm[kh, src * cin + c, ow * cout:(ow + 1) * cout] += w_oihw[:, c, kh, kw]
    bias_row = np.tile(np.asarray(bias, np.float32), w_out)[None, :]
    return A.reshape(k * h_out, h_in), Bm.reshape(k * w_in * cin, w_out * cout), bias_row


def _pack_convT(w_iohw, bias, h_in, w_in, stride, padding, output_padding):
    """PyTorch ConvTranspose2d, weight (Cin, Cout, k, k) -> equivalent stride-1
    correlation on the dilated+padded input with the spatially flipped kernel."""
    cin, cout, k, _ = w_iohw.shape
    h_out = (h_in - 1) * stride - 2 * padding + k + output_padding
    w_out = (w_in - 1) * stride - 2 * padding + k + output_padding
    pad_lo = k - 1 - padding
    A = np.zeros((k, h_out, h_in), np.float32)
    Bm = np.zeros((k, w_in * cin, w_out * cout), np.float32)
    for kh in range(k):
        for oh in range(h_out):
            r = oh + kh - pad_lo
            if r >= 0 and r % stride == 0 and r // stride < h_in:
                A[kh, oh, r // stride] = 1.0
        for kw in range(k):
            for ow in range(w_out):
                q = ow + kw - pad_lo
                if q >= 0 and q % stride == 0 and q // stride < w_in:
                    src = q // stride
                    for c in range(cin):
                        Bm[kh, src * cin + c, ow * cout:(ow + 1) * cout] += \
                            w_iohw[c, :, k - 1 - kh, k - 1 - kw]
    bias_row = np.tile(np.asarray(bias, np.float32), w_out)[None, :]
    return A.reshape(k * h_out, h_in), Bm.reshape(k * w_in * cin, w_out * cout), bias_row


def _nchw_to_hwc_perm(c, h, w):
    """perm[(hh*w + ww)*c + cc] = cc*h*w + hh*w + ww  (torch NCHW-flatten index)."""
    perm = np.empty(c * h * w, np.int64)
    for hh in range(h):
        for ww in range(w):
            for cc in range(c):
                perm[(hh * w + ww) * c + cc] = cc * h * w + hh * w + ww
    return perm


# --------------------------------------------------------------------------
# Deterministic "raw" (PyTorch-layout) parameter initialization
# --------------------------------------------------------------------------
def _init_linear(key, fan_in, fan_out):
    kw, kb = jax.random.split(key)
    w = jax.random.normal(kw, (fan_in, fan_out), jnp.float32) / jnp.sqrt(float(fan_in))
    b = 0.01 * jax.random.normal(kb, (fan_out,), jnp.float32)
    return w, b


def _init_conv(key, cout, cin, k):
    kw, kb = jax.random.split(key)
    w = jax.random.normal(kw, (cout, cin, k, k), jnp.float32) / jnp.sqrt(float(cin * k * k))
    b = 0.01 * jax.random.normal(kb, (cout,), jnp.float32)
    return w, b


def _init_convT(key, cin, cout, k):
    kw, kb = jax.random.split(key)
    w = jax.random.normal(kw, (cin, cout, k, k), jnp.float32) / jnp.sqrt(float(cin * k * k))
    b = 0.01 * jax.random.normal(kb, (cout,), jnp.float32)
    return w, b


def init_params(key):
    keys = jax.random.split(key, 20)
    p = {}
    # Encoder
    p["enc_conv1_w"], p["enc_conv1_b"] = _init_conv(keys[0], STEP // 4, IN_CHANNELS, 3)
    p["enc_conv2_w"], p["enc_conv2_b"] = _init_conv(keys[1], STEP, STEP // 4, 3)
    p["enc_cfc1_w"], p["enc_cfc1_b"] = _init_linear(keys[2], STEP * FCS * FCS, CONV_DIM * 2)
    p["enc_cfc2_w"], p["enc_cfc2_b"] = _init_linear(keys[3], CONV_DIM * 2, CONV_DIM)
    p["enc_fc1_w"], p["enc_fc1_b"] = _init_linear(keys[4], CONV_DIM, P0_DIM)
    p["enc_fc2_w"], p["enc_fc2_b"] = _init_linear(keys[5], P0_DIM, P0_DIM)
    p["enc_fc3_w"], p["enc_fc3_b"] = _init_linear(keys[6], P0_DIM, P_DIM)
    # Decoder
    p["dec_fc1_w"], p["dec_fc1_b"] = _init_linear(keys[7], P_DIM, P0_DIM)
    p["dec_fc2_w"], p["dec_fc2_b"] = _init_linear(keys[8], P0_DIM, P0_DIM)
    p["dec_fc3_w"], p["dec_fc3_b"] = _init_linear(keys[9], P0_DIM, P0_DIM)
    p["dec_dfc1_w"], p["dec_dfc1_b"] = _init_linear(keys[10], P0_DIM, CONV_DIM * 2)
    p["dec_dfc2_w"], p["dec_dfc2_b"] = _init_linear(keys[11], CONV_DIM * 2, STEP * FCS * FCS)
    p["dec_dct1_w"], p["dec_dct1_b"] = _init_convT(keys[12], STEP, STEP // 4, 3)
    p["dec_dct2_w"], p["dec_dct2_b"] = _init_convT(keys[13], STEP // 4, IN_CHANNELS, 3)
    # Discriminator
    p["dis_fc1_w"], p["dis_fc1_b"] = _init_linear(keys[14], P_DIM, P0_DIM)
    p["dis_fc2_w"], p["dis_fc2_b"] = _init_linear(keys[15], P0_DIM, P0_DIM // 2)
    p["dis_fc3_w"], p["dis_fc3_b"] = _init_linear(keys[16], P0_DIM // 2, P0_DIM // 4)
    p["dis_fc4_w"], p["dis_fc4_b"] = _init_linear(keys[17], P0_DIM // 4, 1)
    return p


def pack_params(raw):
    """Hoist ALL repacking (conv factoring, flips, flatten permutations, bias
    reshapes) out of the forward pass.  Runs once at init, in numpy."""
    np32 = lambda a: np.asarray(a, np.float32)
    pk = {}
    pk["c1_A"], pk["c1_B"], pk["c1_b"] = _pack_conv(
        np32(raw["enc_conv1_w"]), np32(raw["enc_conv1_b"]), IN_SIZE, IN_SIZE, 1, 1)
    pk["c2_A"], pk["c2_B"], pk["c2_b"] = _pack_conv(
        np32(raw["enc_conv2_w"]), np32(raw["enc_conv2_b"]), IN_SIZE, IN_SIZE, 2, 1)
    pk["t1_A"], pk["t1_B"], pk["t1_b"] = _pack_convT(
        np32(raw["dec_dct1_w"]), np32(raw["dec_dct1_b"]), FCS, FCS, 2, 1, 1)
    pk["t2_A"], pk["t2_B"], pk["t2_b"] = _pack_convT(
        np32(raw["dec_dct2_w"]), np32(raw["dec_dct2_b"]), IN_SIZE, IN_SIZE, 1, 1, 0)

    # conv<->fc junction permutations (torch flattens NCHW; kernel works in HWC slabs)
    perm = _nchw_to_hwc_perm(STEP, FCS, FCS)
    pk["e_cfc1_w"] = np32(raw["enc_cfc1_w"])[perm, :]
    pk["e_cfc1_b"] = np32(raw["enc_cfc1_b"])[None, :]
    pk["dec_dfc2_w"] = np32(raw["dec_dfc2_w"])[:, perm]
    pk["dec_dfc2_b"] = np32(raw["dec_dfc2_b"])[perm][None, :]

    for src, dst in [("enc_cfc2", "e_cfc2"), ("enc_fc1", "e_fc1"), ("enc_fc2", "e_fc2"),
                     ("enc_fc3", "e_fc3"), ("dec_fc1", "dec_fc1"), ("dec_fc2", "dec_fc2"),
                     ("dec_fc3", "dec_fc3"), ("dec_dfc1", "dec_dfc1"),
                     ("dis_fc1", "dis_fc1"), ("dis_fc2", "dis_fc2"),
                     ("dis_fc3", "dis_fc3"), ("dis_fc4", "dis_fc4")]:
        pk[dst + "_w"] = np32(raw[src + "_w"])
        pk[dst + "_b"] = np32(raw[src + "_b"])[None, :]
    return {k: jnp.asarray(v) for k, v in pk.items()}


# --------------------------------------------------------------------------
# The single fused Pallas kernel: whole PAAE forward, activations in VMEM.
# --------------------------------------------------------------------------
def _paae_kernel(*refs):
    n_p = len(_PACK_ORDER)
    x_ref = refs[0]                                   # (B*16, 16*Cin) HWC slab
    p = dict(zip(_PACK_ORDER, refs[1:1 + n_p]))
    xr_ref = refs[1 + n_p]                            # (B*16, 16*Cin) output slab
    ds_ref = refs[2 + n_p]                            # (B, 1)
    s_fc = refs[3 + n_p]                              # VMEM scratch (B, 2*conv_dim)
    s_img = refs[4 + n_p]                             # VMEM scratch (FCS, FCS*STEP)

    bsz = x_ref.shape[0] // IN_SIZE
    f32 = jnp.float32
    row_cols = FCS * STEP                             # 64 = W*C of the 8x8x8 feature map

    def lrelu(v):
        return jnp.where(v >= 0, v, 0.2 * v)          # f32 epilogue on the VPU

    def sigmoid(v):
        # exp and (approx) reciprocal both ride the otherwise-idle EUP slot.
        if hasattr(pl, "reciprocal"):
            return pl.reciprocal(1.0 + jnp.exp(-v), approx=True)
        return 1.0 / (1.0 + jnp.exp(-v))

    def mm(a, b):
        return jnp.dot(a, b, preferred_element_type=f32)

    def conv_block(xb, a_ref, b_ref, bias_ref, act):
        # out2d = act( sum_kh (A_kh @ xb) @ B_kh + bias_row )
        h_out = a_ref.shape[0] // KSIZE
        c_rows = b_ref.shape[0] // KSIZE
        acc = jnp.zeros((h_out, b_ref.shape[1]), f32)
        for kh in range(KSIZE):
            a_kh = a_ref[kh * h_out:(kh + 1) * h_out, :]
            b_kh = b_ref[kh * c_rows:(kh + 1) * c_rows, :]
            acc = acc + mm(mm(a_kh, xb), b_kh)
        return act(acc + bias_ref[...])

    def fc(v, wname, bname, act):
        return act(mm(v, p[wname][...]) + p[bname][...])

    # ---------------- encoder: conv stack + fused conv->fc junction ----------------
    for b in range(bsz):
        xb = x_ref[b * IN_SIZE:(b + 1) * IN_SIZE, :]                       # (16, 64)
        h1 = conv_block(xb, p["c1_A"], p["c1_B"], p["c1_b"], lrelu)        # (16, 32)
        h2 = conv_block(h1, p["c2_A"], p["c2_B"], p["c2_b"], lrelu)        # (8, 64)
        # NCHW-flatten + cfc1 matmul done row-by-row so the (8,64) map never reshapes.
        row = p["e_cfc1_b"][...]                                           # (1, 64)
        for h in range(FCS):
            row = row + mm(h2[h:h + 1, :],
                           p["e_cfc1_w"][h * row_cols:(h + 1) * row_cols, :])
        s_fc[b:b + 1, :] = row

    a = lrelu(s_fc[...])                                                   # (B, 64)
    a = fc(a, "e_cfc2_w", "e_cfc2_b", lrelu)                               # (B, 32)
    a = fc(a, "e_fc1_w", "e_fc1_b", lrelu)
    a = fc(a, "e_fc2_w", "e_fc2_b", lrelu)
    z = fc(a, "e_fc3_w", "e_fc3_b", jnp.tanh)                              # (B, 32)

    # ---------------- discriminator on z ----------------
    d = fc(z, "dis_fc1_w", "dis_fc1_b", lrelu)
    d = fc(d, "dis_fc2_w", "dis_fc2_b", lrelu)
    d = fc(d, "dis_fc3_w", "dis_fc3_b", lrelu)
    ds_ref[...] = fc(d, "dis_fc4_w", "dis_fc4_b", jnp.tanh)                # (B, 1)

    # ---------------- decoder: FC chain then transposed-conv stack ----------------
    g = fc(z, "dec_fc1_w", "dec_fc1_b", lrelu)
    g = fc(g, "dec_fc2_w", "dec_fc2_b", lrelu)
    g = fc(g, "dec_fc3_w", "dec_fc3_b", lrelu)
    g = fc(g, "dec_dfc1_w", "dec_dfc1_b", lrelu)                           # (B, 64)
    g = fc(g, "dec_dfc2_w", "dec_dfc2_b", lrelu)                           # (B, 512) HWC-grouped cols

    for b in range(bsz):
        for h in range(FCS):                                               # unflatten to (8, 64) slab
            s_img[h:h + 1, :] = g[b:b + 1, h * row_cols:(h + 1) * row_cols]
        img = s_img[...]                                                   # (8, 64)
        t1 = conv_block(img, p["t1_A"], p["t1_B"], p["t1_b"], lrelu)       # (16, 32)
        t2 = conv_block(t1, p["t2_A"], p["t2_B"], p["t2_b"], sigmoid)      # (16, 64)
        xr_ref[b * IN_SIZE:(b + 1) * IN_SIZE, :] = t2


@jax.jit
def paae_forward(packed, x_nchw):
    n = x_nchw.shape[0]
    # boundary layout plumbing only: NCHW -> per-image (H, W*C) slabs stacked on rows
    x2d = jnp.transpose(x_nchw, (0, 2, 3, 1)).reshape(n * IN_SIZE, IN_SIZE * IN_CHANNELS)
    flat = [packed[k] for k in _PACK_ORDER]
    all_in = (x2d, *flat)

    xr2d, d_score = pl.pallas_call(
        _paae_kernel,
        out_shape=(
            jax.ShapeDtypeStruct((n * IN_SIZE, IN_SIZE * IN_CHANNELS), jnp.float32),
            jax.ShapeDtypeStruct((n, 1), jnp.float32),
        ),
        grid=(1,),
        in_specs=[pl.BlockSpec(a.shape, lambda i: (0, 0)) for a in all_in],
        out_specs=(
            pl.BlockSpec((n * IN_SIZE, IN_SIZE * IN_CHANNELS), lambda i: (0, 0)),
            pl.BlockSpec((n, 1), lambda i: (0, 0)),
        ),
        scratch_shapes=[
            pltpu.VMEM((n, CONV_DIM * 2), jnp.float32),
            pltpu.VMEM((FCS, FCS * STEP), jnp.float32),
        ],
    )(*all_in)

    x_recon = jnp.transpose(xr2d.reshape(n, IN_SIZE, IN_SIZE, IN_CHANNELS), (0, 3, 1, 2))
    return x_recon, d_score


# --------------------------------------------------------------------------
# Pure-JAX reference (torch semantics, raw weights) for a correctness gate.
# --------------------------------------------------------------------------
def _paae_reference(raw, x_nchw):
    hp = lax.Precision.HIGHEST
    lrelu = lambda v: jnp.where(v >= 0, v, 0.2 * v)
    lin = lambda v, w, b: jnp.dot(v, w, precision=hp) + b

    def conv(x, w_oihw, b, s, pad):
        w = jnp.transpose(w_oihw, (2, 3, 1, 0))
        y = lax.conv_general_dilated(x, w, (s, s), ((pad, pad), (pad, pad)),
                                     dimension_numbers=("NHWC", "HWIO", "NHWC"),
                                     precision=hp)
        return y + b

    def convT(x, w_iohw, b, s, pad, opad):
        k = w_iohw.shape[-1]
        w = jnp.transpose(w_iohw[:, :, ::-1, ::-1], (2, 3, 0, 1))
        lo, hi = k - 1 - pad, k - 1 - pad + opad
        y = lax.conv_general_dilated(x, w, (1, 1), ((lo, hi), (lo, hi)),
                                     lhs_dilation=(s, s),
                                     dimension_numbers=("NHWC", "HWIO", "NHWC"),
                                     precision=hp)
        return y + b

    n = x_nchw.shape[0]
    x = jnp.transpose(x_nchw, (0, 2, 3, 1))
    h = lrelu(conv(x, raw["enc_conv1_w"], raw["enc_conv1_b"], 1, 1))
    h = lrelu(conv(h, raw["enc_conv2_w"], raw["enc_conv2_b"], 2, 1))
    h = jnp.transpose(h, (0, 3, 1, 2)).reshape(n, -1)                  # torch NCHW flatten
    h = lrelu(lin(h, raw["enc_cfc1_w"], raw["enc_cfc1_b"]))
    h = lrelu(lin(h, raw["enc_cfc2_w"], raw["enc_cfc2_b"]))
    h = lrelu(lin(h, raw["enc_fc1_w"], raw["enc_fc1_b"]))
    h = lrelu(lin(h, raw["enc_fc2_w"], raw["enc_fc2_b"]))
    z = jnp.tanh(lin(h, raw["enc_fc3_w"], raw["enc_fc3_b"]))

    g = lrelu(lin(z, raw["dec_fc1_w"], raw["dec_fc1_b"]))
    g = lrelu(lin(g, raw["dec_fc2_w"], raw["dec_fc2_b"]))
    g = lrelu(lin(g, raw["dec_fc3_w"], raw["dec_fc3_b"]))
    g = lrelu(lin(g, raw["dec_dfc1_w"], raw["dec_dfc1_b"]))
    g = lrelu(lin(g, raw["dec_dfc2_w"], raw["dec_dfc2_b"]))
    img = jnp.transpose(g.reshape(n, STEP, FCS, FCS), (0, 2, 3, 1))    # NCHW view -> NHWC
    img = lrelu(convT(img, raw["dec_dct1_w"], raw["dec_dct1_b"], 2, 1, 1))
    img = jax.nn.sigmoid(convT(img, raw["dec_dct2_w"], raw["dec_dct2_b"], 1, 1, 0))
    x_recon = jnp.transpose(img, (0, 3, 1, 2))

    d = lrelu(lin(z, raw["dis_fc1_w"], raw["dis_fc1_b"]))
    d = lrelu(lin(d, raw["dis_fc2_w"], raw["dis_fc2_b"]))
    d = lrelu(lin(d, raw["dis_fc3_w"], raw["dis_fc3_b"]))
    d = jnp.tanh(lin(d, raw["dis_fc4_w"], raw["dis_fc4_b"]))
    return x_recon, d


if __name__ == "__main__":
    key = jax.random.PRNGKey(0)
    k_param, k_x = jax.random.split(key)
    raw_params = init_params(k_param)
    packed_params = pack_params(raw_params)          # all repacking hoisted out of the hot path
    x = jax.random.normal(k_x, (BATCH, IN_CHANNELS, IN_SIZE, IN_SIZE), jnp.float32)

    x_recon, d_score = paae_forward(packed_params, x)
    jax.block_until_ready((x_recon, d_score))

    assert x_recon.shape == (BATCH, IN_CHANNELS, IN_SIZE, IN_SIZE), x_recon.shape
    assert d_score.shape == (BATCH, 1), d_score.shape
    assert bool(jnp.all(jnp.isfinite(x_recon))) and bool(jnp.all(jnp.isfinite(d_score)))

    # correctness gate against an independent pure-JAX (XLA) reference
    xr_ref, ds_ref = _paae_reference(raw_params, x)
    err = max(float(jnp.max(jnp.abs(x_recon - xr_ref))),
              float(jnp.max(jnp.abs(d_score - ds_ref))))
    assert err < 5e-3, f"mismatch vs reference: {err}"

    print("KERNEL_OK")
</pallas_src>

<mosaic_0001>
module attributes {stable_mosaic.version = 11 : i64} {
  func.func @_paae_kernel(%arg0: i32, %arg1: memref<32x64xf32, #tpu.memory_space<vmem>>, %arg2: memref<48x16xf32, #tpu.memory_space<vmem>>, %arg3: memref<192x32xf32, #tpu.memory_space<vmem>>, %arg4: memref<1x32xf32, #tpu.memory_space<vmem>>, %arg5: memref<24x16xf32, #tpu.memory_space<vmem>>, %arg6: memref<96x64xf32, #tpu.memory_space<vmem>>, %arg7: memref<1x64xf32, #tpu.memory_space<vmem>>, %arg8: memref<512x64xf32, #tpu.memory_space<vmem>>, %arg9: memref<1x64xf32, #tpu.memory_space<vmem>>, %arg10: memref<64x32xf32, #tpu.memory_space<vmem>>, %arg11: memref<1x32xf32, #tpu.memory_space<vmem>>, %arg12: memref<32x32xf32, #tpu.memory_space<vmem>>, %arg13: memref<1x32xf32, #tpu.memory_space<vmem>>, %arg14: memref<32x32xf32, #tpu.memory_space<vmem>>, %arg15: memref<1x32xf32, #tpu.memory_space<vmem>>, %arg16: memref<32x32xf32, #tpu.memory_space<vmem>>, %arg17: memref<1x32xf32, #tpu.memory_space<vmem>>, %arg18: memref<32x32xf32, #tpu.memory_space<vmem>>, %arg19: memref<1x32xf32, #tpu.memory_space<vmem>>, %arg20: memref<32x32xf32, #tpu.memory_space<vmem>>, %arg21: memref<1x32xf32, #tpu.memory_space<vmem>>, %arg22: memref<32x32xf32, #tpu.memory_space<vmem>>, %arg23: memref<1x32xf32, #tpu.memory_space<vmem>>, %arg24: memref<32x64xf32, #tpu.memory_space<vmem>>, %arg25: memref<1x64xf32, #tpu.memory_space<vmem>>, %arg26: memref<64x512xf32, #tpu.memory_space<vmem>>, %arg27: memref<1x512xf32, #tpu.memory_space<vmem>>, %arg28: memref<48x8xf32, #tpu.memory_space<vmem>>, %arg29: memref<192x32xf32, #tpu.memory_space<vmem>>, %arg30: memref<1x32xf32, #tpu.memory_space<vmem>>, %arg31: memref<48x16xf32, #tpu.memory_space<vmem>>, %arg32: memref<96x64xf32, #tpu.memory_space<vmem>>, %arg33: memref<1x64xf32, #tpu.memory_space<vmem>>, %arg34: memref<32x32xf32, #tpu.memory_space<vmem>>, %arg35: memref<1x32xf32, #tpu.memory_space<vmem>>, %arg36: memref<32x16xf32, #tpu.memory_space<vmem>>, %arg37: memref<1x16xf32, #tpu.memory_space<vmem>>, %arg38: memref<16x8xf32, #tpu.memory_space<vmem>>, %arg39: memref<1x8xf32, #tpu.memory_space<vmem>>, %arg40: memref<8x1xf32, #tpu.memory_space<vmem>>, %arg41: memref<1x1xf32, #tpu.memory_space<vmem>>, %arg42: memref<32x64xf32, #tpu.memory_space<vmem>>, %arg43: memref<2x1xf32, #tpu.memory_space<vmem>>, %arg44: memref<2x64xf32, #tpu.memory_space<vmem>>, %arg45: memref<8x64xf32, #tpu.memory_space<vmem>>) attributes {dimension_semantics = [#tpu.dimension_semantics<arbitrary>], iteration_bounds = array<i64: 1>, scalar_prefetch = 0 : i64, scratch_operands = 2 : i64, tpu.core_type = #tpu.core_type<tc>, window_params = [{pipeline_mode = #tpu.pipeline_mode<synchronous>, transform_indices = @transform_0, window_bounds = array<i64: 32, 64>}, {pipeline_mode = #tpu.pipeline_mode<synchronous>, transform_indices = @transform_1, window_bounds = array<i64: 48, 16>}, {pipeline_mode = #tpu.pipeline_mode<synchronous>, transform_indices = @transform_2, window_bounds = array<i64: 192, 32>}, {pipeline_mode = #tpu.pipeline_mode<synchronous>, transform_indices = @transform_3, window_bounds = array<i64: 1, 32>}, {pipeline_mode = #tpu.pipeline_mode<synchronous>, transform_indices = @transform_4, window_bounds = array<i64: 24, 16>}, {pipeline_mode = #tpu.pipeline_mode<synchronous>, transform_indices = @transform_5, window_bounds = array<i64: 96, 64>}, {pipeline_mode = #tpu.pipeline_mode<synchronous>, transform_indices = @transform_6, window_bounds = array<i64: 1, 64>}, {pipeline_mode = #tpu.pipeline_mode<synchronous>, transform_indices = @transform_7, window_bounds = array<i64: 512, 64>}, {pipeline_mode = #tpu.pipeline_mode<synchronous>, transform_indices = @transform_8, window_bounds = array<i64: 1, 64>}, {pipeline_mode = #tpu.pipeline_mode<synchronous>, transform_indices = @transform_9, window_bounds = array<i64: 64, 32>}, {pipeline_mode = #tpu.pipeline_mode<synchronous>, transform_indices = @transform_10, window_bounds = array<i64: 1, 32>}, {pipeline_mode = #tpu.pipeline_mode<synchronous>, transform_indices = @transform_11, window_bounds = array<i64: 32, 32>}, {pipeline_mode = #tpu.pipeline_mode<synchronous>, transform_indices = @transform_12, window_bounds = array<i64: 1, 32>}, {pipeline_mode = #tpu.pipeline_mode<synchronous>, transform_indices = @transform_13, window_bounds = array<i64: 32, 32>}, {pipeline_mode = #tpu.pipeline_mode<synchronous>, transform_indices = @transform_14, window_bounds = array<i64: 1, 32>}, {pipeline_mode = #tpu.pipeline_mode<synchronous>, transform_indices = @transform_15, window_bounds = array<i64: 32, 32>}, {pipeline_mode = #tpu.pipeline_mode<synchronous>, transform_indices = @transform_16, window_bounds = array<i64: 1, 32>}, {pipeline_mode = #tpu.pipeline_mode<synchronous>, transform_indices = @transform_17, window_bounds = array<i64: 32, 32>}, {pipeline_mode = #tpu.pipeline_mode<synchronous>, transform_indices = @transform_18, window_bounds = array<i64: 1, 32>}, {pipeline_mode = #tpu.pipeline_mode<synchronous>, transform_indices = @transform_19, window_bounds = array<i64: 32, 32>}, {pipeline_mode = #tpu.pipeline_mode<synchronous>, transform_indices = @transform_20, window_bounds = array<i64: 1, 32>}, {pipeline_mode = #tpu.pipeline_mode<synchronous>, transform_indices = @transform_21, window_bounds = array<i64: 32, 32>}, {pipeline_mode = #tpu.pipeline_mode<synchronous>, transform_indices = @transform_22, window_bounds = array<i64: 1, 32>}, {pipeline_mode = #tpu.pipeline_mode<synchronous>, transform_indices = @transform_23, window_bounds = array<i64: 32, 64>}, {pipeline_mode = #tpu.pipeline_mode<synchronous>, transform_indices = @transform_24, window_bounds = array<i64: 1, 64>}, {pipeline_mode = #tpu.pipeline_mode<synchronous>, transform_indices = @transform_25, window_bounds = array<i64: 64, 512>}, {pipeline_mode = #tpu.pipeline_mode<synchronous>, transform_indices = @transform_26, window_bounds = array<i64: 1, 512>}, {pipeline_mode = #tpu.pipeline_mode<synchronous>, transform_indices = @transform_27, window_bounds = array<i64: 48, 8>}, {pipeline_mode = #tpu.pipeline_mode<synchronous>, transform_indices = @transform_28, window_bounds = array<i64: 192, 32>}, {pipeline_mode = #tpu.pipeline_mode<synchronous>, transform_indices = @transform_29, window_bounds = array<i64: 1, 32>}, {pipeline_mode = #tpu.pipeline_mode<synchronous>, transform_indices = @transform_30, window_bounds = array<i64: 48, 16>}, {pipeline_mode = #tpu.pipeline_mode<synchronous>, transform_indices = @transform_31, window_bounds = array<i64: 96, 64>}, {pipeline_mode = #tpu.pipeline_mode<synchronous>, transform_indices = @transform_32, window_bounds = array<i64: 1, 64>}, {pipeline_mode = #tpu.pipeline_mode<synchronous>, transform_indices = @transform_33, window_bounds = array<i64: 32, 32>}, {pipeline_mode = #tpu.pipeline_mode<synchronous>, transform_indices = @transform_34, window_bounds = array<i64: 1, 32>}, {pipeline_mode = #tpu.pipeline_mode<synchronous>, transform_indices = @transform_35, window_bounds = array<i64: 32, 16>}, {pipeline_mode = #tpu.pipeline_mode<synchronous>, transform_indices = @transform_36, window_bounds = array<i64: 1, 16>}, {pipeline_mode = #tpu.pipeline_mode<synchronous>, transform_indices = @transform_37, window_bounds = array<i64: 16, 8>}, {pipeline_mode = #tpu.pipeline_mode<synchronous>, transform_indices = @transform_38, window_bounds = array<i64: 1, 8>}, {pipeline_mode = #tpu.pipeline_mode<synchronous>, transform_indices = @transform_39, window_bounds = array<i64: 8, 1>}, {pipeline_mode = #tpu.pipeline_mode<synchronous>, transform_indices = @transform_40, window_bounds = array<i64: 1, 1>}, {pipeline_mode = #tpu.pipeline_mode<synchronous>, transform_indices = @transform_41, window_bounds = array<i64: 32, 64>}, {pipeline_mode = #tpu.pipeline_mode<synchronous>, transform_indices = @transform_42, window_bounds = array<i64: 2, 1>}]} {
    %c0 = arith.constant 0 : index
    %c0_0 = arith.constant 0 : index
    %0 = vector.load %arg1[%c0, %c0_0] : memref<32x64xf32, #tpu.memory_space<vmem>>, vector<16x64xf32>
    %cst = arith.constant 0.000000e+00 : f32
    %1 = vector.broadcast %cst : f32 to vector<16x32xf32>
    %c0_1 = arith.constant 0 : index
    %c0_2 = arith.constant 0 : index
    %2 = vector.load %arg2[%c0_1, %c0_2] : memref<48x16xf32, #tpu.memory_space<vmem>>, vector<16x16xf32>
    %c0_3 = arith.constant 0 : index
    %c0_4 = arith.constant 0 : index
    %3 = vector.load %arg3[%c0_3, %c0_4] : memref<192x32xf32, #tpu.memory_space<vmem>>, vector<64x32xf32>
    %cst_5 = arith.constant dense<0.000000e+00> : vector<16x64xf32>
    %4 = tpu.matmul %2, %0, %cst_5 {dimension_numbers = #tpu.dot_dimension_numbers<[1], [0], [0], [1], [0, 0, 1, 1], [], []>} : vector<16x16xf32>, vector<16x64xf32>, vector<16x64xf32> -> vector<16x64xf32>
    %cst_6 = arith.constant dense<0.000000e+00> : vector<16x32xf32>
    %5 = tpu.matmul %4, %3, %cst_6 {dimension_numbers = #tpu.dot_dimension_numbers<[1], [0], [0], [1], [0, 0, 1, 1], [], []>} : vector<16x64xf32>, vector<64x32xf32>, vector<16x32xf32> -> vector<16x32xf32>
    %6 = arith.addf %1, %5 : vector<16x32xf32>
    %c16 = arith.constant 16 : index
    %c0_7 = arith.constant 0 : index
    %7 = vector.load %arg2[%c16, %c0_7] : memref<48x16xf32, #tpu.memory_space<vmem>>, vector<16x16xf32>
    %c64 = arith.constant 64 : index
    %c0_8 = arith.constant 0 : index
    %8 = vector.load %arg3[%c64, %c0_8] : memref<192x32xf32, #tpu.memory_space<vmem>>, vector<64x32xf32>
    %cst_9 = arith.constant dense<0.000000e+00> : vector<16x64xf32>
    %9 = tpu.matmul %7, %0, %cst_9 {dimension_numbers = #tpu.dot_dimension_numbers<[1], [0], [0], [1], [0, 0, 1, 1], [], []>} : vector<16x16xf32>, vector<16x64xf32>, vector<16x64xf32> -> vector<16x64xf32>
    %cst_10 = arith.constant dense<0.000000e+00> : vector<16x32xf32>
    %10 = tpu.matmul %9, %8, %cst_10 {dimension_numbers = #tpu.dot_dimension_numbers<[1], [0], [0], [1], [0, 0, 1, 1], [], []>} : vector<16x64xf32>, vector<64x32xf32>, vector<16x32xf32> -> vector<16x32xf32>
    %11 = arith.addf %6, %10 : vector<16x32xf32>
    %c32 = arith.constant 32 : index
    %c0_11 = arith.constant 0 : index
    %12 = vector.load %arg2[%c32, %c0_11] : memref<48x16xf32, #tpu.memory_space<vmem>>, vector<16x16xf32>
    %c128 = arith.constant 128 : index
    %c0_12 = arith.constant 0 : index
    %13 = vector.load %arg3[%c128, %c0_12] : memref<192x32xf32, #tpu.memory_space<vmem>>, vector<64x32xf32>
    %cst_13 = arith.constant dense<0.000000e+00> : vector<16x64xf32>
    %14 = tpu.matmul %12, %0, %cst_13 {dimension_numbers = #tpu.dot_dimension_numbers<[1], [0], [0], [1], [0, 0, 1, 1], [], []>} : vector<16x16xf32>, vector<16x64xf32>, vector<16x64xf32> -> vector<16x64xf32>
    %cst_14 = arith.constant dense<0.000000e+00> : vector<16x32xf32>
    %15 = tpu.matmul %14, %13, %cst_14 {dimension_numbers = #tpu.dot_dimension_numbers<[1], [0], [0], [1], [0, 0, 1, 1], [], []>} : vector<16x64xf32>, vector<64x32xf32>, vector<16x32xf32> -> vector<16x32xf32>
    %16 = arith.addf %11, %15 : vector<16x32xf32>
    %c0_15 = arith.constant 0 : index
    %c0_16 = arith.constant 0 : index
    %17 = vector.load %arg4[%c0_15, %c0_16] : memref<1x32xf32, #tpu.memory_space<vmem>>, vector<1x32xf32>
    %18 = vector.broadcast %17 : vector<1x32xf32> to vector<16x32xf32>
    %19 = arith.addf %16, %18 : vector<16x32xf32>
    %cst_17 = arith.constant 0.000000e+00 : f32
    %20 = vector.broadcast %cst_17 : f32 to vector<16x32xf32>
    %21 = arith.cmpf oge, %19, %20 : vector<16x32xf32>
    %cst_18 = arith.constant 2.000000e-01 : f32
    %22 = vector.broadcast %cst_18 : f32 to vector<16x32xf32>
    %23 = arith.mulf %22, %19 : vector<16x32xf32>
    %24 = arith.select %21, %19, %23 : vector<16x32xi1>, vector<16x32xf32>
    %cst_19 = arith.constant 0.000000e+00 : f32
    %25 = vector.broadcast %cst_19 : f32 to vector<8x64xf32>
    %c0_20 = arith.constant 0 : index
    %c0_21 = arith.constant 0 : index
    %26 = vector.load %arg5[%c0_20, %c0_21] : memref<24x16xf32, #tpu.memory_space<vmem>>, vector<8x16xf32>
    %c0_22 = arith.constant 0 : index
    %c0_23 = arith.constant 0 : index
    %27 = vector.load %arg6[%c0_22, %c0_23] : memref<96x64xf32, #tpu.memory_space<vmem>>, vector<32x64xf32>
    %cst_24 = arith.constant dense<0.000000e+00> : vector<8x32xf32>
    %28 = tpu.matmul %26, %24, %cst_24 {dimension_numbers = #tpu.dot_dimension_numbers<[1], [0], [0], [1], [0, 0, 1, 1], [], []>} : vector<8x16xf32>, vector<16x32xf32>, vector<8x32xf32> -> vector<8x32xf32>
    %cst_25 = arith.constant dense<0.000000e+00> : vector<8x64xf32>
    %29 = tpu.matmul %28, %27, %cst_25 {dimension_numbers = #tpu.dot_dimension_numbers<[1], [0], [0], [1], [0, 0, 1, 1], [], []>} : vector<8x32xf32>, vector<32x64xf32>, vector<8x64xf32> -> vector<8x64xf32>
    %30 = arith.addf %25, %29 : vector<8x64xf32>
    %c8 = arith.constant 8 : index
    %c0_26 = arith.constant 0 : index
    %31 = vector.load %arg5[%c8, %c0_26] : memref<24x16xf32, #tpu.memory_space<vmem>>, vector<8x16xf32>
    %c32_27 = arith.constant 32 : index
    %c0_28 = arith.constant 0 : index
    %32 = vector.load %arg6[%c32_27, %c0_28] : memref<96x64xf32, #tpu.memory_space<vmem>>, vector<32x64xf32>
    %cst_29 = arith.constant dense<0.000000e+00> : vector<8x32xf32>
    %33 = tpu.matmul %31, %24, %cst_29 {dimension_numbers = #tpu.dot_dimension_numbers<[1], [0], [0], [1], [0, 0, 1, 1], [], []>} : vector<8x16xf32>, vector<16x32xf32>, vector<8x32xf32> -> vector<8x32xf32>
    %cst_30 = arith.constant dense<0.000000e+00> : vector<8x64xf32>
    %34 = tpu.matmul %33, %32, %cst_30 {dimension_numbers = #tpu.dot_dimension_numbers<[1], [0], [0], [1], [0, 0, 1, 1], [], []>} : vector<8x32xf32>, vector<32x64xf32>, vector<8x64xf32> -> vector<8x64xf32>
    %35 = arith.addf %30, %34 : vector<8x64xf32>
    %c16_31 = arith.constant 16 : index
    %c0_32 = arith.constant 0 : index
    %36 = vector.load %arg5[%c16_31, %c0_32] : memref<24x16xf32, #tpu.memory_space<vmem>>, vector<8x16xf32>
    %c64_33 = arith.constant 64 : index
    %c0_34 = arith.constant 0 : index
    %37 = vector.load %arg6[%c64_33, %c0_34] : memref<96x64xf32, #tpu.memory_space<vmem>>, vector<32x64xf32>
    %cst_35 = arith.constant dense<0.000000e+00> : vector<8x32xf32>
    %38 = tpu.matmul %36, %24, %cst_35 {dimension_numbers = #tpu.dot_dimension_numbers<[1], [0], [0], [1], [0, 0, 1, 1], [], []>} : vector<8x16xf32>, vector<16x32xf32>, vector<8x32xf32> -> vector<8x32xf32>
    %cst_36 = arith.constant dense<0.000000e+00> : vector<8x64xf32>
    %39 = tpu.matmul %38, %37, %cst_36 {dimension_numbers = #tpu.dot_dimension_numbers<[1], [0], [0], [1], [0, 0, 1, 1], [], []>} : vector<8x32xf32>, vector<32x64xf32>, vector<8x64xf32> -> vector<8x64xf32>
    %40 = arith.addf %35, %39 : vector<8x64xf32>
    %c0_37 = arith.constant 0 : index
    %c0_38 = arith.constant 0 : index
    %41 = vector.load %arg7[%c0_37, %c0_38] : memref<1x64xf32, #tpu.memory_space<vmem>>, vector<1x64xf32>
    %42 = vector.broadcast %41 : vector<1x64xf32> to vector<8x64xf32>
    %43 = arith.addf %40, %42 : vector<8x64xf32>
    %cst_39 = arith.constant 0.000000e+00 : f32
    %44 = vector.broadcast %cst_39 : f32 to vector<8x64xf32>
    %45 = arith.cmpf oge, %43, %44 : vector<8x64xf32>
    %cst_40 = arith.constant 2.000000e-01 : f32
    %46 = vector.broadcast %cst_40 : f32 to vector<8x64xf32>
    %47 = arith.mulf %46, %43 : vector<8x64xf32>
    %48 = arith.select %45, %43, %47 : vector<8x64xi1>, vector<8x64xf32>
    %c0_41 = arith.constant 0 : index
    %c0_42 = arith.constant 0 : index
    %49 = vector.load %arg9[%c0_41, %c0_42] : memref<1x64xf32, #tpu.memory_space<vmem>>, vector<1x64xf32>
    %50 = vector.extract_strided_slice %48 {offsets = [0, 0], sizes = [1, 64], strides = [1, 1]} : vector<8x64xf32> to vector<1x64xf32>
    %c0_43 = arith.constant 0 : index
    %c0_44 = arith.constant 0 : index
    %51 = vector.load %arg8[%c0_43, %c0_44] : memref<512x64xf32, #tpu.memory_space<vmem>>, vector<64x64xf32>
    %cst_45 = arith.constant dense<0.000000e+00> : vector<1x64xf32>
    %52 = tpu.matmul %50, %51, %cst_45 {dimension_numbers = #tpu.dot_dimension_numbers<[1], [0], [0], [1], [0, 0, 1, 1], [], []>} : vector<1x64xf32>, vector<64x64xf32>, vector<1x64xf32> -> vector<1x64xf32>
    %53 = arith.addf %49, %52 : vector<1x64xf32>
    %54 = vector.extract_strided_slice %48 {offsets = [1, 0], sizes = [1, 64], strides = [1, 1]} : vector<8x64xf32> to vector<1x64xf32>
    %c64_46 = arith.constant 64 : index
    %c0_47 = arith.constant 0 : index
    %55 = vector.load %arg8[%c64_46, %c0_47] : memref<512x64xf32, #tpu.memory_space<vmem>>, vector<64x64xf32>
    %cst_48 = arith.constant dense<0.000000e+00> : vector<1x64xf32>
    %56 = tpu.matmul %54, %55, %cst_48 {dimension_numbers = #tpu.dot_dimension_numbers<[1], [0], [0], [1], [0, 0, 1, 1], [], []>} : vector<1x64xf32>, vector<64x64xf32>, vector<1x64xf32> -> vector<1x64xf32>
    %57 = arith.addf %53, %56 : vector<1x64xf32>
    %58 = vector.extract_strided_slice %48 {offsets = [2, 0], sizes = [1, 64], strides = [1, 1]} : vector<8x64xf32> to vector<1x64xf32>
    %c128_49 = arith.constant 128 : index
    %c0_50 = arith.constant 0 : index
    %59 = vector.load %arg8[%c128_49, %c0_50] : memref<512x64xf32, #tpu.memory_space<vmem>>, vector<64x64xf32>
    %cst_51 = arith.constant dense<0.000000e+00> : vector<1x64xf32>
    %60 = tpu.matmul %58, %59, %cst_51 {dimension_numbers = #tpu.dot_dimension_numbers<[1], [0], [0], [1], [0, 0, 1, 1], [], []>} : vector<1x64xf32>, vector<64x64xf32>, vector<1x64xf32> -> vector<1x64xf32>
    %61 = arith.addf %57, %60 : vector<1x64xf32>
    %62 = vector.extract_strided_slice %48 {offsets = [3, 0], sizes = [1, 64], strides = [1, 1]} : vector<8x64xf32> to vector<1x64xf32>
    %c192 = arith.constant 192 : index
    %c0_52 = arith.constant 0 : index
    %63 = vector.load %arg8[%c192, %c0_52] : memref<512x64xf32, #tpu.memory_space<vmem>>, vector<64x64xf32>
    %cst_53 = arith.constant dense<0.000000e+00> : vector<1x64xf32>
    %64 = tpu.matmul %62, %63, %cst_53 {dimension_numbers = #tpu.dot_dimension_numbers<[1], [0], [0], [1], [0, 0, 1, 1], [], []>} : vector<1x64xf32>, vector<64x64xf32>, vector<1x64xf32> -> vector<1x64xf32>
    %65 = arith.addf %61, %64 : vector<1x64xf32>
    %66 = vector.extract_strided_slice %48 {offsets = [4, 0], sizes = [1, 64], strides = [1, 1]} : vector<8x64xf32> to vector<1x64xf32>
    %c256 = arith.constant 256 : index
    %c0_54 = arith.constant 0 : index
    %67 = vector.load %arg8[%c256, %c0_54] : memref<512x64xf32, #tpu.memory_space<vmem>>, vector<64x64xf32>
    %cst_55 = arith.constant dense<0.000000e+00> : vector<1x64xf32>
    %68 = tpu.matmul %66, %67, %cst_55 {dimension_numbers = #tpu.dot_dimension_numbers<[1], [0], [0], [1], [0, 0, 1, 1], [], []>} : vector<1x64xf32>, vector<64x64xf32>, vector<1x64xf32> -> vector<1x64xf32>
    %69 = arith.addf %65, %68 : vector<1x64xf32>
    %70 = vector.extract_strided_slice %48 {offsets = [5, 0], sizes = [1, 64], strides = [1, 1]} : vector<8x64xf32> to vector<1x64xf32>
    %c320 = arith.constant 320 : index
    %c0_56 = arith.constant 0 : index
    %71 = vector.load %arg8[%c320, %c0_56] : memref<512x64xf32, #tpu.memory_space<vmem>>, vector<64x64xf32>
    %cst_57 = arith.constant dense<0.000000e+00> : vector<1x64xf32>
    %72 = tpu.matmul %70, %71, %cst_57 {dimension_numbers = #tpu.dot_dimension_numbers<[1], [0], [0], [1], [0, 0, 1, 1], [], []>} : vector<1x64xf32>, vector<64x64xf32>, vector<1x64xf32> -> vector<1x64xf32>
    %73 = arith.addf %69, %72 : vector<1x64xf32>
    %74 = vector.extract_strided_slice %48 {offsets = [6, 0], sizes = [1, 64], strides = [1, 1]} : vector<8x64xf32> to vector<1x64xf32>
    %c384 = arith.constant 384 : index
    %c0_58 = arith.constant 0 : index
    %75 = vector.load %arg8[%c384, %c0_58] : memref<512x64xf32, #tpu.memory_space<vmem>>, vector<64x64xf32>
    %cst_59 = arith.constant dense<0.000000e+00> : vector<1x64xf32>
    %76 = tpu.matmul %74, %75, %cst_59 {dimension_numbers = #tpu.dot_dimension_numbers<[1], [0], [0], [1], [0, 0, 1, 1], [], []>} : vector<1x64xf32>, vector<64x64xf32>, vector<1x64xf32> -> vector<1x64xf32>
    %77 = arith.addf %73, %76 : vector<1x64xf32>
    %78 = vector.extract_strided_slice %48 {offsets = [7, 0], sizes = [1, 64], strides = [1, 1]} : vector<8x64xf32> to vector<1x64xf32>
    %c448 = arith.constant 448 : index
    %c0_60 = arith.constant 0 : index
    %79 = vector.load %arg8[%c448, %c0_60] : memref<512x64xf32, #tpu.memory_space<vmem>>, vector<64x64xf32>
    %cst_61 = arith.constant dense<0.000000e+00> : vector<1x64xf32>
    %80 = tpu.matmul %78, %79, %cst_61 {dimension_numbers = #tpu.dot_dimension_numbers<[1], [0], [0], [1], [0, 0, 1, 1], [], []>} : vector<1x64xf32>, vector<64x64xf32>, vector<1x64xf32> -> vector<1x64xf32>
    %81 = arith.addf %77, %80 : vector<1x64xf32>
    %c0_62 = arith.constant 0 : index
    %c0_63 = arith.constant 0 : index
    %82 = vector.load %arg44[%c0_62, %c0_63] : memref<2x64xf32, #tpu.memory_space<vmem>>, vector<1x64xf32>
    tpu.vector_store %arg44[%c0_62, %c0_63], %81 {strides = array<i32>} : memref<2x64xf32, #tpu.memory_space<vmem>>, vector<1x64xf32>,
    %c16_64 = arith.constant 16 : index
    %c0_65 = arith.constant 0 : index
    %83 = vector.load %arg1[%c16_64, %c0_65] : memref<32x64xf32, #tpu.memory_space<vmem>>, vector<16x64xf32>
    %cst_66 = arith.constant 0.000000e+00 : f32
    %84 = vector.broadcast %cst_66 : f32 to vector<16x32xf32>
    %c0_67 = arith.constant 0 : index
    %c0_68 = arith.constant 0 : index
    %85 = vector.load %arg2[%c0_67, %c0_68] : memref<48x16xf32, #tpu.memory_space<vmem>>, vector<16x16xf32>
    %c0_69 = arith.constant 0 : index
    %c0_70 = arith.constant 0 : index
    %86 = vector.load %arg3[%c0_69, %c0_70] : memref<192x32xf32, #tpu.memory_space<vmem>>, vector<64x32xf32>
    %cst_71 = arith.constant dense<0.000000e+00> : vector<16x64xf32>
    %87 = tpu.matmul %85, %83, %cst_71 {dimension_numbers = #tpu.dot_dimension_numbers<[1], [0], [0], [1], [0, 0, 1, 1], [], []>} : vector<16x16xf32>, vector<16x64xf32>, vector<16x64xf32> -> vector<16x64xf32>
    %cst_72 = arith.constant dense<0.000000e+00> : vector<16x32xf32>
    %88 = tpu.matmul %87, %86, %cst_72 {dimension_numbers = #tpu.dot_dimension_numbers<[1], [0], [0], [1], [0, 0, 1, 1], [], []>} : vector<16x64xf32>, vector<64x32xf32>, vector<16x32xf32> -> vector<16x32xf32>
    %89 = arith.addf %84, %88 : vector<16x32xf32>
    %c16_73 = arith.constant 16 : index
    %c0_74 = arith.constant 0 : index
    %90 = vector.load %arg2[%c16_73, %c0_74] : memref<48x16xf32, #tpu.memory_space<vmem>>, vector<16x16xf32>
    %c64_75 = arith.constant 64 : index
    %c0_76 = arith.constant 0 : index
    %91 = vector.load %arg3[%c64_75, %c0_76] : memref<192x32xf32, #tpu.memory_space<vmem>>, vector<64x32xf32>
    %cst_77 = arith.constant dense<0.000000e+00> : vector<16x64xf32>
    %92 = tpu.matmul %90, %83, %cst_77 {dimension_numbers = #tpu.dot_dimension_numbers<[1], [0], [0], [1], [0, 0, 1, 1], [], []>} : vector<16x16xf32>, vector<16x64xf32>, vector<16x64xf32> -> vector<16x64xf32>
    %cst_78 = arith.constant dense<0.000000e+00> : vector<16x32xf32>
    %93 = tpu.matmul %92, %91, %cst_78 {dimension_numbers = #tpu.dot_dimension_numbers<[1], [0], [0], [1], [0, 0, 1, 1], [], []>} : vector<16x64xf32>, vector<64x32xf32>, vector<16x32xf32> -> vector<16x32xf32>
    %94 = arith.addf %89, %93 : vector<16x32xf32>
    %c32_79 = arith.constant 32 : index
    %c0_80 = arith.constant 0 : index
    %95 = vector.load %arg2[%c32_79, %c0_80] : memref<48x16xf32, #tpu.memory_space<vmem>>, vector<16x16xf32>
    %c128_81 = arith.constant 128 : index
    %c0_82 = arith.constant 0 : index
    %96 = vector.load %arg3[%c128_81, %c0_82] : memref<192x32xf32, #tpu.memory_space<vmem>>, vector<64x32xf32>
    %cst_83 = arith.constant dense<0.000000e+00> : vector<16x64xf32>
    %97 = tpu.matmul %95, %83, %cst_83 {dimension_numbers = #tpu.dot_dimension_numbers<[1], [0], [0], [1], [0, 0, 1, 1], [], []>} : vector<16x16xf32>, vector<16x64xf32>, vector<16x64xf32> -> vector<16x64xf32>
    %cst_84 = arith.constant dense<0.000000e+00> : vector<16x32xf32>
    %98 = tpu.matmul %97, %96, %cst_84 {dimension_numbers = #tpu.dot_dimension_numbers<[1], [0], [0], [1], [0, 0, 1, 1], [], []>} : vector<16x64xf32>, vector<64x32xf32>, vector<16x32xf32> -> vector<16x32xf32>
    %99 = arith.addf %94, %98 : vector<16x32xf32>
    %c0_85 = arith.constant 0 : index
    %c0_86 = arith.constant 0 : index
    %100 = vector.load %arg4[%c0_85, %c0_86] : memref<1x32xf32, #tpu.memory_space<vmem>>, vector<1x32xf32>
    %101 = vector.broadcast %100 : vector<1x32xf32> to vector<16x32xf32>
    %102 = arith.addf %99, %101 : vector<16x32xf32>
    %cst_87 = arith.constant 0.000000e+00 : f32
    %103 = vector.broadcast %cst_87 : f32 to vector<16x32xf32>
    %104 = arith.cmpf oge, %102, %103 : vector<16x32xf32>
    %cst_88 = arith.constant 2.000000e-01 : f32
    %105 = vector.broadcast %cst_88 : f32 to vector<16x32xf32>
    %106 = arith.mulf %105, %102 : vector<16x32xf32>
    %107 = arith.select %104, %102, %106 : vector<16x32xi1>, vector<16x32xf32>
    %cst_89 = arith.constant 0.000000e+00 : f32
    %108 = vector.broadcast %cst_89 : f32 to vector<8x64xf32>
    %c0_90 = arith.constant 0 : index
    %c0_91 = arith.constant 0 : index
    %109 = vector.load %arg5[%c0_90, %c0_91] : memref<24x16xf32, #tpu.memory_space<vmem>>, vector<8x16xf32>
    %c0_92 = arith.constant 0 : index
    %c0_93 = arith.constant 0 : index
    %110 = vector.load %arg6[%c0_92, %c0_93] : memref<96x64xf32, #tpu.memory_space<vmem>>, vector<32x64xf32>
    %cst_94 = arith.constant dense<0.000000e+00> : vector<8x32xf32>
    %111 = tpu.matmul %109, %107, %cst_94 {dimension_numbers = #tpu.dot_dimension_numbers<[1], [0], [0], [1], [0, 0, 1, 1], [], []>} : vector<8x16xf32>, vector<16x32xf32>, vector<8x32xf32> -> vector<8x32xf32>
    %cst_95 = arith.constant dense<0.000000e+00> : vector<8x64xf32>
    %112 = tpu.matmul %111, %110, %cst_95 {dimension_numbers = #tpu.dot_dimension_numbers<[1], [0], [0], [1], [0, 0, 1, 1], [], []>} : vector<8x32xf32>, vector<32x64xf32>, vector<8x64xf32> -> vector<8x64xf32>
    %113 = arith.addf %108, %112 : vector<8x64xf32>
    %c8_96 = arith.constant 8 : index
    %c0_97 = arith.constant 0 : index
    %114 = vector.load %arg5[%c8_96, %c0_97] : memref<24x16xf32, #tpu.memory_space<vmem>>, vector<8x16xf32>
    %c32_98 = arith.constant 32 : index
    %c0_99 = arith.constant 0 : index
    %115 = vector.load %arg6[%c32_98, %c0_99] : memref<96x64xf32, #tpu.memory_space<vmem>>, vector<32x64xf32>
    %cst_100 = arith.constant dense<0.000000e+00> : vector<8x32xf32>
    %116 = tpu.matmul %114, %107, %cst_100 {dimension_numbers = #tpu.dot_dimension_numbers<[1], [0], [0], [1], [0, 0, 1, 1], [], []>} : vector<8x16xf32>, vector<16x32xf32>, vector<8x32xf32> -> vector<8x32xf32>
    %cst_101 = arith.constant dense<0.000000e+00> : vector<8x64xf32>
    %117 = tpu.matmul %116, %115, %cst_101 {dimension_numbers = #tpu.dot_dimension_numbers<[1], [0], [0], [1], [0, 0, 1, 1], [], []>} : vector<8x32xf32>, vector<32x64xf32>, vector<8x64xf32> -> vector<8x64xf32>
    %118 = arith.addf %113, %117 : vector<8x64xf32>
    %c16_102 = arith.constant 16 : index
    %c0_103 = arith.constant 0 : index
    %119 = vector.load %arg5[%c16_102, %c0_103] : memref<24x16xf32, #tpu.memory_space<vmem>>, vector<8x16xf32>
    %c64_104 = arith.constant 64 : index
    %c0_105 = arith.constant 0 : index
    %120 = vector.load %arg6[%c64_104, %c0_105] : memref<96x64xf32, #tpu.memory_space<vmem>>, vector<32x64xf32>
    %cst_106 = arith.constant dense<0.000000e+00> : vector<8x32xf32>
    %121 = tpu.matmul %119, %107, %cst_106 {dimension_numbers = #tpu.dot_dimension_numbers<[1], [0], [0], [1], [0, 0, 1, 1], [], []>} : vector<8x16xf32>, vector<16x32xf32>, vector<8x32xf32> -> vector<8x32xf32>
    %cst_107 = arith.constant dense<0.000000e+00> : vector<8x64xf32>
    %122 = tpu.matmul %121, %120, %cst_107 {dimension_numbers = #tpu.dot_dimension_numbers<[1], [0], [0], [1], [0, 0, 1, 1], [], []>} : vector<8x32xf32>, vector<32x64xf32>, vector<8x64xf32> -> vector<8x64xf32>
    %123 = arith.addf %118, %122 : vector<8x64xf32>
    %c0_108 = arith.constant 0 : index
    %c0_109 = arith.constant 0 : index
    %124 = vector.load %arg7[%c0_108, %c0_109] : memref<1x64xf32, #tpu.memory_space<vmem>>, vector<1x64xf32>
    %125 = vector.broadcast %124 : vector<1x64xf32> to vector<8x64xf32>
    %126 = arith.addf %123, %125 : vector<8x64xf32>
    %cst_110 = arith.constant 0.000000e+00 : f32
    %127 = vector.broadcast %cst_110 : f32 to vector<8x64xf32>
    %128 = arith.cmpf oge, %126, %127 : vector<8x64xf32>
    %cst_111 = arith.constant 2.000000e-01 : f32
    %129 = vector.broadcast %cst_111 : f32 to vector<8x64xf32>
    %130 = arith.mulf %129, %126 : vector<8x64xf32>
    %131 = arith.select %128, %126, %130 : vector<8x64xi1>, vector<8x64xf32>
    %c0_112 = arith.constant 0 : index
    %c0_113 = arith.constant 0 : index
    %132 = vector.load %arg9[%c0_112, %c0_113] : memref<1x64xf32, #tpu.memory_space<vmem>>, vector<1x64xf32>
    %133 = vector.extract_strided_slice %131 {offsets = [0, 0], sizes = [1, 64], strides = [1, 1]} : vector<8x64xf32> to vector<1x64xf32>
    %c0_114 = arith.constant 0 : index
    %c0_115 = arith.constant 0 : index
    %134 = vector.load %arg8[%c0_114, %c0_115] : memref<512x64xf32, #tpu.memory_space<vmem>>, vector<64x64xf32>
    %cst_116 = arith.constant dense<0.000000e+00> : vector<1x64xf32>
    %135 = tpu.matmul %133, %134, %cst_116 {dimension_numbers = #tpu.dot_dimension_numbers<[1], [0], [0], [1], [0, 0, 1, 1], [], []>} : vector<1x64xf32>, vector<64x64xf32>, vector<1x64xf32> -> vector<1x64xf32>
    %136 = arith.addf %132, %135 : vector<1x64xf32>
    %137 = vector.extract_strided_slice %131 {offsets = [1, 0], sizes = [1, 64], strides = [1, 1]} : vector<8x64xf32> to vector<1x64xf32>
    %c64_117 = arith.constant 64 : index
    %c0_118 = arith.constant 0 : index
    %138 = vector.load %arg8[%c64_117, %c0_118] : memref<512x64xf32, #tpu.memory_space<vmem>>, vector<64x64xf32>
    %cst_119 = arith.constant dense<0.000000e+00> : vector<1x64xf32>
    %139 = tpu.matmul %137, %138, %cst_119 {dimension_numbers = #tpu.dot_dimension_numbers<[1], [0], [0], [1], [0, 0, 1, 1], [], []>} : vector<1x64xf32>, vector<64x64xf32>, vector<1x64xf32> -> vector<1x64xf32>
    %140 = arith.addf %136, %139 : vector<1x64xf32>
    %141 = vector.extract_strided_slice %131 {offsets = [2, 0], sizes = [1, 64], strides = [1, 1]} : vector<8x64xf32> to vector<1x64xf32>
    %c128_120 = arith.constant 128 : index
    %c0_121 = arith.constant 0 : index
    %142 = vector.load %arg8[%c128_120, %c0_121] : memref<512x64xf32, #tpu.memory_space<vmem>>, vector<64x64xf32>
    %cst_122 = arith.constant dense<0.000000e+00> : vector<1x64xf32>
    %143 = tpu.matmul %141, %142, %cst_122 {dimension_numbers = #tpu.dot_dimension_numbers<[1], [0], [0], [1], [0, 0, 1, 1], [], []>} : vector<1x64xf32>, vector<64x64xf32>, vector<1x64xf32> -> vector<1x64xf32>
    %144 = arith.addf %140, %143 : vector<1x64xf32>
    %145 = vector.extract_strided_slice %131 {offsets = [3, 0], sizes = [1, 64], strides = [1, 1]} : vector<8x64xf32> to vector<1x64xf32>
    %c192_123 = arith.constant 192 : index
    %c0_124 = arith.constant 0 : index
    %146 = vector.load %arg8[%c192_123, %c0_124] : memref<512x64xf32, #tpu.memory_space<vmem>>, vector<64x64xf32>
    %cst_125 = arith.constant dense<0.000000e+00> : vector<1x64xf32>
    %147 = tpu.matmul %145, %146, %cst_125 {dimension_numbers = #tpu.dot_dimension_numbers<[1], [0], [0], [1], [0, 0, 1, 1], [], []>} : vector<1x64xf32>, vector<64x64xf32>, vector<1x64xf32> -> vector<1x64xf32>
    %148 = arith.addf %144, %147 : vector<1x64xf32>
    %149 = vector.extract_strided_slice %131 {offsets = [4, 0], sizes = [1, 64], strides = [1, 1]} : vector<8x64xf32> to vector<1x64xf32>
    %c256_126 = arith.constant 256 : index
    %c0_127 = arith.constant 0 : index
    %150 = vector.load %arg8[%c256_126, %c0_127] : memref<512x64xf32, #tpu.memory_space<vmem>>, vector<64x64xf32>
    %cst_128 = arith.constant dense<0.000000e+00> : vector<1x64xf32>
    %151 = tpu.matmul %149, %150, %cst_128 {dimension_numbers = #tpu.dot_dimension_numbers<[1], [0], [0], [1], [0, 0, 1, 1], [], []>} : vector<1x64xf32>, vector<64x64xf32>, vector<1x64xf32> -> vector<1x64xf32>
    %152 = arith.addf %148, %151 : vector<1x64xf32>
    %153 = vector.extract_strided_slice %131 {offsets = [5, 0], sizes = [1, 64], strides = [1, 1]} : vector<8x64xf32> to vector<1x64xf32>
    %c320_129 = arith.constant 320 : index
    %c0_130 = arith.constant 0 : index
    %154 = vector.load %arg8[%c320_129, %c0_130] : memref<512x64xf32, #tpu.memory_space<vmem>>, vector<64x64xf32>
    %cst_131 = arith.constant dense<0.000000e+00> : vector<1x64xf32>
    %155 = tpu.matmul %153, %154, %cst_131 {dimension_numbers = #tpu.dot_dimension_numbers<[1], [0], [0], [1], [0, 0, 1, 1], [], []>} : vector<1x64xf32>, vector<64x64xf32>, vector<1x64xf32> -> vector<1x64xf32>
    %156 = arith.addf %152, %155 : vector<1x64xf32>
    %157 = vector.extract_strided_slice %131 {offsets = [6, 0], sizes = [1, 64], strides = [1, 1]} : vector<8x64xf32> to vector<1x64xf32>
    %c384_132 = arith.constant 384 : index
    %c0_133 = arith.constant 0 : index
    %158 = vector.load %arg8[%c384_132, %c0_133] : memref<512x64xf32, #tpu.memory_space<vmem>>, vector<64x64xf32>
    %cst_134 = arith.constant dense<0.000000e+00> : vector<1x64xf32>
    %159 = tpu.matmul %157, %158, %cst_134 {dimension_numbers = #tpu.dot_dimension_numbers<[1], [0], [0], [1], [0, 0, 1, 1], [], []>} : vector<1x64xf32>, vector<64x64xf32>, vector<1x64xf32> -> vector<1x64xf32>
    %160 = arith.addf %156, %159 : vector<1x64xf32>
    %161 = vector.extract_strided_slice %131 {offsets = [7, 0], sizes = [1, 64], strides = [1, 1]} : vector<8x64xf32> to vector<1x64xf32>
    %c448_135 = arith.constant 448 : index
    %c0_136 = arith.constant 0 : index
    %162 = vector.load %arg8[%c448_135, %c0_136] : memref<512x64xf32, #tpu.memory_space<vmem>>, vector<64x64xf32>
    %cst_137 = arith.constant dense<0.000000e+00> : vector<1x64xf32>
    %163 = tpu.matmul %161, %162, %cst_137 {dimension_numbers = #tpu.dot_dimension_numbers<[1], [0], [0], [1], [0, 0, 1, 1], [], []>} : vector<1x64xf32>, vector<64x64xf32>, vector<1x64xf32> -> vector<1x64xf32>
    %164 = arith.addf %160, %163 : vector<1x64xf32>
    %c1 = arith.constant 1 : index
    %c0_138 = arith.constant 0 : index
    %165 = vector.load %arg44[%c1, %c0_138] : memref<2x64xf32, #tpu.memory_space<vmem>>, vector<1x64xf32>
    tpu.vector_store %arg44[%c1, %c0_138], %164 {strides = array<i32>} : memref<2x64xf32, #tpu.memory_space<vmem>>, vector<1x64xf32>,
    %c0_139 = arith.constant 0 : index
    %c0_140 = arith.constant 0 : index
    %166 = vector.load %arg44[%c0_139, %c0_140] : memref<2x64xf32, #tpu.memory_space<vmem>>, vector<2x64xf32>
    %cst_141 = arith.constant 0.000000e+00 : f32
    %167 = vector.broadcast %cst_141 : f32 to vector<2x64xf32>
    %168 = arith.cmpf oge, %166, %167 : vector<2x64xf32>
    %cst_142 = arith.constant 2.000000e-01 : f32
    %169 = vector.broadcast %cst_142 : f32 to vector<2x64xf32>
    %170 = arith.mulf %169, %166 : vector<2x64xf32>
    %171 = arith.select %168, %166, %170 : vector<2x64xi1>, vector<2x64xf32>
    %c0_143 = arith.constant 0 : index
    %c0_144 = arith.constant 0 : index
    %172 = vector.load %arg10[%c0_143, %c0_144] : memref<64x32xf32, #tpu.memory_space<vmem>>, vector<64x32xf32>
    %cst_145 = arith.constant dense<0.000000e+00> : vector<2x32xf32>
    %173 = tpu.matmul %171, %172, %cst_145 {dimension_numbers = #tpu.dot_dimension_numbers<[1], [0], [0], [1], [0, 0, 1, 1], [], []>} : vector<2x64xf32>, vector<64x32xf32>, vector<2x32xf32> -> vector<2x32xf32>
    %c0_146 = arith.constant 0 : index
    %c0_147 = arith.constant 0 : index
    %174 = vector.load %arg11[%c0_146, %c0_147] : memref<1x32xf32, #tpu.memory_space<vmem>>, vector<1x32xf32>
    %175 = vector.broadcast %174 : vector<1x32xf32> to vector<2x32xf32>
    %176 = arith.addf %173, %175 : vector<2x32xf32>
    %cst_148 = arith.constant 0.000000e+00 : f32
    %177 = vector.broadcast %cst_148 : f32 to vector<2x32xf32>
    %178 = arith.cmpf oge, %176, %177 : vector<2x32xf32>
    %cst_149 = arith.constant 2.000000e-01 : f32
    %179 = vector.broadcast %cst_149 : f32 to vector<2x32xf32>
    %180 = arith.mulf %179, %176 : vector<2x32xf32>
    %181 = arith.select %178, %176, %180 : vector<2x32xi1>, vector<2x32xf32>
    %c0_150 = arith.constant 0 : index
    %c0_151 = arith.constant 0 : index
    %182 = vector.load %arg12[%c0_150, %c0_151] : memref<32x32xf32, #tpu.memory_space<vmem>>, vector<32x32xf32>
    %cst_152 = arith.constant dense<0.000000e+00> : vector<2x32xf32>
    %183 = tpu.matmul %181, %182, %cst_152 {dimension_numbers = #tpu.dot_dimension_numbers<[1], [0], [0], [1], [0, 0, 1, 1], [], []>} : vector<2x32xf32>, vector<32x32xf32>, vector<2x32xf32> -> vector<2x32xf32>
    %c0_153 = arith.constant 0 : index
    %c0_154 = arith.constant 0 : index
    %184 = vector.load %arg13[%c0_153, %c0_154] : memref<1x32xf32, #tpu.memory_space<vmem>>, vector<1x32xf32>
    %185 = vector.broadcast %184 : vector<1x32xf32> to vector<2x32xf32>
    %186 = arith.addf %183, %185 : vector<2x32xf32>
    %cst_155 = arith.constant 0.000000e+00 : f32
    %187 = vector.broadcast %cst_155 : f32 to vector<2x32xf32>
    %188 = arith.cmpf oge, %186, %187 : vector<2x32xf32>
    %cst_156 = arith.constant 2.000000e-01 : f32
    %189 = vector.broadcast %cst_156 : f32 to vector<2x32xf32>
    %190 = arith.mulf %189, %186 : vector<2x32xf32>
    %191 = arith.select %188, %186, %190 : vector<2x32xi1>, vector<2x32xf32>
    %c0_157 = arith.constant 0 : index
    %c0_158 = arith.constant 0 : index
    %192 = vector.load %arg14[%c0_157, %c0_158] : memref<32x32xf32, #tpu.memory_space<vmem>>, vector<32x32xf32>
    %cst_159 = arith.constant dense<0.000000e+00> : vector<2x32xf32>
    %193 = tpu.matmul %191, %192, %cst_159 {dimension_numbers = #tpu.dot_dimension_numbers<[1], [0], [0], [1], [0, 0, 1, 1], [], []>} : vector<2x32xf32>, vector<32x32xf32>, vector<2x32xf32> -> vector<2x32xf32>
    %c0_160 = arith.constant 0 : index
    %c0_161 = arith.constant 0 : index
    %194 = vector.load %arg15[%c0_160, %c0_161] : memref<1x32xf32, #tpu.memory_space<vmem>>, vector<1x32xf32>
    %195 = vector.broadcast %194 : vector<1x32xf32> to vector<2x32xf32>
    %196 = arith.addf %193, %195 : vector<2x32xf32>
    %cst_162 = arith.constant 0.000000e+00 : f32
    %197 = vector.broadcast %cst_162 : f32 to vector<2x32xf32>
    %198 = arith.cmpf oge, %196, %197 : vector<2x32xf32>
    %cst_163 = arith.constant 2.000000e-01 : f32
    %199 = vector.broadcast %cst_163 : f32 to vector<2x32xf32>
    %200 = arith.mulf %199, %196 : vector<2x32xf32>
    %201 = arith.select %198, %196, %200 : vector<2x32xi1>, vector<2x32xf32>
    %c0_164 = arith.constant 0 : index
    %c0_165 = arith.constant 0 : index
    %202 = vector.load %arg16[%c0_164, %c0_165] : memref<32x32xf32, #tpu.memory_space<vmem>>, vector<32x32xf32>
    %cst_166 = arith.constant dense<0.000000e+00> : vector<2x32xf32>
    %203 = tpu.matmul %201, %202, %cst_166 {dimension_numbers = #tpu.dot_dimension_numbers<[1], [0], [0], [1], [0, 0, 1, 1], [], []>} : vector<2x32xf32>, vector<32x32xf32>, vector<2x32xf32> -> vector<2x32xf32>
    %c0_167 = arith.constant 0 : index
    %c0_168 = arith.constant 0 : index
    %204 = vector.load %arg17[%c0_167, %c0_168] : memref<1x32xf32, #tpu.memory_space<vmem>>, vector<1x32xf32>
    %205 = vector.broadcast %204 : vector<1x32xf32> to vector<2x32xf32>
    %206 = arith.addf %203, %205 : vector<2x32xf32>
    %207 = math.tanh %206 : vector<2x32xf32>
    %c0_169 = arith.constant 0 : index
    %c0_170 = arith.constant 0 : index
    %208 = vector.load %arg34[%c0_169, %c0_170] : memref<32x32xf32, #tpu.memory_space<vmem>>, vector<32x32xf32>
    %cst_171 = arith.constant dense<0.000000e+00> : vector<2x32xf32>
    %209 = tpu.matmul %207, %208, %cst_171 {dimension_numbers = #tpu.dot_dimension_numbers<[1], [0], [0], [1], [0, 0, 1, 1], [], []>} : vector<2x32xf32>, vector<32x32xf32>, vector<2x32xf32> -> vector<2x32xf32>
    %c0_172 = arith.constant 0 : index
    %c0_173 = arith.constant 0 : index
    %210 = vector.load %arg35[%c0_172, %c0_173] : memref<1x32xf32, #tpu.memory_space<vmem>>, vector<1x32xf32>
    %211 = vector.broadcast %210 : vector<1x32xf32> to vector<2x32xf32>
    %212 = arith.addf %209, %211 : vector<2x32xf32>
    %cst_174 = arith.constant 0.000000e+00 : f32
    %213 = vector.broadcast %cst_174 : f32 to vector<2x32xf32>
    %214 = arith.cmpf oge, %212, %213 : vector<2x32xf32>
    %cst_175 = arith.constant 2.000000e-01 : f32
    %215 = vector.broadcast %cst_175 : f32 to vector<2x32xf32>
    %216 = arith.mulf %215, %212 : vector<2x32xf32>
    %217 = arith.select %214, %212, %216 : vector<2x32xi1>, vector<2x32xf32>
    %c0_176 = arith.constant 0 : index
    %c0_177 = arith.constant 0 : index
    %218 = vector.load %arg36[%c0_176, %c0_177] : memref<32x16xf32, #tpu.memory_space<vmem>>, vector<32x16xf32>
    %cst_178 = arith.constant dense<0.000000e+00> : vector<2x16xf32>
    %219 = tpu.matmul %217, %218, %cst_178 {dimension_numbers = #tpu.dot_dimension_numbers<[1], [0], [0], [1], [0, 0, 1, 1], [], []>} : vector<2x32xf32>, vector<32x16xf32>, vector<2x16xf32> -> vector<2x16xf32>
    %c0_179 = arith.constant 0 : index
    %c0_180 = arith.constant 0 : index
    %220 = vector.load %arg37[%c0_179, %c0_180] : memref<1x16xf32, #tpu.memory_space<vmem>>, vector<1x16xf32>
    %221 = vector.broadcast %220 : vector<1x16xf32> to vector<2x16xf32>
    %222 = arith.addf %219, %221 : vector<2x16xf32>
    %cst_181 = arith.constant 0.000000e+00 : f32
    %223 = vector.broadcast %cst_181 : f32 to vector<2x16xf32>
    %224 = arith.cmpf oge, %222, %223 : vector<2x16xf32>
    %cst_182 = arith.constant 2.000000e-01 : f32
    %225 = vector.broadcast %cst_182 : f32 to vector<2x16xf32>
    %226 = arith.mulf %225, %222 : vector<2x16xf32>
    %227 = arith.select %224, %222, %226 : vector<2x16xi1>, vector<2x16xf32>
    %c0_183 = arith.constant 0 : index
    %c0_184 = arith.constant 0 : index
    %228 = vector.load %arg38[%c0_183, %c0_184] : memref<16x8xf32, #tpu.memory_space<vmem>>, vector<16x8xf32>
    %cst_185 = arith.constant dense<0.000000e+00> : vector<2x8xf32>
    %229 = tpu.matmul %227, %228, %cst_185 {dimension_numbers = #tpu.dot_dimension_numbers<[1], [0], [0], [1], [0, 0, 1, 1], [], []>} : vector<2x16xf32>, vector<16x8xf32>, vector<2x8xf32> -> vector<2x8xf32>
    %c0_186 = arith.constant 0 : index
    %c0_187 = arith.constant 0 : index
    %230 = vector.load %arg39[%c0_186, %c0_187] : memref<1x8xf32, #tpu.memory_space<vmem>>, vector<1x8xf32>
    %231 = vector.broadcast %230 : vector<1x8xf32> to vector<2x8xf32>
    %232 = arith.addf %229, %231 : vector<2x8xf32>
    %cst_188 = arith.constant 0.000000e+00 : f32
    %233 = vector.broadcast %cst_188 : f32 to vector<2x8xf32>
    %234 = arith.cmpf oge, %232, %233 : vector<2x8xf32>
    %cst_189 = arith.constant 2.000000e-01 : f32
    %235 = vector.broadcast %cst_189 : f32 to vector<2x8xf32>
    %236 = arith.mulf %235, %232 : vector<2x8xf32>
    %237 = arith.select %234, %232, %236 : vector<2x8xi1>, vector<2x8xf32>
    %c0_190 = arith.constant 0 : index
    %c0_191 = arith.constant 0 : index
    %238 = vector.load %arg40[%c0_190, %c0_191] : memref<8x1xf32, #tpu.memory_space<vmem>>, vector<8x1xf32>
    %cst_192 = arith.constant dense<0.000000e+00> : vector<2x1xf32>
    %239 = tpu.matmul %237, %238, %cst_192 {dimension_numbers = #tpu.dot_dimension_numbers<[1], [0], [0], [1], [0, 0, 1, 1], [], []>} : vector<2x8xf32>, vector<8x1xf32>, vector<2x1xf32> -> vector<2x1xf32>
    %c0_193 = arith.constant 0 : index
    %c0_194 = arith.constant 0 : index
    %240 = vector.load %arg41[%c0_193, %c0_194] : memref<1x1xf32, #tpu.memory_space<vmem>>, vector<1x1xf32>
    %241 = vector.broadcast %240 : vector<1x1xf32> to vector<2x1xf32>
    %242 = arith.addf %239, %241 : vector<2x1xf32>
    %243 = math.tanh %242 : vector<2x1xf32>
    %c0_195 = arith.constant 0 : index
    %c0_196 = arith.constant 0 : index
    %244 = vector.load %arg43[%c0_195, %c0_196] : memref<2x1xf32, #tpu.memory_space<vmem>>, vector<2x1xf32>
    tpu.vector_store %arg43[%c0_195, %c0_196], %243 {strides = array<i32>} : memref<2x1xf32, #tpu.memory_space<vmem>>, vector<2x1xf32>,
    %c0_197 = arith.constant 0 : index
    %c0_198 = arith.constant 0 : index
    %245 = vector.load %arg18[%c0_197, %c0_198] : memref<32x32xf32, #tpu.memory_space<vmem>>, vector<32x32xf32>
    %cst_199 = arith.constant dense<0.000000e+00> : vector<2x32xf32>
    %246 = tpu.matmul %207, %245, %cst_199 {dimension_numbers = #tpu.dot_dimension_numbers<[1], [0], [0], [1], [0, 0, 1, 1], [], []>} : vector<2x32xf32>, vector<32x32xf32>, vector<2x32xf32> -> vector<2x32xf32>
    %c0_200 = arith.constant 0 : index
    %c0_201 = arith.constant 0 : index
    %247 = vector.load %arg19[%c0_200, %c0_201] : memref<1x32xf32, #tpu.memory_space<vmem>>, vector<1x32xf32>
    %248 = vector.broadcast %247 : vector<1x32xf32> to vector<2x32xf32>
    %249 = arith.addf %246, %248 : vector<2x32xf32>
    %cst_202 = arith.constant 0.000000e+00 : f32
    %250 = vector.broadcast %cst_202 : f32 to vector<2x32xf32>
    %251 = arith.cmpf oge, %249, %250 : vector<2x32xf32>
    %cst_203 = arith.constant 2.000000e-01 : f32
    %252 = vector.broadcast %cst_203 : f32 to vector<2x32xf32>
    %253 = arith.mulf %252, %249 : vector<2x32xf32>
    %254 = arith.select %251, %249, %253 : vector<2x32xi1>, vector<2x32xf32>
    %c0_204 = arith.constant 0 : index
    %c0_205 = arith.constant 0 : index
    %255 = vector.load %arg20[%c0_204, %c0_205] : memref<32x32xf32, #tpu.memory_space<vmem>>, vector<32x32xf32>
    %cst_206 = arith.constant dense<0.000000e+00> : vector<2x32xf32>
    %256 = tpu.matmul %254, %255, %cst_206 {dimension_numbers = #tpu.dot_dimension_numbers<[1], [0], [0], [1], [0, 0, 1, 1], [], []>} : vector<2x32xf32>, vector<32x32xf32>, vector<2x32xf32> -> vector<2x32xf32>
    %c0_207 = arith.constant 0 : index
    %c0_208 = arith.constant 0 : index
    %257 = vector.load %arg21[%c0_207, %c0_208] : memref<1x32xf32, #tpu.memory_space<vmem>>, vector<1x32xf32>
    %258 = vector.broadcast %257 : vector<1x32xf32> to vector<2x32xf32>
    %259 = arith.addf %256, %258 : vector<2x32xf32>
    %cst_209 = arith.constant 0.000000e+00 : f32
    %260 = vector.broadcast %cst_209 : f32 to vector<2x32xf32>
    %261 = arith.cmpf oge, %259, %260 : vector<2x32xf32>
    %cst_210 = arith.constant 2.000000e-01 : f32
    %262 = vector.broadcast %cst_210 : f32 to vector<2x32xf32>
    %263 = arith.mulf %262, %259 : vector<2x32xf32>
    %264 = arith.select %261, %259, %263 : vector<2x32xi1>, vector<2x32xf32>
    %c0_211 = arith.constant 0 : index
    %c0_212 = arith.constant 0 : index
    %265 = vector.load %arg22[%c0_211, %c0_212] : memref<32x32xf32, #tpu.memory_space<vmem>>, vector<32x32xf32>
    %cst_213 = arith.constant dense<0.000000e+00> : vector<2x32xf32>
    %266 = tpu.matmul %264, %265, %cst_213 {dimension_numbers = #tpu.dot_dimension_numbers<[1], [0], [0], [1], [0, 0, 1, 1], [], []>} : vector<2x32xf32>, vector<32x32xf32>, vector<2x32xf32> -> vector<2x32xf32>
    %c0_214 = arith.constant 0 : index
    %c0_215 = arith.constant 0 : index
    %267 = vector.load %arg23[%c0_214, %c0_215] : memref<1x32xf32, #tpu.memory_space<vmem>>, vector<1x32xf32>
    %268 = vector.broadcast %267 : vector<1x32xf32> to vector<2x32xf32>
    %269 = arith.addf %266, %268 : vector<2x32xf32>
    %cst_216 = arith.constant 0.000000e+00 : f32
    %270 = vector.broadcast %cst_216 : f32 to vector<2x32xf32>
    %271 = arith.cmpf oge, %269, %270 : vector<2x32xf32>
    %cst_217 = arith.constant 2.000000e-01 : f32
    %272 = vector.broadcast %cst_217 : f32 to vector<2x32xf32>
    %273 = arith.mulf %272, %269 : vector<2x32xf32>
    %274 = arith.select %271, %269, %273 : vector<2x32xi1>, vector<2x32xf32>
    %c0_218 = arith.constant 0 : index
    %c0_219 = arith.constant 0 : index
    %275 = vector.load %arg24[%c0_218, %c0_219] : memref<32x64xf32, #tpu.memory_space<vmem>>, vector<32x64xf32>
    %cst_220 = arith.constant dense<0.000000e+00> : vector<2x64xf32>
    %276 = tpu.matmul %274, %275, %cst_220 {dimension_numbers = #tpu.dot_dimension_numbers<[1], [0], [0], [1], [0, 0, 1, 1], [], []>} : vector<2x32xf32>, vector<32x64xf32>, vector<2x64xf32> -> vector<2x64xf32>
    %c0_221 = arith.constant 0 : index
    %c0_222 = arith.constant 0 : index
    %277 = vector.load %arg25[%c0_221, %c0_222] : memref<1x64xf32, #tpu.memory_space<vmem>>, vector<1x64xf32>
    %278 = vector.broadcast %277 : vector<1x64xf32> to vector<2x64xf32>
    %279 = arith.addf %276, %278 : vector<2x64xf32>
    %cst_223 = arith.constant 0.000000e+00 : f32
    %280 = vector.broadcast %cst_223 : f32 to vector<2x64xf32>
    %281 = arith.cmpf oge, %279, %280 : vector<2x64xf32>
    %cst_224 = arith.constant 2.000000e-01 : f32
    %282 = vector.broadcast %cst_224 : f32 to vector<2x64xf32>
    %283 = arith.mulf %282, %279 : vector<2x64xf32>
    %284 = arith.select %281, %279, %283 : vector<2x64xi1>, vector<2x64xf32>
    %c0_225 = arith.constant 0 : index
    %c0_226 = arith.constant 0 : index
    %285 = vector.load %arg26[%c0_225, %c0_226] : memref<64x512xf32, #tpu.memory_space<vmem>>, vector<64x512xf32>
    %cst_227 = arith.constant dense<0.000000e+00> : vector<2x512xf32>
    %286 = tpu.matmul %284, %285, %cst_227 {dimension_numbers = #tpu.dot_dimension_numbers<[1], [0], [0], [1], [0, 0, 1, 1], [], []>} : vector<2x64xf32>, vector<64x512xf32>, vector<2x512xf32> -> vector<2x512xf32>
    %c0_228 = arith.constant 0 : index
    %c0_229 = arith.constant 0 : index
    %287 = vector.load %arg27[%c0_228, %c0_229] : memref<1x512xf32, #tpu.memory_space<vmem>>, vector<1x512xf32>
    %288 = vector.broadcast %287 : vector<1x512xf32> to vector<2x512xf32>
    %289 = arith.addf %286, %288 : vector<2x512xf32>
    %cst_230 = arith.constant 0.000000e+00 : f32
    %290 = vector.broadcast %cst_230 : f32 to vector<2x512xf32>
    %291 = arith.cmpf oge, %289, %290 : vector<2x512xf32>
    %cst_231 = arith.constant 2.000000e-01 : f32
    %292 = vector.broadcast %cst_231 : f32 to vector<2x512xf32>
    %293 = arith.mulf %292, %289 : vector<2x512xf32>
    %294 = arith.select %291, %289, %293 : vector<2x512xi1>, vector<2x512xf32>
    %295 = vector.extract_strided_slice %294 {offsets = [0, 0], sizes = [1, 64], strides = [1, 1]} : vector<2x512xf32> to vector<1x64xf32>
    %c0_232 = arith.constant 0 : index
    %c0_233 = arith.constant 0 : index
    %296 = vector.load %arg45[%c0_232, %c0_233] : memref<8x64xf32, #tpu.memory_space<vmem>>, vector<1x64xf32>
    tpu.vector_store %arg45[%c0_232, %c0_233], %295 {strides = array<i32>} : memref<8x64xf32, #tpu.memory_space<vmem>>, vector<1x64xf32>,
    %297 = vector.extract_strided_slice %294 {offsets = [0, 64], sizes = [1, 64], strides = [1, 1]} : vector<2x512xf32> to vector<1x64xf32>
    %c1_234 = arith.constant 1 : index
    %c0_235 = arith.constant 0 : index
    %298 = vector.load %arg45[%c1_234, %c0_235] : memref<8x64xf32, #tpu.memory_space<vmem>>, vector<1x64xf32>
    tpu.vector_store %arg45[%c1_234, %c0_235], %297 {strides = array<i32>} : memref<8x64xf32, #tpu.memory_space<vmem>>, vector<1x64xf32>,
    %299 = vector.extract_strided_slice %294 {offsets = [0, 128], sizes = [1, 64], strides = [1, 1]} : vector<2x512xf32> to vector<1x64xf32>
    %c2 = arith.constant 2 : index
    %c0_236 = arith.constant 0 : index
    %300 = vector.load %arg45[%c2, %c0_236] : memref<8x64xf32, #tpu.memory_space<vmem>>, vector<1x64xf32>
    tpu.vector_store %arg45[%c2, %c0_236], %299 {strides = array<i32>} : memref<8x64xf32, #tpu.memory_space<vmem>>, vector<1x64xf32>,
    %301 = vector.extract_strided_slice %294 {offsets = [0, 192], sizes = [1, 64], strides = [1, 1]} : vector<2x512xf32> to vector<1x64xf32>
    %c3 = arith.constant 3 : index
    %c0_237 = arith.constant 0 : index
    %302 = vector.load %arg45[%c3, %c0_237] : memref<8x64xf32, #tpu.memory_space<vmem>>, vector<1x64xf32>
    tpu.vector_store %arg45[%c3, %c0_237], %301 {strides = array<i32>} : memref<8x64xf32, #tpu.memory_space<vmem>>, vector<1x64xf32>,
    %303 = vector.extract_strided_slice %294 {offsets = [0, 256], sizes = [1, 64], strides = [1, 1]} : vector<2x512xf32> to vector<1x64xf32>
    %c4 = arith.constant 4 : index
    %c0_238 = arith.constant 0 : index
    %304 = vector.load %arg45[%c4, %c0_238] : memref<8x64xf32, #tpu.memory_space<vmem>>, vector<1x64xf32>
    tpu.vector_store %arg45[%c4, %c0_238], %303 {strides = array<i32>} : memref<8x64xf32, #tpu.memory_space<vmem>>, vector<1x64xf32>,
    %305 = vector.extract_strided_slice %294 {offsets = [0, 320], sizes = [1, 64], strides = [1, 1]} : vector<2x512xf32> to vector<1x64xf32>
    %c5 = arith.constant 5 : index
    %c0_239 = arith.constant 0 : index
    %306 = vector.load %arg45[%c5, %c0_239] : memref<8x64xf32, #tpu.memory_space<vmem>>, vector<1x64xf32>
    tpu.vector_store %arg45[%c5, %c0_239], %305 {strides = array<i32>} : memref<8x64xf32, #tpu.memory_space<vmem>>, vector<1x64xf32>,
    %307 = vector.extract_strided_slice %294 {offsets = [0, 384], sizes = [1, 64], strides = [1, 1]} : vector<2x512xf32> to vector<1x64xf32>
    %c6 = arith.constant 6 : index
    %c0_240 = arith.constant 0 : index
    %308 = vector.load %arg45[%c6, %c0_240] : memref<8x64xf32, #tpu.memory_space<vmem>>, vector<1x64xf32>
    tpu.vector_store %arg45[%c6, %c0_240], %307 {strides = array<i32>} : memref<8x64xf32, #tpu.memory_space<vmem>>, vector<1x64xf32>,
    %309 = vector.extract_strided_slice %294 {offsets = [0, 448], sizes = [1, 64], strides = [1, 1]} : vector<2x512xf32> to vector<1x64xf32>
    %c7 = arith.constant 7 : index
    %c0_241 = arith.constant 0 : index
    %310 = vector.load %arg45[%c7, %c0_241] : memref<8x64xf32, #tpu.memory_space<vmem>>, vector<1x64xf32>
    tpu.vector_store %arg45[%c7, %c0_241], %309 {strides = array<i32>} : memref<8x64xf32, #tpu.memory_space<vmem>>, vector<1x64xf32>,
    %c0_242 = arith.constant 0 : index
    %c0_243 = arith.constant 0 : index
    %311 = vector.load %arg45[%c0_242, %c0_243] : memref<8x64xf32, #tpu.memory_space<vmem>>, vector<8x64xf32>
    %cst_244 = arith.constant 0.000000e+00 : f32
    %312 = vector.broadcast %cst_244 : f32 to vector<16x32xf32>
    %c0_245 = arith.constant 0 : index
    %c0_246 = arith.constant 0 : index
    %313 = vector.load %arg28[%c0_245, %c0_246] : memref<48x8xf32, #tpu.memory_space<vmem>>, vector<16x8xf32>
    %c0_247 = arith.constant 0 : index
    %c0_248 = arith.constant 0 : index
    %314 = vector.load %arg29[%c0_247, %c0_248] : memref<192x32xf32, #tpu.memory_space<vmem>>, vector<64x32xf32>
    %cst_249 = arith.constant dense<0.000000e+00> : vector<16x64xf32>
    %315 = tpu.matmul %313, %311, %cst_249 {dimension_numbers = #tpu.dot_dimension_numbers<[1], [0], [0], [1], [0, 0, 1, 1], [], []>} : vector<16x8xf32>, vector<8x64xf32>, vector<16x64xf32> -> vector<16x64xf32>
    %cst_250 = arith.constant dense<0.000000e+00> : vector<16x32xf32>
    %316 = tpu.matmul %315, %314, %cst_250 {dimension_numbers = #tpu.dot_dimension_numbers<[1], [0], [0], [1], [0, 0, 1, 1], [], []>} : vector<16x64xf32>, vector<64x32xf32>, vector<16x32xf32> -> vector<16x32xf32>
    %317 = arith.addf %312, %316 : vector<16x32xf32>
    %c16_251 = arith.constant 16 : index
    %c0_252 = arith.constant 0 : index
    %318 = vector.load %arg28[%c16_251, %c0_252] : memref<48x8xf32, #tpu.memory_space<vmem>>, vector<16x8xf32>
    %c64_253 = arith.constant 64 : index
    %c0_254 = arith.constant 0 : index
    %319 = vector.load %arg29[%c64_253, %c0_254] : memref<192x32xf32, #tpu.memory_space<vmem>>, vector<64x32xf32>
    %cst_255 = arith.constant dense<0.000000e+00> : vector<16x64xf32>
    %320 = tpu.matmul %318, %311, %cst_255 {dimension_numbers = #tpu.dot_dimension_numbers<[1], [0], [0], [1], [0, 0, 1, 1], [], []>} : vector<16x8xf32>, vector<8x64xf32>, vector<16x64xf32> -> vector<16x64xf32>
    %cst_256 = arith.constant dense<0.000000e+00> : vector<16x32xf32>
    %321 = tpu.matmul %320, %319, %cst_256 {dimension_numbers = #tpu.dot_dimension_numbers<[1], [0], [0], [1], [0, 0, 1, 1], [], []>} : vector<16x64xf32>, vector<64x32xf32>, vector<16x32xf32> -> vector<16x32xf32>
    %322 = arith.addf %317, %321 : vector<16x32xf32>
    %c32_257 = arith.constant 32 : index
    %c0_258 = arith.constant 0 : index
    %323 = vector.load %arg28[%c32_257, %c0_258] : memref<48x8xf32, #tpu.memory_space<vmem>>, vector<16x8xf32>
    %c128_259 = arith.constant 128 : index
    %c0_260 = arith.constant 0 : index
    %324 = vector.load %arg29[%c128_259, %c0_260] : memref<192x32xf32, #tpu.memory_space<vmem>>, vector<64x32xf32>
    %cst_261 = arith.constant dense<0.000000e+00> : vector<16x64xf32>
    %325 = tpu.matmul %323, %311, %cst_261 {dimension_numbers = #tpu.dot_dimension_numbers<[1], [0], [0], [1], [0, 0, 1, 1], [], []>} : vector<16x8xf32>, vector<8x64xf32>, vector<16x64xf32> -> vector<16x64xf32>
    %cst_262 = arith.constant dense<0.000000e+00> : vector<16x32xf32>
    %326 = tpu.matmul %325, %324, %cst_262 {dimension_numbers = #tpu.dot_dimension_numbers<[1], [0], [0], [1], [0, 0, 1, 1], [], []>} : vector<16x64xf32>, vector<64x32xf32>, vector<16x32xf32> -> vector<16x32xf32>
    %327 = arith.addf %322, %326 : vector<16x32xf32>
    %c0_263 = arith.constant 0 : index
    %c0_264 = arith.constant 0 : index
    %328 = vector.load %arg30[%c0_263, %c0_264] : memref<1x32xf32, #tpu.memory_space<vmem>>, vector<1x32xf32>
    %329 = vector.broadcast %328 : vector<1x32xf32> to vector<16x32xf32>
    %330 = arith.addf %327, %329 : vector<16x32xf32>
    %cst_265 = arith.constant 0.000000e+00 : f32
    %331 = vector.broadcast %cst_265 : f32 to vector<16x32xf32>
    %332 = arith.cmpf oge, %330, %331 : vector<16x32xf32>
    %cst_266 = arith.constant 2.000000e-01 : f32
    %333 = vector.broadcast %cst_266 : f32 to vector<16x32xf32>
    %334 = arith.mulf %333, %330 : vector<16x32xf32>
    %335 = arith.select %332, %330, %334 : vector<16x32xi1>, vector<16x32xf32>
    %cst_267 = arith.constant 0.000000e+00 : f32
    %336 = vector.broadcast %cst_267 : f32 to vector<16x64xf32>
    %c0_268 = arith.constant 0 : index
    %c0_269 = arith.constant 0 : index
    %337 = vector.load %arg31[%c0_268, %c0_269] : memref<48x16xf32, #tpu.memory_space<vmem>>, vector<16x16xf32>
    %c0_270 = arith.constant 0 : index
    %c0_271 = arith.constant 0 : index
    %338 = vector.load %arg32[%c0_270, %c0_271] : memref<96x64xf32, #tpu.memory_space<vmem>>, vector<32x64xf32>
    %cst_272 = arith.constant dense<0.000000e+00> : vector<16x32xf32>
    %339 = tpu.matmul %337, %335, %cst_272 {dimension_numbers = #tpu.dot_dimension_numbers<[1], [0], [0], [1], [0, 0, 1, 1], [], []>} : vector<16x16xf32>, vector<16x32xf32>, vector<16x32xf32> -> vector<16x32xf32>
    %cst_273 = arith.constant dense<0.000000e+00> : vector<16x64xf32>
    %340 = tpu.matmul %339, %338, %cst_273 {dimension_numbers = #tpu.dot_dimension_numbers<[1], [0], [0], [1], [0, 0, 1, 1], [], []>} : vector<16x32xf32>, vector<32x64xf32>, vector<16x64xf32> -> vector<16x64xf32>
    %341 = arith.addf %336, %340 : vector<16x64xf32>
    %c16_274 = arith.constant 16 : index
    %c0_275 = arith.constant 0 : index
    %342 = vector.load %arg31[%c16_274, %c0_275] : memref<48x16xf32, #tpu.memory_space<vmem>>, vector<16x16xf32>
    %c32_276 = arith.constant 32 : index
    %c0_277 = arith.constant 0 : index
    %343 = vector.load %arg32[%c32_276, %c0_277] : memref<96x64xf32, #tpu.memory_space<vmem>>, vector<32x64xf32>
    %cst_278 = arith.constant dense<0.000000e+00> : vector<16x32xf32>
    %344 = tpu.matmul %342, %335, %cst_278 {dimension_numbers = #tpu.dot_dimension_numbers<[1], [0], [0], [1], [0, 0, 1, 1], [], []>} : vector<16x16xf32>, vector<16x32xf32>, vector<16x32xf32> -> vector<16x32xf32>
    %cst_279 = arith.constant dense<0.000000e+00> : vector<16x64xf32>
    %345 = tpu.matmul %344, %343, %cst_279 {dimension_numbers = #tpu.dot_dimension_numbers<[1], [0], [0], [1], [0, 0, 1, 1], [], []>} : vector<16x32xf32>, vector<32x64xf32>, vector<16x64xf32> -> vector<16x64xf32>
    %346 = arith.addf %341, %345 : vector<16x64xf32>
    %c32_280 = arith.constant 32 : index
    %c0_281 = arith.constant 0 : index
    %347 = vector.load %arg31[%c32_280, %c0_281] : memref<48x16xf32, #tpu.memory_space<vmem>>, vector<16x16xf32>
    %c64_282 = arith.constant 64 : index
    %c0_283 = arith.constant 0 : index
    %348 = vector.load %arg32[%c64_282, %c0_283] : memref<96x64xf32, #tpu.memory_space<vmem>>, vector<32x64xf32>
    %cst_284 = arith.constant dense<0.000000e+00> : vector<16x32xf32>
    %349 = tpu.matmul %347, %335, %cst_284 {dimension_numbers = #tpu.dot_dimension_numbers<[1], [0], [0], [1], [0, 0, 1, 1], [], []>} : vector<16x16xf32>, vector<16x32xf32>, vector<16x32xf32> -> vector<16x32xf32>
    %cst_285 = arith.constant dense<0.000000e+00> : vector<16x64xf32>
    %350 = tpu.matmul %349, %348, %cst_285 {dimension_numbers = #tpu.dot_dimension_numbers<[1], [0], [0], [1], [0, 0, 1, 1], [], []>} : vector<16x32xf32>, vector<32x64xf32>, vector<16x64xf32> -> vector<16x64xf32>
    %351 = arith.addf %346, %350 : vector<16x64xf32>
    %c0_286 = arith.constant 0 : index
    %c0_287 = arith.constant 0 : index
    %352 = vector.load %arg33[%c0_286, %c0_287] : memref<1x64xf32, #tpu.memory_space<vmem>>, vector<1x64xf32>
    %353 = vector.broadcast %352 : vector<1x64xf32> to vector<16x64xf32>
    %354 = arith.addf %351, %353 : vector<16x64xf32>
    %cst_288 = arith.constant 0.000000e+00 : f32
    %355 = vector.broadcast %cst_288 : f32 to vector<16x64xf32>
    %356 = arith.subf %355, %354 : vector<16x64xf32>
    %357 = math.exp %356 : vector<16x64xf32>
    %cst_289 = arith.constant 1.000000e+00 : f32
    %358 = vector.broadcast %cst_289 : f32 to vector<16x64xf32>
    %359 = arith.addf %358, %357 : vector<16x64xf32>
    %360 = tpu.reciprocal %359 {approx = true} : vector<16x64xf32> -> vector<16x64xf32>
    %c0_290 = arith.constant 0 : index
    %c0_291 = arith.constant 0 : index
    %361 = vector.load %arg42[%c0_290, %c0_291] : memref<32x64xf32, #tpu.memory_space<vmem>>, vector<16x64xf32>
    tpu.vector_store %arg42[%c0_290, %c0_291], %360 {strides = array<i32>} : memref<32x64xf32, #tpu.memory_space<vmem>>, vector<16x64xf32>,
    %362 = vector.extract_strided_slice %294 {offsets = [1, 0], sizes = [1, 64], strides = [1, 1]} : vector<2x512xf32> to vector<1x64xf32>
    %c0_292 = arith.constant 0 : index
    %c0_293 = arith.constant 0 : index
    %363 = vector.load %arg45[%c0_292, %c0_293] : memref<8x64xf32, #tpu.memory_space<vmem>>, vector<1x64xf32>
    tpu.vector_store %arg45[%c0_292, %c0_293], %362 {strides = array<i32>} : memref<8x64xf32, #tpu.memory_space<vmem>>, vector<1x64xf32>,
    %364 = vector.extract_strided_slice %294 {offsets = [1, 64], sizes = [1, 64], strides = [1, 1]} : vector<2x512xf32> to vector<1x64xf32>
    %c1_294 = arith.constant 1 : index
    %c0_295 = arith.constant 0 : index
    %365 = vector.load %arg45[%c1_294, %c0_295] : memref<8x64xf32, #tpu.memory_space<vmem>>, vector<1x64xf32>
    tpu.vector_store %arg45[%c1_294, %c0_295], %364 {strides = array<i32>} : memref<8x64xf32, #tpu.memory_space<vmem>>, vector<1x64xf32>,
    %366 = vector.extract_strided_slice %294 {offsets = [1, 128], sizes = [1, 64], strides = [1, 1]} : vector<2x512xf32> to vector<1x64xf32>
    %c2_296 = arith.constant 2 : index
    %c0_297 = arith.constant 0 : index
    %367 = vector.load %arg45[%c2_296, %c0_297] : memref<8x64xf32, #tpu.memory_space<vmem>>, vector<1x64xf32>
    tpu.vector_store %arg45[%c2_296, %c0_297], %366 {strides = array<i32>} : memref<8x64xf32, #tpu.memory_space<vmem>>, vector<1x64xf32>,
    %368 = vector.extract_strided_slice %294 {offsets = [1, 192], sizes = [1, 64], strides = [1, 1]} : vector<2x512xf32> to vector<1x64xf32>
    %c3_298 = arith.constant 3 : index
    %c0_299 = arith.constant 0 : index
    %369 = vector.load %arg45[%c3_298, %c0_299] : memref<8x64xf32, #tpu.memory_space<vmem>>, vector<1x64xf32>
    tpu.vector_store %arg45[%c3_298, %c0_299], %368 {strides = array<i32>} : memref<8x64xf32, #tpu.memory_space<vmem>>, vector<1x64xf32>,
    %370 = vector.extract_strided_slice %294 {offsets = [1, 256], sizes = [1, 64], strides = [1, 1]} : vector<2x512xf32> to vector<1x64xf32>
    %c4_300 = arith.constant 4 : index
    %c0_301 = arith.constant 0 : index
    %371 = vector.load %arg45[%c4_300, %c0_301] : memref<8x64xf32, #tpu.memory_space<vmem>>, vector<1x64xf32>
    tpu.vector_store %arg45[%c4_300, %c0_301], %370 {strides = array<i32>} : memref<8x64xf32, #tpu.memory_space<vmem>>, vector<1x64xf32>,
    %372 = vector.extract_strided_slice %294 {offsets = [1, 320], sizes = [1, 64], strides = [1, 1]} : vector<2x512xf32> to vector<1x64xf32>
    %c5_302 = arith.constant 5 : index
    %c0_303 = arith.constant 0 : index
    %373 = vector.load %arg45[%c5_302, %c0_303] : memref<8x64xf32, #tpu.memory_space<vmem>>, vector<1x64xf32>
    tpu.vector_store %arg45[%c5_302, %c0_303], %372 {strides = array<i32>} : memref<8x64xf32, #tpu.memory_space<vmem>>, vector<1x64xf32>,
    %374 = vector.extract_strided_slice %294 {offsets = [1, 384], sizes = [1, 64], strides = [1, 1]} : vector<2x512xf32> to vector<1x64xf32>
    %c6_304 = arith.constant 6 : index
    %c0_305 = arith.constant 0 : index
    %375 = vector.load %arg45[%c6_304, %c0_305] : memref<8x64xf32, #tpu.memory_space<vmem>>, vector<1x64xf32>
    tpu.vector_store %arg45[%c6_304, %c0_305], %374 {strides = array<i32>} : memref<8x64xf32, #tpu.memory_space<vmem>>, vector<1x64xf32>,
    %376 = vector.extract_strided_slice %294 {offsets = [1, 448], sizes = [1, 64], strides = [1, 1]} : vector<2x512xf32> to vector<1x64xf32>
    %c7_306 = arith.constant 7 : index
    %c0_307 = arith.constant 0 : index
    %377 = vector.load %arg45[%c7_306, %c0_307] : memref<8x64xf32, #tpu.memory_space<vmem>>, vector<1x64xf32>
    tpu.vector_store %arg45[%c7_306, %c0_307], %376 {strides = array<i32>} : memref<8x64xf32, #tpu.memory_space<vmem>>, vector<1x64xf32>,
    %c0_308 = arith.constant 0 : index
    %c0_309 = arith.constant 0 : index
    %378 = vector.load %arg45[%c0_308, %c0_309] : memref<8x64xf32, #tpu.memory_space<vmem>>, vector<8x64xf32>
    %cst_310 = arith.constant 0.000000e+00 : f32
    %379 = vector.broadcast %cst_310 : f32 to vector<16x32xf32>
    %c0_311 = arith.constant 0 : index
    %c0_312 = arith.constant 0 : index
    %380 = vector.load %arg28[%c0_311, %c0_312] : memref<48x8xf32, #tpu.memory_space<vmem>>, vector<16x8xf32>
    %c0_313 = arith.constant 0 : index
    %c0_314 = arith.constant 0 : index
    %381 = vector.load %arg29[%c0_313, %c0_314] : memref<192x32xf32, #tpu.memory_space<vmem>>, vector<64x32xf32>
    %cst_315 = arith.constant dense<0.000000e+00> : vector<16x64xf32>
    %382 = tpu.matmul %380, %378, %cst_315 {dimension_numbers = #tpu.dot_dimension_numbers<[1], [0], [0], [1], [0, 0, 1, 1], [], []>} : vector<16x8xf32>, vector<8x64xf32>, vector<16x64xf32> -> vector<16x64xf32>
    %cst_316 = arith.constant dense<0.000000e+00> : vector<16x32xf32>
    %383 = tpu.matmul %382, %381, %cst_316 {dimension_numbers = #tpu.dot_dimension_numbers<[1], [0], [0], [1], [0, 0, 1, 1], [], []>} : vector<16x64xf32>, vector<64x32xf32>, vector<16x32xf32> -> vector<16x32xf32>
    %384 = arith.addf %379, %383 : vector<16x32xf32>
    %c16_317 = arith.constant 16 : index
    %c0_318 = arith.constant 0 : index
    %385 = vector.load %arg28[%c16_317, %c0_318] : memref<48x8xf32, #tpu.memory_space<vmem>>, vector<16x8xf32>
    %c64_319 = arith.constant 64 : index
    %c0_320 = arith.constant 0 : index
    %386 = vector.load %arg29[%c64_319, %c0_320] : memref<192x32xf32, #tpu.memory_space<vmem>>, vector<64x32xf32>
    %cst_321 = arith.constant dense<0.000000e+00> : vector<16x64xf32>
    %387 = tpu.matmul %385, %378, %cst_321 {dimension_numbers = #tpu.dot_dimension_numbers<[1], [0], [0], [1], [0, 0, 1, 1], [], []>} : vector<16x8xf32>, vector<8x64xf32>, vector<16x64xf32> -> vector<16x64xf32>
    %cst_322 = arith.constant dense<0.000000e+00> : vector<16x32xf32>
    %388 = tpu.matmul %387, %386, %cst_322 {dimension_numbers = #tpu.dot_dimension_numbers<[1], [0], [0], [1], [0, 0, 1, 1], [], []>} : vector<16x64xf32>, vector<64x32xf32>, vector<16x32xf32> -> vector<16x32xf32>
    %389 = arith.addf %384, %388 : vector<16x32xf32>
    %c32_323 = arith.constant 32 : index
    %c0_324 = arith.constant 0 : index
    %390 = vector.load %arg28[%c32_323, %c0_324] : memref<48x8xf32, #tpu.memory_space<vmem>>, vector<16x8xf32>
    %c128_325 = arith.constant 128 : index
    %c0_326 = arith.constant 0 : index
    %391 = vector.load %arg29[%c128_325, %c0_326] : memref<192x32xf32, #tpu.memory_space<vmem>>, vector<64x32xf32>
    %cst_327 = arith.constant dense<0.000000e+00> : vector<16x64xf32>
    %392 = tpu.matmul %390, %378, %cst_327 {dimension_numbers = #tpu.dot_dimension_numbers<[1], [0], [0], [1], [0, 0, 1, 1], [], []>} : vector<16x8xf32>, vector<8x64xf32>, vector<16x64xf32> -> vector<16x64xf32>
    %cst_328 = arith.constant dense<0.000000e+00> : vector<16x32xf32>
    %393 = tpu.matmul %392, %391, %cst_328 {dimension_numbers = #tpu.dot_dimension_numbers<[1], [0], [0], [1], [0, 0, 1, 1], [], []>} : vector<16x64xf32>, vector<64x32xf32>, vector<16x32xf32> -> vector<16x32xf32>
    %394 = arith.addf %389, %393 : vector<16x32xf32>
    %c0_329 = arith.constant 0 : index
    %c0_330 = arith.constant 0 : index
    %395 = vector.load %arg30[%c0_329, %c0_330] : memref<1x32xf32, #tpu.memory_space<vmem>>, vector<1x32xf32>
    %396 = vector.broadcast %395 : vector<1x32xf32> to vector<16x32xf32>
    %397 = arith.addf %394, %396 : vector<16x32xf32>
    %cst_331 = arith.constant 0.000000e+00 : f32
    %398 = vector.broadcast %cst_331 : f32 to vector<16x32xf32>
    %399 = arith.cmpf oge, %397, %398 : vector<16x32xf32>
    %cst_332 = arith.constant 2.000000e-01 : f32
    %400 = vector.broadcast %cst_332 : f32 to vector<16x32xf32>
    %401 = arith.mulf %400, %397 : vector<16x32xf32>
    %402 = arith.select %399, %397, %401 : vector<16x32xi1>, vector<16x32xf32>
    %cst_333 = arith.constant 0.000000e+00 : f32
    %403 = vector.broadcast %cst_333 : f32 to vector<16x64xf32>
    %c0_334 = arith.constant 0 : index
    %c0_335 = arith.constant 0 : index
    %404 = vector.load %arg31[%c0_334, %c0_335] : memref<48x16xf32, #tpu.memory_space<vmem>>, vector<16x16xf32>
    %c0_336 = arith.constant 0 : index
    %c0_337 = arith.constant 0 : index
    %405 = vector.load %arg32[%c0_336, %c0_337] : memref<96x64xf32, #tpu.memory_space<vmem>>, vector<32x64xf32>
    %cst_338 = arith.constant dense<0.000000e+00> : vector<16x32xf32>
    %406 = tpu.matmul %404, %402, %cst_338 {dimension_numbers = #tpu.dot_dimension_numbers<[1], [0], [0], [1], [0, 0, 1, 1], [], []>} : vector<16x16xf32>, vector<16x32xf32>, vector<16x32xf32> -> vector<16x32xf32>
    %cst_339 = arith.constant dense<0.000000e+00> : vector<16x64xf32>
    %407 = tpu.matmul %406, %405, %cst_339 {dimension_numbers = #tpu.dot_dimension_numbers<[1], [0], [0], [1], [0, 0, 1, 1], [], []>} : vector<16x32xf32>, vector<32x64xf32>, vector<16x64xf32> -> vector<16x64xf32>
    %408 = arith.addf %403, %407 : vector<16x64xf32>
    %c16_340 = arith.constant 16 : index
    %c0_341 = arith.constant 0 : index
    %409 = vector.load %arg31[%c16_340, %c0_341] : memref<48x16xf32, #tpu.memory_space<vmem>>, vector<16x16xf32>
    %c32_342 = arith.constant 32 : index
    %c0_343 = arith.constant 0 : index
    %410 = vector.load %arg32[%c32_342, %c0_343] : memref<96x64xf32, #tpu.memory_space<vmem>>, vector<32x64xf32>
    %cst_344 = arith.constant dense<0.000000e+00> : vector<16x32xf32>
    %411 = tpu.matmul %409, %402, %cst_344 {dimension_numbers = #tpu.dot_dimension_numbers<[1], [0], [0], [1], [0, 0, 1, 1], [], []>} : vector<16x16xf32>, vector<16x32xf32>, vector<16x32xf32> -> vector<16x32xf32>
    %cst_345 = arith.constant dense<0.000000e+00> : vector<16x64xf32>
    %412 = tpu.matmul %411, %410, %cst_345 {dimension_numbers = #tpu.dot_dimension_numbers<[1], [0], [0], [1], [0, 0, 1, 1], [], []>} : vector<16x32xf32>, vector<32x64xf32>, vector<16x64xf32> -> vector<16x64xf32>
    %413 = arith.addf %408, %412 : vector<16x64xf32>
    %c32_346 = arith.constant 32 : index
    %c0_347 = arith.constant 0 : index
    %414 = vector.load %arg31[%c32_346, %c0_347] : memref<48x16xf32, #tpu.memory_space<vmem>>, vector<16x16xf32>
    %c64_348 = arith.constant 64 : index
    %c0_349 = arith.constant 0 : index
    %415 = vector.load %arg32[%c64_348, %c0_349] : memref<96x64xf32, #tpu.memory_space<vmem>>, vector<32x64xf32>
    %cst_350 = arith.constant dense<0.000000e+00> : vector<16x32xf32>
    %416 = tpu.matmul %414, %402, %cst_350 {dimension_numbers = #tpu.dot_dimension_numbers<[1], [0], [0], [1], [0, 0, 1, 1], [], []>} : vector<16x16xf32>, vector<16x32xf32>, vector<16x32xf32> -> vector<16x32xf32>
    %cst_351 = arith.constant dense<0.000000e+00> : vector<16x64xf32>
    %417 = tpu.matmul %416, %415, %cst_351 {dimension_numbers = #tpu.dot_dimension_numbers<[1], [0], [0], [1], [0, 0, 1, 1], [], []>} : vector<16x32xf32>, vector<32x64xf32>, vector<16x64xf32> -> vector<16x64xf32>
    %418 = arith.addf %413, %417 : vector<16x64xf32>
    %c0_352 = arith.constant 0 : index
    %c0_353 = arith.constant 0 : index
    %419 = vector.load %arg33[%c0_352, %c0_353] : memref<1x64xf32, #tpu.memory_space<vmem>>, vector<1x64xf32>
    %420 = vector.broadcast %419 : vector<1x64xf32> to vector<16x64xf32>
    %421 = arith.addf %418, %420 : vector<16x64xf32>
    %cst_354 = arith.constant 0.000000e+00 : f32
    %422 = vector.broadcast %cst_354 : f32 to vector<16x64xf32>
    %423 = arith.subf %422, %421 : vector<16x64xf32>
    %424 = math.exp %423 : vector<16x64xf32>
    %cst_355 = arith.constant 1.000000e+00 : f32
    %425 = vector.broadcast %cst_355 : f32 to vector<16x64xf32>
    %426 = arith.addf %425, %424 : vector<16x64xf32>
    %427 = tpu.reciprocal %426 {approx = true} : vector<16x64xf32> -> vector<16x64xf32>
    %c16_356 = arith.constant 16 : index
    %c0_357 = arith.constant 0 : index
    %428 = vector.load %arg42[%c16_356, %c0_357] : memref<32x64xf32, #tpu.memory_space<vmem>>, vector<16x64xf32>
    tpu.vector_store %arg42[%c16_356, %c0_357], %427 {strides = array<i32>} : memref<32x64xf32, #tpu.memory_space<vmem>>, vector<16x64xf32>,
    return
  }
  func.func @transform_0(%arg0: i32) -> (i32, i32) {
    %c0_i32 = arith.constant 0 : i32
    %c0_i32_0 = arith.constant 0 : i32
    %c0_i32_1 = arith.constant 0 : i32
    return %c0_i32, %c0_i32_0 : i32, i32
  }
  func.func @transform_1(%arg0: i32) -> (i32, i32) {
    %c0_i32 = arith.constant 0 : i32
    %c0_i32_0 = arith.constant 0 : i32
    %c0_i32_1 = arith.constant 0 : i32
    return %c0_i32, %c0_i32_0 : i32, i32
  }
  func.func @transform_2(%arg0: i32) -> (i32, i32) {
    %c0_i32 = arith.constant 0 : i32
    %c0_i32_0 = arith.constant 0 : i32
    %c0_i32_1 = arith.constant 0 : i32
    return %c0_i32, %c0_i32_0 : i32, i32
  }
  func.func @transform_3(%arg0: i32) -> (i32, i32) {
    %c0_i32 = arith.constant 0 : i32
    %c0_i32_0 = arith.constant 0 : i32
    %c0_i32_1 = arith.constant 0 : i32
    return %c0_i32, %c0_i32_0 : i32, i32
  }
  func.func @transform_4(%arg0: i32) -> (i32, i32) {
    %c0_i32 = arith.constant 0 : i32
    %c0_i32_0 = arith.constant 0 : i32
    %c0_i32_1 = arith.constant 0 : i32
    return %c0_i32, %c0_i32_0 : i32, i32
  }
  func.func @transform_5(%arg0: i32) -> (i32, i32) {
    %c0_i32 = arith.constant 0 : i32
    %c0_i32_0 = arith.constant 0 : i32
    %c0_i32_1 = arith.constant 0 : i32
    return %c0_i32, %c0_i32_0 : i32, i32
  }
  func.func @transform_6(%arg0: i32) -> (i32, i32) {
    %c0_i32 = arith.constant 0 : i32
    %c0_i32_0 = arith.constant 0 : i32
    %c0_i32_1 = arith.constant 0 : i32
    return %c0_i32, %c0_i32_0 : i32, i32
  }
  func.func @transform_7(%arg0: i32) -> (i32, i32) {
    %c0_i32 = arith.constant 0 : i32
    %c0_i32_0 = arith.constant 0 : i32
    %c0_i32_1 = arith.constant 0 : i32
    return %c0_i32, %c0_i32_0 : i32, i32
  }
  func.func @transform_8(%arg0: i32) -> (i32, i32) {
    %c0_i32 = arith.constant 0 : i32
    %c0_i32_0 = arith.constant 0 : i32
    %c0_i32_1 = arith.constant 0 : i32
    return %c0_i32, %c0_i32_0 : i32, i32
  }
  func.func @transform_9(%arg0: i32) -> (i32, i32) {
    %c0_i32 = arith.constant 0 : i32
    %c0_i32_0 = arith.constant 0 : i32
    %c0_i32_1 = arith.constant 0 : i32
    return %c0_i32, %c0_i32_0 : i32, i32
  }
  func.func @transform_10(%arg0: i32) -> (i32, i32) {
    %c0_i32 = arith.constant 0 : i32
    %c0_i32_0 = arith.constant 0 : i32
    %c0_i32_1 = arith.constant 0 : i32
    return %c0_i32, %c0_i32_0 : i32, i32
  }
  func.func @transform_11(%arg0: i32) -> (i32, i32) {
    %c0_i32 = arith.constant 0 : i32
    %c0_i32_0 = arith.constant 0 : i32
    %c0_i32_1 = arith.constant 0 : i32
    return %c0_i32, %c0_i32_0 : i32, i32
  }
  func.func @transform_12(%arg0: i32) -> (i32, i32) {
    %c0_i32 = arith.constant 0 : i32
    %c0_i32_0 = arith.constant 0 : i32
    %c0_i32_1 = arith.constant 0 : i32
    return %c0_i32, %c0_i32_0 : i32, i32
  }
  func.func @transform_13(%arg0: i32) -> (i32, i32) {
    %c0_i32 = arith.constant 0 : i32
    %c0_i32_0 = arith.constant 0 : i32
    %c0_i32_1 = arith.constant 0 : i32
    return %c0_i32, %c0_i32_0 : i32, i32
  }
  func.func @transform_14(%arg0: i32) -> (i32, i32) {
    %c0_i32 = arith.constant 0 : i32
    %c0_i32_0 = arith.constant 0 : i32
    %c0_i32_1 = arith.constant 0 : i32
    return %c0_i32, %c0_i32_0 : i32, i32
  }
  func.func @transform_15(%arg0: i32) -> (i32, i32) {
    %c0_i32 = arith.constant 0 : i32
    %c0_i32_0 = arith.constant 0 : i32
    %c0_i32_1 = arith.constant 0 : i32
    return %c0_i32, %c0_i32_0 : i32, i32
  }
  func.func @transform_16(%arg0: i32) -> (i32, i32) {
    %c0_i32 = arith.constant 0 : i32
    %c0_i32_0 = arith.constant 0 : i32
    %c0_i32_1 = arith.constant 0 : i32
    return %c0_i32, %c0_i32_0 : i32, i32
  }
  func.func @transform_17(%arg0: i32) -> (i32, i32) {
    %c0_i32 = arith.constant 0 : i32
    %c0_i32_0 = arith.constant 0 : i32
    %c0_i32_1 = arith.constant 0 : i32
    return %c0_i32, %c0_i32_0 : i32, i32
  }
  func.func @transform_18(%arg0: i32) -> (i32, i32) {
    %c0_i32 = arith.constant 0 : i32
    %c0_i32_0 = arith.constant 0 : i32
    %c0_i32_1 = arith.constant 0 : i32
    return %c0_i32, %c0_i32_0 : i32, i32
  }
  func.func @transform_19(%arg0: i32) -> (i32, i32) {
    %c0_i32 = arith.constant 0 : i32
    %c0_i32_0 = arith.constant 0 : i32
    %c0_i32_1 = arith.constant 0 : i32
    return %c0_i32, %c0_i32_0 : i32, i32
  }
  func.func @transform_20(%arg0: i32) -> (i32, i32) {
    %c0_i32 = arith.constant 0 : i32
    %c0_i32_0 = arith.constant 0 : i32
    %c0_i32_1 = arith.constant 0 : i32
    return %c0_i32, %c0_i32_0 : i32, i32
  }
  func.func @transform_21(%arg0: i32) -> (i32, i32) {
    %c0_i32 = arith.constant 0 : i32
    %c0_i32_0 = arith.constant 0 : i32
    %c0_i32_1 = arith.constant 0 : i32
    return %c0_i32, %c0_i32_0 : i32, i32
  }
  func.func @transform_22(%arg0: i32) -> (i32, i32) {
    %c0_i32 = arith.constant 0 : i32
    %c0_i32_0 = arith.constant 0 : i32
    %c0_i32_1 = arith.constant 0 : i32
    return %c0_i32, %c0_i32_0 : i32, i32
  }
  func.func @transform_23(%arg0: i32) -> (i32, i32) {
    %c0_i32 = arith.constant 0 : i32
    %c0_i32_0 = arith.constant 0 : i32
    %c0_i32_1 = arith.constant 0 : i32
    return %c0_i32, %c0_i32_0 : i32, i32
  }
  func.func @transform_24(%arg0: i32) -> (i32, i32) {
    %c0_i32 = arith.constant 0 : i32
    %c0_i32_0 = arith.constant 0 : i32
    %c0_i32_1 = arith.constant 0 : i32
    return %c0_i32, %c0_i32_0 : i32, i32
  }
  func.func @transform_25(%arg0: i32) -> (i32, i32) {
    %c0_i32 = arith.constant 0 : i32
    %c0_i32_0 = arith.constant 0 : i32
    %c0_i32_1 = arith.constant 0 : i32
    return %c0_i32, %c0_i32_0 : i32, i32
  }
  func.func @transform_26(%arg0: i32) -> (i32, i32) {
    %c0_i32 = arith.constant 0 : i32
    %c0_i32_0 = arith.constant 0 : i32
    %c0_i32_1 = arith.constant 0 : i32
    return %c0_i32, %c0_i32_0 : i32, i32
  }
  func.func @transform_27(%arg0: i32) -> (i32, i32) {
    %c0_i32 = arith.constant 0 : i32
    %c0_i32_0 = arith.constant 0 : i32
    %c0_i32_1 = arith.constant 0 : i32
    return %c0_i32, %c0_i32_0 : i32, i32
  }
  func.func @transform_28(%arg0: i32) -> (i32, i32) {
    %c0_i32 = arith.constant 0 : i32
    %c0_i32_0 = arith.constant 0 : i32
    %c0_i32_1 = arith.constant 0 : i32
    return %c0_i32, %c0_i32_0 : i32, i32
  }
  func.func @transform_29(%arg0: i32) -> (i32, i32) {
    %c0_i32 = arith.constant 0 : i32
    %c0_i32_0 = arith.constant 0 : i32
    %c0_i32_1 = arith.constant 0 : i32
    return %c0_i32, %c0_i32_0 : i32, i32
  }
  func.func @transform_30(%arg0: i32) -> (i32, i32) {
    %c0_i32 = arith.constant 0 : i32
    %c0_i32_0 = arith.constant 0 : i32
    %c0_i32_1 = arith.constant 0 : i32
    return %c0_i32, %c0_i32_0 : i32, i32
  }
  func.func @transform_31(%arg0: i32) -> (i32, i32) {
    %c0_i32 = arith.constant 0 : i32
    %c0_i32_0 = arith.constant 0 : i32
    %c0_i32_1 = arith.constant 0 : i32
    return %c0_i32, %c0_i32_0 : i32, i32
  }
  func.func @transform_32(%arg0: i32) -> (i32, i32) {
    %c0_i32 = arith.constant 0 : i32
    %c0_i32_0 = arith.constant 0 : i32
    %c0_i32_1 = arith.constant 0 : i32
    return %c0_i32, %c0_i32_0 : i32, i32
  }
  func.func @transform_33(%arg0: i32) -> (i32, i32) {
    %c0_i32 = arith.constant 0 : i32
    %c0_i32_0 = arith.constant 0 : i32
    %c0_i32_1 = arith.constant 0 : i32
    return %c0_i32, %c0_i32_0 : i32, i32
  }
  func.func @transform_34(%arg0: i32) -> (i32, i32) {
    %c0_i32 = arith.constant 0 : i32
    %c0_i32_0 = arith.constant 0 : i32
    %c0_i32_1 = arith.constant 0 : i32
    return %c0_i32, %c0_i32_0 : i32, i32
  }
  func.func @transform_35(%arg0: i32) -> (i32, i32) {
    %c0_i32 = arith.constant 0 : i32
    %c0_i32_0 = arith.constant 0 : i32
    %c0_i32_1 = arith.constant 0 : i32
    return %c0_i32, %c0_i32_0 : i32, i32
  }
  func.func @transform_36(%arg0: i32) -> (i32, i32) {
    %c0_i32 = arith.constant 0 : i32
    %c0_i32_0 = arith.constant 0 : i32
    %c0_i32_1 = arith.constant 0 : i32
    return %c0_i32, %c0_i32_0 : i32, i32
  }
  func.func @transform_37(%arg0: i32) -> (i32, i32) {
    %c0_i32 = arith.constant 0 : i32
    %c0_i32_0 = arith.constant 0 : i32
    %c0_i32_1 = arith.constant 0 : i32
    return %c0_i32, %c0_i32_0 : i32, i32
  }
  func.func @transform_38(%arg0: i32) -> (i32, i32) {
    %c0_i32 = arith.constant 0 : i32
    %c0_i32_0 = arith.constant 0 : i32
    %c0_i32_1 = arith.constant 0 : i32
    return %c0_i32, %c0_i32_0 : i32, i32
  }
  func.func @transform_39(%arg0: i32) -> (i32, i32) {
    %c0_i32 = arith.constant 0 : i32
    %c0_i32_0 = arith.constant 0 : i32
    %c0_i32_1 = arith.constant 0 : i32
    return %c0_i32, %c0_i32_0 : i32, i32
  }
  func.func @transform_40(%arg0: i32) -> (i32, i32) {
    %c0_i32 = arith.constant 0 : i32
    %c0_i32_0 = arith.constant 0 : i32
    %c0_i32_1 = arith.constant 0 : i32
    return %c0_i32, %c0_i32_0 : i32, i32
  }
  func.func @transform_41(%arg0: i32) -> (i32, i32) {
    %c0_i32 = arith.constant 0 : i32
    %c0_i32_0 = arith.constant 0 : i32
    %c0_i32_1 = arith.constant 0 : i32
    return %c0_i32, %c0_i32_0 : i32, i32
  }
  func.func @transform_42(%arg0: i32) -> (i32, i32) {
    %c0_i32 = arith.constant 0 : i32
    %c0_i32_0 = arith.constant 0 : i32
    %c0_i32_1 = arith.constant 0 : i32
    return %c0_i32, %c0_i32_0 : i32, i32
  }
}

</mosaic_0001>

<bundles_post_ra>
// kernel: paae_forward.1
= control target key start
LH: loop header
LB: loop body
LE: loop exit
PB: predicated region body
PF: predicated region fallthrough
CT: control target
= control target key end

     0   :  { %s8576_s6 = smov 1   ;;  %s8577_s10 = smov 2   ;;  %vm187_vm0 = vcmask 130048   ;;  %vm360_vm1 = vcmask 523264   ;;  %v10259_v40 = vmov 0.0   ;;  %vm8579_vm2 = vmmov 0   ;;  %s10251_s0 = inlined_call_operand.smem [shape: u32[43], index: -1, kind: input, shape index: {}] }
   0x1   :  { %s8629_s5 = sld [smem:[%s10251_s0]]   ;;  %s8580_s14 = smov 5   ;;  %vm868_vm5 = vcmask 261120   ;;  %vm1835_vm7 = vcmask 516096  }
   0x2   :  { %s8634_s9 = sld [smem:[%s10251_s0 + %s8576_s6]]   ;;  %s8581_s18 = smov 3  }
   0x3   :  { %s8639_s13 = sld [smem:[%s10251_s0 + %s8577_s10]]   ;;  %s8582_s22 = smov 4  }
   0x4   :  { %s8824_s17 = sld [smem:[%s10251_s0 + %s8580_s14]]   ;;  %s8583_s26 = smov 7  }
   0x5   :  { %s6914_s21 = sld [smem:[%s10251_s0 + %s8581_s18]]   ;;  %s8584_s30 = smov 6  }
   0x6   :  { %s8849_s25 = sld [smem:[%s10251_s0 + %s8582_s22]]   ;;  %s8585_s4 = smov 8  }
   0x7   :  { %v8642_v0 = vld [vmem:[%s8629_s5 + $0x8] sm:$0xff]  ;;  %v8645_v1 = vld [vmem:[%s8629_s5] sm:$0xff]  ;;  %s8934_s29 = sld [smem:[%s10251_s0 + %s8583_s26]]   ;;  %s8586_s8 = smov 9  }
   0x8   :  { %7561 = vmatprep.subr.mxu1 %v8642_v0  ;;  %v8649_v2 = vld [vmem:[%s8634_s9] sm:$0xff]  ;;  %v8655_v3 = vld [vmem:[%s8634_s9 + $0x8] sm:$0xff]  ;;  %v8659_v4 = vld [vmem:[%s8634_s9 + $0x10] sm:$0xff]  ;;  %s6917_s3 = sld [smem:[%s10251_s0 + %s8584_s30]]   ;;  %s8587_s12 = smov 11  }
   0x9   :  { %7562 = vmatpush3.msra.mxu1 %v8642_v0  ;;  %7565 = vmatprep.mubr.msk.f32.mxu1 %vm187_vm0, %v8649_v2  ;;  %v8662_v5 = vld [vmem:[%s8639_s13 + $0x78] sm:$0xff]  ;;  %v8670_v6 = vld [vmem:[%s8639_s13 + $0x70] sm:$0xff]  ;;  %v8689_v10 = vld [vmem:[%s8639_s13 + $0x68] sm:$0xff]  ;;  %s9352_s7 = sld [smem:[%s10251_s0 + %s8585_s4]]   ;;  %s8588_s16 = smov 10  }
   0xa   :  { %7563 = vmatprep.subr.mxu1 %v8645_v1  ;;  %7575 = vmatprep.subr.mxu0 %v8662_v5  ;;  %v8676_v7 = vld [vmem:[%s8634_s9 + $0x18] sm:$0xff]  ;;  %v8685_v9 = vld [vmem:[%s8639_s13 + $0x30] sm:$0xff]  ;;  %v8696_v11 = vld [vmem:[%s8639_s13 + $0x28] sm:$0xff]  ;;  %s6920_s11 = sld [smem:[%s10251_s0 + %s8586_s8]]   ;;  %s8589_s20 = smov 13  }
   0xb   :  { %7564 = vmatpush3.msra.mxu1 %v8645_v1  ;;  %v8679_v8 = vld [vmem:[%s8639_s13 + $0x38] sm:$0xff]  ;;  %7576 = vmatpush3.msra.mxu0 %v8662_v5  ;;  %v8700_v12 = vld [vmem:[%s8639_s13 + $0x60] sm:$0xff]  ;;  %v8719_v15 = vld [vmem:[%s8639_s13 + $0x10] sm:$0xff]  ;;  %s9620_s15 = sld [smem:[%s10251_s0 + %s8587_s12]]   ;;  %s8590_s24 = smov 15  }
   0xc   :  { %7566 = vmatmul.mubr.msk.f32.vlgmr.msra.gmra.mxu1 %vm187_vm0, %v8655_v3  ;;  %7568 = vmatprep.subr.mxu1 %v8642_v0  ;;  %v8706_v13 = vld [vmem:[%s8639_s13 + $0x20] sm:$0xff]  ;;  %v8713_v14 = vld [vmem:[%s8639_s13 + $0x18] sm:$0xff]  ;;  %v8729_v17 = vld [vmem:[%s8639_s13 + $0x8] sm:$0xff]  ;;  %s6921_s19 = sld [smem:[%s10251_s0 + %s8588_s16]]   ;;  %s8591_s28 = smov 12  }
   0xd   :  { %7569 = vmatpush3.msra.mxu1 %v8642_v0  ;;  %7572 = vmatprep.mubr.msk.f32.mxu1 %vm187_vm0, %v8659_v4  ;;  %v8726_v16 = vld [vmem:[%s8639_s13 + $0x58] sm:$0xff]  ;;  %v8736_v18 = vld [vmem:[%s8639_s13 + $0x50] sm:$0xff]  ;;  %v8739_v19 = vld [vmem:[%s8639_s13] sm:$0xff]  ;;  %s6924_s23 = sld [smem:[%s10251_s0 + %s8589_s20]]   ;;  %s8592_s2 = smov 14  }
   0xe   :  { %7570 = vmatprep.subr.mxu1 %v8645_v1  ;;  %7577 = vmatprep.subr.mxu0 %v8670_v6  ;;  %v8746_v20 = vld [vmem:[%s8639_s13 + $0x48] sm:$0xff]  ;;  %v8751_v21 = vld [vmem:[%s8639_s13 + $0x40] sm:$0xff]  ;;  %v8757_v22 = vld [vmem:[%s8639_s13 + $0xb8] sm:$0xff]  ;;  %s6926_s27 = sld [smem:[%s10251_s0 + %s8590_s24]]   ;;  %s8593_s6 = smov 33  }
   0xf   :  { %7571 = vmatpush3.msra.mxu1 %v8645_v1  ;;  %7578 = vmatpush3.msra.mxu0 %v8670_v6  ;;  %v8762_v25 = vld [vmem:[%s8639_s13 + $0xb0] sm:$0xff]  ;;  %v8767_v28 = vld [vmem:[%s8634_s9 + $0x20] sm:$0xff]  ;;  %v8777_v29 = vld [vmem:[%s8634_s9 + $0x28] sm:$0xff]  ;;  %s6923_s1 = sld [smem:[%s10251_s0 + %s8591_s28]]   ;;  %s8594_s10 = smov 35  }
  0x10   :  { %7573 = vmatmul.mubr.msk.f32.vlgmr.msra.gmra.mxu1 %vm187_vm0, %v8676_v7  ;;  %7594 = vmatprep.subr.mxu1 %v8679_v8  ;;  %v8784_v30 = vld [vmem:[%s8639_s13 + $0xa8] sm:$0xff]  ;;  %v8789_v31 = vld [vmem:[%s8639_s13 + $0xa0] sm:$0xff]  ;;  %v8794_v32 = vld [vmem:[%s8639_s13 + $0x98] sm:$0xff]  ;;  %s6944_s9 = sld [smem:[%s10251_s0 + %s8593_s6]]   ;;  %s8595_s14 = smov 16  }
  0x11   :  { %7595 = vmatpush3.msra.mxu1 %v8679_v8  ;;  %7579 = vmatprep.subr.mxu0 %v8689_v10  ;;  %v8799_v33 = vld [vmem:[%s8639_s13 + $0x90] sm:$0xff]  ;;  %v8804_v34 = vld [vmem:[%s8639_s13 + $0x88] sm:$0xff]  ;;  %v8809_v35 = vld [vmem:[%s8639_s13 + $0x80] sm:$0xff]  ;;  %s6946_s13 = sld [smem:[%s10251_s0 + %s8594_s10]]   ;;  %s8596_s18 = smov 34  }
  0x12   :  { %7596 = vmatprep.subr.mxu1 %v8685_v9  ;;  %7580 = vmatpush3.msra.mxu0 %v8689_v10  ;;  %v8827_v41 = vld [vmem:[%s8824_s17 + $0x18] sm:$0xff]  ;;  %v8830_v42 = vld [vmem:[%s8824_s17 + $0x10] sm:$0xff]  ;;  %v8835_v43 = vld [vmem:[%s8824_s17 + $0x8] sm:$0xff]  ;;  %s8597_s22 = smov 37   ;;  %s8598_s26 = smov 36  }
  0x13   :  { %7597 = vmatpush3.msra.mxu1 %v8685_v9  ;;  %7581 = vmatprep.subr.mxu0 %v8700_v12  ;;  %v8844_v48 = vld [vmem:[%s6914_s21] ss:$0 sm:$0xff]  ;;  %v8863_v60 = vld [vmem:[%s8849_s25 + $0x8] sm:$0xff]  ;;  %v8867_v61 = vld [vmem:[%s8824_s17 + $0x38] sm:$0xff]  ;;  %s6945_s21 = sld [smem:[%s10251_s0 + %s8596_s18]]   ;;  %s8599_s30 = smov 17  }
  0x14   :  { %7598 = vmatprep.subr.mxu1 %v8696_v11  ;;  %7582 = vmatpush3.msra.mxu0 %v8700_v12  ;;  %v8854_v58 = vld [vmem:[%s8849_s25] sm:$0xff]  ;;  %v8873_v62 = vld [vmem:[%s8824_s17 + $0x30] sm:$0xff]  ;;  %s8600_s4 = smov 39   ;;  %s8601_s8 = smov 40  }
  0x15   :  { %7599 = vmatpush3.msra.mxu1 %v8696_v11  ;;  %7583 = vmatprep.subr.mxu0 %v8726_v16  ;;  %v8882_v63 = vld [vmem:[%s8824_s17] sm:$0xff]  ;;  %s8602_s12 = smov 38   ;;  %s8603_s16 = smov 19  }
  0x16   :  { %7600 = vmatprep.subr.mxu1 %v8706_v13  ;;  %7584 = vmatpush3.msra.mxu0 %v8726_v16  ;;  %s8604_s20 = smov 18   ;;  %s8605_s24 = smov 21  }
  0x17   :  { %7601 = vmatpush3.msra.mxu1 %v8706_v13  ;;  %7585 = vmatprep.subr.mxu0 %v8736_v18  ;;  %s8606_s28 = smov 23   ;;  %s8608_s6 = smov 42  }
  0x18   :  { %7602 = vmatprep.subr.mxu1 %v8713_v14  ;;  %7586 = vmatpush3.msra.mxu0 %v8736_v18  ;;  %s8609_s10 = smov 25   ;;  %s8611_s18 = smov 24  }
  0x19   :  { %7603 = vmatpush3.msra.mxu1 %v8713_v14  ;;  %7587 = vmatprep.subr.mxu0 %v8746_v20 }
  0x1a   :  { %7604 = vmatprep.subr.mxu1 %v8719_v15  ;;  %7588 = vmatpush3.msra.mxu0 %v8746_v20 }
  0x1b   :  { %7605 = vmatpush3.msra.mxu1 %v8719_v15  ;;  %7589 = vmatprep.subr.mxu0 %v8751_v21 }
  0x1c   :  { %7606 = vmatprep.subr.mxu1 %v8729_v17  ;;  %7590 = vmatpush3.msra.mxu0 %v8751_v21 }
  0x1d   :  { %7607 = vmatpush3.msra.mxu1 %v8729_v17  ;;  %7613 = vmatprep.subr.mxu0 %v8642_v0 }
  0x1e   :  { %7608 = vmatprep.subr.mxu1 %v8739_v19 }
  0x1f   :  { %7609 = vmatpush3.msra.mxu1 %v8739_v19 }
  0x20   :  { %7620 = vmatprep.subr.mxu1 %v8757_v22 }
  0xcc   :  { %v7567_v23 = vpop.f32.mrf.mxu1 }
  0xce   :  { %v260_v24 = vpop.f32.mrf.mxu1 }
  0xcf   :  { %7610 = vmatprep.mubr.msk.f32.mxu1 %vm360_vm1, %v260_v24 }
  0xd0   :  { %v7574_v26 = vpop.f32.mrf.mxu1  ;;  %7611 = vmatmul.mubr.msk.f32.vlgmr.msra.gmra.mxu1 %vm360_vm1, %v7567_v23 }
  0xd1   :  { %7621 = vmatpush3.msra.mxu1 %v8757_v22 }
  0xd2   :  { %v351_v27 = vpop.f32.mrf.mxu1  ;;  %7622 = vmatprep.subr.mxu1 %v8762_v25 }
  0xd3   :  { %7591 = vmatprep.mubr.msk.f32.mxu0 %vm360_vm1, %v351_v27  ;;  %7623 = vmatpush3.msra.mxu1 %v8762_v25 }
  0xd4   :  { %7592 = vmatmul.mubr.msk.f32.vlgmr.msra.gmra.mxu0 %vm360_vm1, %v7574_v26  ;;  %7624 = vmatprep.subr.mxu1 %v8784_v30 }
  0xd5   :  { %7614 = vmatpush3.msra.mxu0 %v8642_v0  ;;  %7617 = vmatprep.mubr.msk.f32.mxu0 %vm187_vm0, %v8767_v28  ;;  %v8886_v0 = vld [vmem:[%s8824_s17 + $0x28] sm:$0xff] }
  0xd6   :  { %7615 = vmatprep.subr.mxu0 %v8645_v1  ;;  %7625 = vmatpush3.msra.mxu1 %v8784_v30 }
  0xd7   :  { %7616 = vmatpush3.msra.mxu0 %v8645_v1  ;;  %7626 = vmatprep.subr.mxu1 %v8789_v31  ;;  %v8892_v1 = vld [vmem:[%s8824_s17 + $0x20] sm:$0xff] }
  0xd8   :  { %7618 = vmatmul.mubr.msk.f32.vlgmr.msra.gmra.mxu0 %vm187_vm0, %v8777_v29  ;;  %7627 = vmatpush3.msra.mxu1 %v8789_v31 }
  0xd9   :  { %7628 = vmatprep.subr.mxu1 %v8794_v32  ;;  %7639 = vmatprep.subr.mxu0 %v10259_v40 }
  0xda   :  { %7629 = vmatpush3.msra.mxu1 %v8794_v32  ;;  %7643 = vmatprep.mubr.msk.f32.mxu0 %vm8579_vm2, %v10259_v40 }
  0xdb   :  { %7630 = vmatprep.subr.mxu1 %v8799_v33 }
  0xdc   :  { %7631 = vmatpush3.msra.mxu1 %v8799_v33 }
  0xdd   :  { %7632 = vmatprep.subr.mxu1 %v8804_v34 }
  0xde   :  { %7633 = vmatpush3.msra.mxu1 %v8804_v34 }
  0xdf   :  { %7634 = vmatprep.subr.mxu1 %v8809_v35 }
  0xe0   :  { %7635 = vmatpush3.msra.mxu1 %v8809_v35 }
  0xe1   :  { %7664 = vmatprep.subr.mxu1 %v10259_v40 }
 0x190   :  { %v7612_v44 = vpop.f32.mrf.mxu1 }
 0x192   :  { %v514_v45 = vpop.f32.mrf.mxu1 }
 0x194   :  { %v7593_v36 = vpop.f32.mrf.mxu0 }
 0x195   :  { %v520_v46 = vadd.f32 %v7612_v44, %v7593_v36  ;;  %v8903_v36 = vld [vmem:[%s8849_s25 + $0x10] sm:$0xff]  ;;  %v8927_v44 = vld [vmem:[%s8824_s17 + $0x40] sm:$0xff]  ;;  %s6948_s25 = sld [smem:[%s10251_s0 + %s8597_s22]]   ;;  %s8612_s22 = smov 26  }
 0x196   :  { %v433_v37 = vpop.f32.mrf.mxu0 }
 0x197   :  { %v515_v49 = vadd.f32 %v514_v45, %v433_v37  ;;  %v8912_v37 = vld [vmem:[%s8824_s17 + $0x58] sm:$0xff] }
 0x198   :  { %v7619_v38 = vpop.f32.mrf.mxu0  ;;  %v8937_v45 = vld [vmem:[%s8934_s29 + $0x38] sm:$0xff] }
 0x19a   :  { %v605_v39 = vpop.f32.mrf.mxu0 }
 0x19b   :  { %7636 = vmatprep.mubr.msk.f32.mxu1 %vm360_vm1, %v605_v39  ;;  %v8922_v39 = vld [vmem:[%s8824_s17 + $0x48] sm:$0xff] }
 0x19c   :  { %7637 = vmatmul.mubr.msk.f32.vlgmr.msra.gmra.mxu1 %vm360_vm1, %v7619_v38  ;;  %v8917_v38 = vld [vmem:[%s8824_s17 + $0x50] sm:$0xff]  ;;  %s6927_s17 = sld [smem:[%s10251_s0 + %s8595_s14]]   ;;  %s8610_s14 = smov 22  }
 0x19d   :  { %7672 = vmatprep.mubr.msk.f32.mxu1 %vm8579_vm2, %v10259_v40  ;;  %7665 = vmatpush3.msra.mxu1 %v8827_v41 }
 0x19e   :  { %7666 = vmatprep.subr.mxu1 %v10259_v40 }
 0x19f   :  { %7667 = vmatpush3.msra.mxu1 %v8830_v42 }
 0x1a0   :  { %7668 = vmatprep.subr.mxu1 %v10259_v40 }
 0x1a1   :  { %7669 = vmatpush3.msra.mxu1 %v8835_v43 }
 0x1a2   :  { %7670 = vmatprep.subr.mxu1 %v10259_v40 }
 0x1a3   :  { %7671 = vmatpush3.msra.mxu1 %v8882_v63 }
 0x1a4   :  { %7693 = vmatprep.subr.mxu1 %v10259_v40 }
 0x25c   :  { %v7638_v47 = vpop.f32.mrf.mxu1 }
 0x25d   :  { %v696_v50 = vadd.f32 %v7638_v47, %v520_v46  ;;  %v8940_v46 = vld [vmem:[%s8934_s29 + $0x30] sm:$0xff]  ;;  %v8945_v47 = vld [vmem:[%s8934_s29 + $0x28] sm:$0xff] }
 0x25e   :  { %v686_v51 = vpop.f32.mrf.mxu1 }
 0x25f   :  { %v705_v52 = vadd.f32 %v8844_v48, %v696_v50  ;;  %v695_v53 = vadd.f32 %v686_v51, %v515_v49  ;;  %v8950_v49 = vld [vmem:[%s8934_s29 + $0x20] sm:$0xff] }
 0x261   :  { %v709_v54 = vmul.f32 0.2, %v705_v52  ;;  %v704_v55 = vadd.f32 %v8844_v48, %v695_v53  ;;  %vm707_vm3 = vcmp.ge.f32.partialorder %v705_v52, 0.0 }
 0x263   :  { %v708_v56 = vmul.f32 0.2, %v704_v55  ;;  %v711_v57 = vsel %vm707_vm3, %v705_v52, %v709_v54  ;;  %vm706_vm4 = vcmp.ge.f32.partialorder %v704_v55, 0.0 }
 0x264   :  { %7640 = vmatpush3.msra.mxu0 %v711_v57 }
 0x265   :  { %7641 = vmatprep.subr.mxu0 %v10259_v40  ;;  %v710_v59 = vsel %vm706_vm4, %v704_v55, %v708_v56  ;;  %v8957_v55 = vld [vmem:[%s8934_s29 + $0x78] sm:$0xff] }
 0x266   :  { %7642 = vmatpush3.msra.mxu0 %v710_v59  ;;  %10307 = vst [vmem:[#allocation5_spill] sm:$0xff] %v8957_v55 }
 0x267   :  { %7644 = vmatmul.mubr.msk.f32.vlgmr.msra.gmra.mxu0 %vm187_vm0, %v8854_v58  ;;  %7646 = vmatprep.subr.mxu0 %v10259_v40 }
 0x268   :  { %7647 = vmatpush3.msra.mxu0 %v711_v57  ;;  %7650 = vmatprep.mubr.msk.f32.mxu0 %vm8579_vm2, %v10259_v40 }
 0x269   :  { %7648 = vmatprep.subr.mxu0 %v10259_v40 }
 0x26a   :  { %7649 = vmatpush3.msra.mxu0 %v710_v59 }
 0x26b   :  { %7651 = vmatmul.mubr.msk.f32.vlgmr.msra.gmra.mxu0 %vm187_vm0, %v8863_v60  ;;  %7653 = vmatprep.subr.mxu0 %v10259_v40 }
 0x26c   :  { %7654 = vmatpush3.msra.mxu0 %v8867_v61  ;;  %7661 = vmatprep.mubr.msk.f32.mxu0 %vm8579_vm2, %v10259_v40 }
 0x26d   :  { %7655 = vmatprep.subr.mxu0 %v10259_v40 }
 0x26e   :  { %7656 = vmatpush3.msra.mxu0 %v8873_v62 }
 0x26f   :  { %7657 = vmatprep.subr.mxu0 %v10259_v40 }
 0x270   :  { %7658 = vmatpush3.msra.mxu0 %v8886_v0 }
 0x271   :  { %7659 = vmatprep.subr.mxu0 %v10259_v40 }
 0x272   :  { %7660 = vmatpush3.msra.mxu0 %v8892_v1 }
 0x273   :  { %7675 = vmatprep.subr.mxu0 %v10259_v40 }
 0x327   :  { %v786_v23 = vpop.f32.mrf.mxu0 }
 0x328   :  { %7673 = vmatmul.mubr.msk.f32.vlgmr.msra.gmra.mxu1 %vm868_vm5, %v786_v23  ;;  %v8968_v23 = vld [vmem:[%s8934_s29 + $0x68] sm:$0xff] }
 0x329   :  { %v7645_v24 = vpop.f32.mrf.mxu0  ;;  %7709 = vmatprep.mubr.msk.f32.mxu1 %vm8579_vm2, %v10259_v40  ;;  %7694 = vmatpush3.msra.mxu1 %v8937_v45  ;;  %10309 = vst [vmem:[#allocation7_spill] sm:$0xff] %v8968_v23 }
 0x32a   :  { %7695 = vmatprep.subr.mxu1 %v10259_v40  ;;  %v8975_v24 = vld [vmem:[%s8934_s29 + $0x18] sm:$0xff] }
 0x32b   :  { %v864_v26 = vpop.f32.mrf.mxu0  ;;  %7696 = vmatpush3.msra.mxu1 %v8940_v46 }
 0x32c   :  { %7662 = vmatmul.mubr.msk.f32.vlgmr.msra.gmra.mxu0 %vm868_vm5, %v864_v26  ;;  %7697 = vmatprep.subr.mxu1 %v10259_v40  ;;  %v8978_v26 = vld [vmem:[%s8934_s29 + $0x60] sm:$0xff] }
 0x32d   :  { %7676 = vmatpush3.msra.mxu0 %v711_v57  ;;  %v7652_v27 = vpop.f32.mrf.mxu0  ;;  %7679 = vmatprep.mubr.msk.f32.mxu0 %vm8579_vm2, %v10259_v40  ;;  %v8961_v57 = vld [vmem:[%s8934_s29 + $0x70] sm:$0xff]  ;;  %10310 = vst [vmem:[#allocation8_spill] sm:$0xff] %v8978_v26 }
 0x32e   :  { %7677 = vmatprep.subr.mxu0 %v10259_v40  ;;  %7698 = vmatpush3.msra.mxu1 %v8945_v47  ;;  %10308 = vst [vmem:[#allocation6_spill] sm:$0xff] %v8961_v57  ;;  %v8985_v27 = vld [vmem:[%s8934_s29 + $0x10] sm:$0xff] }
 0x32f   :  { %7678 = vmatpush3.msra.mxu0 %v710_v59  ;;  %7699 = vmatprep.subr.mxu1 %v10259_v40 }
 0x330   :  { %7680 = vmatmul.mubr.msk.f32.vlgmr.msra.gmra.mxu0 %vm187_vm0, %v8903_v36  ;;  %7682 = vmatprep.subr.mxu0 %v10259_v40 }
 0x331   :  { %7690 = vmatprep.mubr.msk.f32.mxu0 %vm8579_vm2, %v10259_v40  ;;  %7683 = vmatpush3.msra.mxu0 %v8912_v37 }
 0x332   :  { %7684 = vmatprep.subr.mxu0 %v10259_v40  ;;  %7700 = vmatpush3.msra.mxu1 %v8950_v49 }
 0x333   :  { %7685 = vmatpush3.msra.mxu0 %v8917_v38  ;;  %7701 = vmatprep.subr.mxu1 %v10259_v40 }
 0x334   :  { %7686 = vmatprep.subr.mxu0 %v10259_v40  ;;  %7702 = vmatpush3.msra.mxu1 %v8975_v24 }
 0x335   :  { %7687 = vmatpush3.msra.mxu0 %v8922_v39  ;;  %7703 = vmatprep.subr.mxu1 %v10259_v40 }
 0x336   :  { %7688 = vmatprep.subr.mxu0 %v10259_v40  ;;  %7704 = vmatpush3.msra.mxu1 %v8985_v27 }
 0x337   :  { %7689 = vmatpush3.msra.mxu0 %v8927_v44  ;;  %7705 = vmatprep.subr.mxu1 %v10259_v40 }
 0x338   :  { %7712 = vmatprep.subr.mxu0 %v10259_v40 }
 0x3e8   :  { %v1011_v50 = vpop.f32.mrf.mxu1 }
 0x3ea   :  { %v7674_v51 = vpop.f32.mrf.mxu1 }
 0x3eb   :  { %v8995_v51 = vld [vmem:[%s8934_s29 + $0x8] sm:$0xff] }
 0x3ec   :  { %v938_v52 = vpop.f32.mrf.mxu0  ;;  %7706 = vmatpush3.msra.mxu1 %v8995_v51 }
 0x3ed   :  { %v1012_v53 = vadd.f32 %v1011_v50, %v938_v52  ;;  %v8988_v50 = vld [vmem:[%s8934_s29 + $0x58] sm:$0xff]  ;;  %v8998_v52 = vld [vmem:[%s8934_s29 + $0x50] sm:$0xff]  ;;  %7707 = vmatprep.subr.mxu1 %v10259_v40 }
 0x3ee   :  { %v7663_v54 = vpop.f32.mrf.mxu0  ;;  %10311 = vst [vmem:[#allocation9_spill] sm:$0xff] %v8988_v50  ;;  %10312 = vst [vmem:[#allocation10_spill] sm:$0xff] %v8998_v52 }
 0x3ef   :  { %v9005_v54 = vld [vmem:[%s8934_s29] sm:$0xff] }
 0x3f0   :  { %v1089_v56 = vpop.f32.mrf.mxu0  ;;  %10313 = vst [vmem:[#allocation11_spill] sm:$0xff] %v9005_v54  ;;  %7708 = vmatpush3.msra.mxu1 %v9005_v54  ;;  %v9034_v54 = vld [vmem:[%s8934_s29 + $0xb0] sm:$0xff] }
 0x3f1   :  { %7691 = vmatmul.mubr.msk.f32.vlgmr.msra.gmra.mxu0 %vm868_vm5, %v1089_v56  ;;  %v9008_v56 = vld [vmem:[%s8934_s29 + $0x48] sm:$0xff]  ;;  %7731 = vmatprep.subr.mxu1 %v10259_v40  ;;  %10316 = vst [vmem:[#allocation14_spill] sm:$0xff] %v9034_v54 }
 0x3f2   :  { %v7681_v59 = vpop.f32.mrf.mxu0  ;;  %7713 = vmatpush3.msra.mxu0 %v8957_v55  ;;  %7728 = vmatprep.mubr.msk.f32.mxu0 %vm8579_vm2, %v10259_v40  ;;  %10314 = vst [vmem:[#allocation12_spill] sm:$0xff] %v9008_v56 }
 0x3f3   :  { %7714 = vmatprep.subr.mxu0 %v10259_v40  ;;  %v9015_v59 = vld [vmem:[%s8934_s29 + $0x40] sm:$0xff] }
 0x3f4   :  { %7715 = vmatpush3.msra.mxu0 %v8961_v57  ;;  %10315 = vst [vmem:[#allocation13_spill] sm:$0xff] %v9015_v59 }
 0x3f5   :  { %7716 = vmatprep.subr.mxu0 %v10259_v40 }
 0x3f6   :  { %7717 = vmatpush3.msra.mxu0 %v8968_v23 }
 0x3f7   :  { %7718 = vmatprep.subr.mxu0 %v10259_v40 }
 0x3f8   :  { %7719 = vmatpush3.msra.mxu0 %v8978_v26 }
 0x3f9   :  { %7720 = vmatprep.subr.mxu0 %v10259_v40 }
 0x3fa   :  { %7721 = vmatpush3.msra.mxu0 %v8988_v50  ;;  %v9022_v50 = vld [vmem:[%s6917_s3] ss:$0 sm:$0xff]  ;;  %s6928_s3 = sld [smem:[%s10251_s0 + %s8599_s30]]   ;;  %s8614_s30 = smov 64  }
 0x3fb   :  { %7722 = vmatprep.subr.mxu0 %v10259_v40 }
 0x3fc   :  { %7723 = vmatpush3.msra.mxu0 %v8998_v52 }
 0x3fd   :  { %7724 = vmatprep.subr.mxu0 %v10259_v40 }
 0x3fe   :  { %7725 = vmatpush3.msra.mxu0 %v9008_v56 }
 0x3ff   :  { %7726 = vmatprep.subr.mxu0 %v10259_v40 }
 0x400   :  { %7727 = vmatpush3.msra.mxu0 %v9015_v59  ;;  %v9026_v59 = vld [vmem:[%s8934_s29 + $0xb8] sm:$0xff] }
 0x401   :  { %7750 = vmatprep.subr.mxu0 %v10259_v40 }
 0x4b1   :  { %v1162_v52 = vpop.f32.mrf.mxu0 }
 0x4b2   :  { %v1166_v56 = vadd.f32 %v1162_v52, %v1012_v53  ;;  %v9037_v53 = vld [vmem:[%s8934_s29 + $0xf8] sm:$0xff]  ;;  %v9055_v52 = vld [vmem:[%s8934_s29 + $0xa0] sm:$0xff] }
 0x4b3   :  { %v7692_v26 = vpop.f32.mrf.mxu0  ;;  %10317 = vst [vmem:[#allocation15_spill] sm:$0xff] %v9037_v53  ;;  %10321 = vst [vmem:[#allocation18_spill] sm:$0xff] %v9055_v52 }
 0x4b4   :  { %v1174_v23 = vadd.f32 %v9022_v50, %v1166_v56  ;;  %v10318_v26 = vmov 0.0   ;;  %v9058_v56 = vld [vmem:[%s8934_s29 + $0xe8] sm:$0xff] }
 0x4b5   :  { %10322 = vst [vmem:[#allocation19_spill] sm:$0xff] %v9058_v56 }
 0x4b6   :  { %vm1175_vm6 = vcmp.ge.f32.partialorder %v1174_v23, 0.0  ;;  %v1176_v57 = vmul.f32 0.2, %v1174_v23 }
 0x4b8   :  { %v9028_v40 = vsel %vm1175_vm6, %v1174_v23, %v1176_v57  ;;  %v9045_v57 = vld [vmem:[%s8934_s29 + $0xa8] sm:$0xff]  ;;  %v9048_v23 = vld [vmem:[%s8934_s29 + $0xf0] sm:$0xff]  ;;  %vm4116_vm6 = vcmask 64512  }
 0x4b9   :  { %7710 = vmatmul.mubr.msk.f32.vlgmr.msra.gmra.mxu1 %vm360_vm1, %v9028_v40  ;;  %v1269_v55 = vrot.slane %v9028_v40, 1  ;;  %10319 = vst [vmem:[#allocation16_spill] sm:$0xff] %v9045_v57  ;;  %10320 = vst [vmem:[#allocation17_spill] sm:$0xff] %v9048_v23 }
 0x4ba   :  { %7732 = vmatpush3.msra.mxu1 %v9026_v59  ;;  %7747 = vmatprep.mubr.msk.f32.mxu1 %vm8579_vm2, %v10318_v26 }
 0x4bb   :  { %7733 = vmatprep.subr.mxu1 %v10318_v26  ;;  %7729 = vmatmul.mubr.msk.f32.vlgmr.msra.gmra.mxu0 %vm360_vm1, %v1269_v55  ;;  %v9065_v55 = vld [vmem:[%s8934_s29 + $0x98] sm:$0xff] }
 0x4bc   :  { %7734 = vmatpush3.msra.mxu1 %v9034_v54  ;;  %7751 = vmatpush3.msra.mxu0 %v9037_v53  ;;  %10323 = vst [vmem:[#allocation20_spill] sm:$0xff] %v9065_v55  ;;  %v9068_v53 = vld [vmem:[%s8934_s29 + $0xe0] sm:$0xff]  ;;  %v9111_v54 = vld [vmem:[%s8934_s29 + $0x138] sm:$0xff] }
 0x4bd   :  { %7735 = vmatprep.subr.mxu1 %v10318_v26  ;;  %7752 = vmatprep.subr.mxu0 %v10318_v26  ;;  %10324 = vst [vmem:[#allocation21_spill] sm:$0xff] %v9068_v53  ;;  %10332 = vst [vmem:[#allocation29_spill] sm:$0xff] %v9111_v54 }
 0x4be   :  { %7736 = vmatpush3.msra.mxu1 %v9045_v57  ;;  %7753 = vmatpush3.msra.mxu0 %v9048_v23  ;;  %v9075_v23 = vld [vmem:[%s8934_s29 + $0x90] sm:$0xff]  ;;  %v9078_v57 = vld [vmem:[%s8934_s29 + $0xd8] sm:$0xff] }
 0x4bf   :  { %7737 = vmatprep.subr.mxu1 %v10318_v26  ;;  %7754 = vmatprep.subr.mxu0 %v10318_v26  ;;  %10325 = vst [vmem:[#allocation22_spill] sm:$0xff] %v9075_v23  ;;  %10326 = vst [vmem:[#allocation23_spill] sm:$0xff] %v9078_v57 }
 0x4c0   :  { %7738 = vmatpush3.msra.mxu1 %v9055_v52  ;;  %7755 = vmatpush3.msra.mxu0 %v9058_v56  ;;  %v9085_v52 = vld [vmem:[%s8934_s29 + $0x88] sm:$0xff]  ;;  %v9088_v56 = vld [vmem:[%s8934_s29 + $0xd0] sm:$0xff] }
 0x4c1   :  { %7739 = vmatprep.subr.mxu1 %v10318_v26  ;;  %7756 = vmatprep.subr.mxu0 %v10318_v26  ;;  %10327 = vst [vmem:[#allocation24_spill] sm:$0xff] %v9085_v52  ;;  %10328 = vst [vmem:[#allocation25_spill] sm:$0xff] %v9088_v56 }
 0x4c2   :  { %7740 = vmatpush3.msra.mxu1 %v9065_v55  ;;  %7757 = vmatpush3.msra.mxu0 %v9068_v53  ;;  %v9095_v55 = vld [vmem:[%s8934_s29 + $0x80] sm:$0xff]  ;;  %v9098_v53 = vld [vmem:[%s8934_s29 + $0xc8] sm:$0xff] }
 0x4c3   :  { %7741 = vmatprep.subr.mxu1 %v10318_v26  ;;  %7758 = vmatprep.subr.mxu0 %v10318_v26  ;;  %10329 = vst [vmem:[#allocation26_spill] sm:$0xff] %v9095_v55  ;;  %10330 = vst [vmem:[#allocation27_spill] sm:$0xff] %v9098_v53 }
 0x4c4   :  { %7742 = vmatpush3.msra.mxu1 %v9075_v23  ;;  %7759 = vmatpush3.msra.mxu0 %v9078_v57  ;;  %v1351_v57 = vrot.slane %v9028_v40, 2  ;;  %v9106_v23 = vld [vmem:[%s8934_s29 + $0xc0] sm:$0xff] }
 0x4c5   :  { %7743 = vmatprep.subr.mxu1 %v10318_v26  ;;  %7760 = vmatprep.subr.mxu0 %v10318_v26  ;;  %10331 = vst [vmem:[#allocation28_spill] sm:$0xff] %v9106_v23 }
 0x4c6   :  { %7744 = vmatpush3.msra.mxu1 %v9085_v52  ;;  %7761 = vmatpush3.msra.mxu0 %v9088_v56  ;;  %v1433_v56 = vrot.slane %v9028_v40, 3  ;;  %v9119_v52 = vld [vmem:[%s8934_s29 + $0x130] sm:$0xff] }
 0x4c7   :  { %7745 = vmatprep.subr.mxu1 %v10318_v26  ;;  %7762 = vmatprep.subr.mxu0 %v10318_v26  ;;  %10333 = vst [vmem:[#allocation30_spill] sm:$0xff] %v9119_v52 }
 0x4c8   :  { %7746 = vmatpush3.msra.mxu1 %v9095_v55  ;;  %7763 = vmatpush3.msra.mxu0 %v9098_v53  ;;  %v9125_v53 = vld [vmem:[%s8934_s29 + $0x178] sm:$0xff]  ;;  %v9284_v55 = vld [vmem:[%s8934_s29 + $0x1c0] sm:$0xff] }
 0x4c9   :  { %7748 = vmatmul.mubr.msk.f32.vlgmr.msra.gmra.mxu1 %vm360_vm1, %v1351_v57  ;;  %7764 = vmatprep.subr.mxu0 %v10318_v26  ;;  %10334 = vst [vmem:[#allocation31_spill] sm:$0xff] %v9125_v53  ;;  %v9130_v57 = vld [vmem:[%s8934_s29 + $0x128] sm:$0xff] }
 0x4ca   :  { %7769 = vmatprep.subr.mxu1 %v10318_v26  ;;  %7765 = vmatpush3.msra.mxu0 %v9106_v23  ;;  %10335 = vst [vmem:[#allocation32_spill] sm:$0xff] %v9130_v57  ;;  %v9135_v23 = vld [vmem:[%s8934_s29 + $0x170] sm:$0xff] }
 0x4cb   :  { %7766 = vmatprep.mubr.msk.f32.mxu0 %vm8579_vm2, %v10318_v26  ;;  %7770 = vmatpush3.msra.mxu1 %v9111_v54  ;;  %10336 = vst [vmem:[#allocation33_spill] sm:$0xff] %v9135_v23  ;;  %v9140_v54 = vld [vmem:[%s8934_s29 + $0x120] sm:$0xff] }
 0x4cc   :  { %7767 = vmatmul.mubr.msk.f32.vlgmr.msra.gmra.mxu0 %vm360_vm1, %v1433_v56  ;;  %7771 = vmatprep.subr.mxu1 %v10318_v26  ;;  %10337 = vst [vmem:[#allocation34_spill] sm:$0xff] %v9140_v54  ;;  %v9145_v56 = vld [vmem:[%s8934_s29 + $0x168] sm:$0xff] }
 0x4cd   :  { %7788 = vmatprep.subr.mxu0 %v10318_v26  ;;  %7772 = vmatpush3.msra.mxu1 %v9119_v52  ;;  %10338 = vst [vmem:[#allocation35_spill] sm:$0xff] %v9145_v56  ;;  %v9150_v52 = vld [vmem:[%s8934_s29 + $0x118] sm:$0xff] }
 0x4ce   :  { %7789 = vmatpush3.msra.mxu0 %v9125_v53  ;;  %7773 = vmatprep.subr.mxu1 %v10318_v26  ;;  %10339 = vst [vmem:[#allocation36_spill] sm:$0xff] %v9150_v52  ;;  %v9155_v53 = vld [vmem:[%s8934_s29 + $0x160] sm:$0xff] }
 0x4cf   :  { %7790 = vmatprep.subr.mxu0 %v10318_v26  ;;  %7774 = vmatpush3.msra.mxu1 %v9130_v57  ;;  %10340 = vst [vmem:[#allocation37_spill] sm:$0xff] %v9155_v53  ;;  %v9160_v57 = vld [vmem:[%s8934_s29 + $0x110] sm:$0xff] }
 0x4d0   :  { %7791 = vmatpush3.msra.mxu0 %v9135_v23  ;;  %7775 = vmatprep.subr.mxu1 %v10318_v26  ;;  %10341 = vst [vmem:[#allocation38_spill] sm:$0xff] %v9160_v57  ;;  %v9165_v23 = vld [vmem:[%s8934_s29 + $0x158] sm:$0xff] }
 0x4d1   :  { %7792 = vmatprep.subr.mxu0 %v10318_v26  ;;  %7776 = vmatpush3.msra.mxu1 %v9140_v54  ;;  %10342 = vst [vmem:[#allocation39_spill] sm:$0xff] %v9165_v23  ;;  %v9170_v54 = vld [vmem:[%s8934_s29 + $0x108] sm:$0xff] }
 0x4d2   :  { %7793 = vmatpush3.msra.mxu0 %v9145_v56  ;;  %7777 = vmatprep.subr.mxu1 %v10318_v26  ;;  %10343 = vst [vmem:[#allocation40_spill] sm:$0xff] %v9170_v54  ;;  %v9175_v56 = vld [vmem:[%s8934_s29 + $0x150] sm:$0xff] }
 0x4d3   :  { %7794 = vmatprep.subr.mxu0 %v10318_v26  ;;  %7778 = vmatpush3.msra.mxu1 %v9150_v52  ;;  %10344 = vst [vmem:[#allocation41_spill] sm:$0xff] %v9175_v56  ;;  %v9180_v52 = vld [vmem:[%s8934_s29 + $0x100] sm:$0xff] }
 0x4d4   :  { %7795 = vmatpush3.msra.mxu0 %v9155_v53  ;;  %7779 = vmatprep.subr.mxu1 %v10318_v26  ;;  %10345 = vst [vmem:[#allocation42_spill] sm:$0xff] %v9180_v52  ;;  %v9185_v53 = vld [vmem:[%s8934_s29 + $0x148] sm:$0xff] }
 0x4d5   :  { %7796 = vmatprep.subr.mxu0 %v10318_v26  ;;  %7780 = vmatpush3.msra.mxu1 %v9160_v57  ;;  %10346 = vst [vmem:[#allocation43_spill] sm:$0xff] %v9185_v53  ;;  %v9193_v57 = vld [vmem:[%s8934_s29 + $0x140] sm:$0xff] }
 0x4d6   :  { %7797 = vmatpush3.msra.mxu0 %v9165_v23  ;;  %7781 = vmatprep.subr.mxu1 %v10318_v26  ;;  %v1515_v23 = vrot.slane %v9028_v40, 4  ;;  %10347 = vst [vmem:[#allocation44_spill] sm:$0xff] %v9193_v57 }
 0x4d7   :  { %7798 = vmatprep.subr.mxu0 %v10318_v26  ;;  %7782 = vmatpush3.msra.mxu1 %v9170_v54  ;;  %v9199_v54 = vld [vmem:[%s8934_s29 + $0x1b8] sm:$0xff] }
 0x4d8   :  { %7799 = vmatpush3.msra.mxu0 %v9175_v56  ;;  %7783 = vmatprep.subr.mxu1 %v10318_v26  ;;  %10348 = vst [vmem:[#allocation45_spill] sm:$0xff] %v9199_v54  ;;  %v9207_v56 = vld [vmem:[%s8934_s29 + $0x1b0] sm:$0xff] }
 0x4d9   :  { %7800 = vmatprep.subr.mxu0 %v10318_v26  ;;  %7784 = vmatpush3.msra.mxu1 %v9180_v52  ;;  %v1597_v52 = vrot.slane %v9028_v40, 5  ;;  %10349 = vst [vmem:[#allocation46_spill] sm:$0xff] %v9207_v56 }
 0x4da   :  { %7785 = vmatprep.mubr.msk.f32.mxu1 %vm8579_vm2, %v10318_v26  ;;  %7801 = vmatpush3.msra.mxu0 %v9185_v53  ;;  %v9213_v53 = vld [vmem:[%s8934_s29 + $0x1f8] sm:$0xff] }
 0x4db   :  { %7786 = vmatmul.mubr.msk.f32.vlgmr.msra.gmra.mxu1 %vm360_vm1, %v1515_v23  ;;  %7802 = vmatprep.subr.mxu0 %v10318_v26  ;;  %10350 = vst [vmem:[#allocation47_spill] sm:$0xff] %v9213_v53  ;;  %v9218_v23 = vld [vmem:[%s8934_s29 + $0x1a8] sm:$0xff] }
 0x4dc   :  { %7807 = vmatprep.subr.mxu1 %v10318_v26  ;;  %7803 = vmatpush3.msra.mxu0 %v9193_v57  ;;  %10351 = vst [vmem:[#allocation48_spill] sm:$0xff] %v9218_v23  ;;  %v9223_v57 = vld [vmem:[%s8934_s29 + $0x1f0] sm:$0xff] }
 0x4dd   :  { %7804 = vmatprep.mubr.msk.f32.mxu0 %vm8579_vm2, %v10318_v26  ;;  %7808 = vmatpush3.msra.mxu1 %v9199_v54  ;;  %10352 = vst [vmem:[#allocation49_spill] sm:$0xff] %v9223_v57  ;;  %v9228_v54 = vld [vmem:[%s8934_s29 + $0x1a0] sm:$0xff] }
 0x4de   :  { %7805 = vmatmul.mubr.msk.f32.vlgmr.msra.gmra.mxu0 %vm360_vm1, %v1597_v52  ;;  %7809 = vmatprep.subr.mxu1 %v10318_v26  ;;  %10353 = vst [vmem:[#allocation50_spill] sm:$0xff] %v9228_v54  ;;  %v9233_v52 = vld [vmem:[%s8934_s29 + $0x1e8] sm:$0xff] }
 0x4df   :  { %7826 = vmatprep.subr.mxu0 %v10318_v26  ;;  %7810 = vmatpush3.msra.mxu1 %v9207_v56  ;;  %10354 = vst [vmem:[#allocation51_spill] sm:$0xff] %v9233_v52  ;;  %v9238_v56 = vld [vmem:[%s8934_s29 + $0x198] sm:$0xff] }
 0x4e0   :  { %7827 = vmatpush3.msra.mxu0 %v9213_v53  ;;  %7811 = vmatprep.subr.mxu1 %v10318_v26  ;;  %10355 = vst [vmem:[#allocation52_spill] sm:$0xff] %v9238_v56  ;;  %v9243_v53 = vld [vmem:[%s8934_s29 + $0x1e0] sm:$0xff] }
 0x4e1   :  { %7828 = vmatprep.subr.mxu0 %v10318_v26  ;;  %7812 = vmatpush3.msra.mxu1 %v9218_v23  ;;  %10356 = vst [vmem:[#allocation53_spill] sm:$0xff] %v9243_v53  ;;  %v9248_v23 = vld [vmem:[%s8934_s29 + $0x190] sm:$0xff] }
 0x4e2   :  { %7829 = vmatpush3.msra.mxu0 %v9223_v57  ;;  %7813 = vmatprep.subr.mxu1 %v10318_v26  ;;  %10357 = vst [vmem:[#allocation54_spill] sm:$0xff] %v9248_v23  ;;  %v9253_v57 = vld [vmem:[%s8934_s29 + $0x1d8] sm:$0xff] }
 0x4e3   :  { %7830 = vmatprep.subr.mxu0 %v10318_v26  ;;  %7814 = vmatpush3.msra.mxu1 %v9228_v54  ;;  %10358 = vst [vmem:[#allocation55_spill] sm:$0xff] %v9253_v57  ;;  %v9258_v54 = vld [vmem:[%s8934_s29 + $0x188] sm:$0xff] }
 0x4e4   :  { %7831 = vmatpush3.msra.mxu0 %v9233_v52  ;;  %7815 = vmatprep.subr.mxu1 %v10318_v26  ;;  %v9263_v52 = vld [vmem:[%s8934_s29 + $0x1d0] sm:$0xff] }
 0x4e5   :  { %7832 = vmatprep.subr.mxu0 %v10318_v26  ;;  %7816 = vmatpush3.msra.mxu1 %v9238_v56  ;;  %10359 = vst [vmem:[#allocation56_spill] sm:$0xff] %v9263_v52  ;;  %v9268_v56 = vld [vmem:[%s8934_s29 + $0x180] sm:$0xff] }
 0x4e6   :  { %7833 = vmatpush3.msra.mxu0 %v9243_v53  ;;  %7817 = vmatprep.subr.mxu1 %v10318_v26  ;;  %10360 = vst [vmem:[#allocation57_spill] sm:$0xff] %v9268_v56  ;;  %v9273_v53 = vld [vmem:[%s8934_s29 + $0x1c8] sm:$0xff]  ;;  %s6947_s29 = sld [smem:[%s10251_s0 + %s8598_s26]]   ;;  %s8613_s26 = smov 27  }
 0x4e7   :  { %7834 = vmatprep.subr.mxu0 %v10318_v26  ;;  %7818 = vmatpush3.msra.mxu1 %v9248_v23  ;;  %v9281_v23 = vld [vmem:[%s8629_s5 + $0x18] sm:$0xff] }
 0x4e8   :  { %7835 = vmatpush3.msra.mxu0 %v9253_v57  ;;  %7819 = vmatprep.subr.mxu1 %v10318_v26  ;;  %v1679_v57 = vrot.slane %v9028_v40, 6 }
 0x4e9   :  { %7836 = vmatprep.subr.mxu0 %v10318_v26  ;;  %7820 = vmatpush3.msra.mxu1 %v9258_v54 }
 0x4ea   :  { %7837 = vmatpush3.msra.mxu0 %v9263_v52  ;;  %7821 = vmatprep.subr.mxu1 %v10318_v26  ;;  %v9292_v52 = vld [vmem:[%s8629_s5 + $0x10] sm:$0xff]  ;;  %s6925_s5 = sld [smem:[%s10251_s0 + %s8592_s2]]   ;;  %s8607_s2 = smov 20  }
 0x4eb   :  { %7838 = vmatprep.subr.mxu0 %v10318_v26  ;;  %7822 = vmatpush3.msra.mxu1 %v9268_v56  ;;  %v1761_v56 = vrot.slane %v9028_v40, 7 }
 0x4ec   :  { %7823 = vmatprep.mubr.msk.f32.mxu1 %vm8579_vm2, %v10318_v26  ;;  %7839 = vmatpush3.msra.mxu0 %v9273_v53 }
 0x4ed   :  { %7824 = vmatmul.mubr.msk.f32.vlgmr.msra.gmra.mxu1 %vm360_vm1, %v1679_v57  ;;  %7840 = vmatprep.subr.mxu0 %v10318_v26 }
 0x4ee   :  { %7845 = vmatprep.subr.mxu1 %v9281_v23  ;;  %7841 = vmatpush3.msra.mxu0 %v9284_v55 }
 0x4ef   :  { %7842 = vmatprep.mubr.msk.f32.mxu0 %vm8579_vm2, %v10318_v26  ;;  %7846 = vmatpush3.msra.mxu1 %v9281_v23 }
 0x4f0   :  { %7843 = vmatmul.mubr.msk.f32.vlgmr.msra.gmra.mxu0 %vm360_vm1, %v1761_v56  ;;  %7847 = vmatprep.subr.mxu1 %v9292_v52 }
 0x4f1   :  { %7848 = vmatpush3.msra.mxu1 %v9292_v52  ;;  %7849 = vmatprep.mubr.msk.f32.mxu1 %vm187_vm0, %v8649_v2 }
 0x4f2   :  { %7850 = vmatmul.mubr.msk.f32.vlgmr.msra.gmra.mxu1 %vm187_vm0, %v8655_v3  ;;  %7852 = vmatprep.subr.mxu1 %v9281_v23 }
 0x4f3   :  { %7853 = vmatpush3.msra.mxu1 %v9281_v23  ;;  %7856 = vmatprep.mubr.msk.f32.mxu1 %vm187_vm0, %v8659_v4 }
 0x4f4   :  { %7854 = vmatprep.subr.mxu1 %v9292_v52  ;;  %7859 = vmatprep.subr.mxu0 %v8662_v5 }
 0x4f5   :  { %7855 = vmatpush3.msra.mxu1 %v9292_v52  ;;  %7860 = vmatpush3.msra.mxu0 %v8662_v5 }
 0x4f6   :  { %7857 = vmatmul.mubr.msk.f32.vlgmr.msra.gmra.mxu1 %vm187_vm0, %v8676_v7  ;;  %7878 = vmatprep.subr.mxu1 %v8679_v8 }
 0x4f7   :  { %7879 = vmatpush3.msra.mxu1 %v8679_v8  ;;  %7861 = vmatprep.subr.mxu0 %v8670_v6 }
 0x4f8   :  { %7880 = vmatprep.subr.mxu1 %v8685_v9  ;;  %7862 = vmatpush3.msra.mxu0 %v8670_v6 }
 0x4f9   :  { %7881 = vmatpush3.msra.mxu1 %v8685_v9  ;;  %7863 = vmatprep.subr.mxu0 %v8689_v10 }
 0x4fa   :  { %7882 = vmatprep.subr.mxu1 %v8696_v11  ;;  %7864 = vmatpush3.msra.mxu0 %v8689_v10  ;;  %v1178_v10 = vld [vmem:[%s9352_s7] sm:$0x1] }
 0x4fb   :  { %7883 = vmatpush3.msra.mxu1 %v8696_v11  ;;  %7865 = vmatprep.subr.mxu0 %v8700_v12 }
 0x4fc   :  { %7884 = vmatprep.subr.mxu1 %v8706_v13  ;;  %7866 = vmatpush3.msra.mxu0 %v8700_v12 }
 0x4fd   :  { %7885 = vmatpush3.msra.mxu1 %v8706_v13  ;;  %7867 = vmatprep.subr.mxu0 %v8726_v16 }
 0x4fe   :  { %7886 = vmatprep.subr.mxu1 %v8713_v14  ;;  %7868 = vmatpush3.msra.mxu0 %v8726_v16 }
 0x4ff   :  { %7887 = vmatpush3.msra.mxu1 %v8713_v14  ;;  %7869 = vmatprep.subr.mxu0 %v8736_v18 }
 0x500   :  { %7888 = vmatprep.subr.mxu1 %v8719_v15  ;;  %7870 = vmatpush3.msra.mxu0 %v8736_v18 }
 0x501   :  { %7889 = vmatpush3.msra.mxu1 %v8719_v15  ;;  %7871 = vmatprep.subr.mxu0 %v8746_v20 }
 0x502   :  { %7890 = vmatprep.subr.mxu1 %v8729_v17  ;;  %7872 = vmatpush3.msra.mxu0 %v8746_v20 }
 0x503   :  { %7891 = vmatpush3.msra.mxu1 %v8729_v17  ;;  %7873 = vmatprep.subr.mxu0 %v8751_v21 }
 0x504   :  { %7892 = vmatprep.subr.mxu1 %v8739_v19  ;;  %7874 = vmatpush3.msra.mxu0 %v8751_v21 }
 0x505   :  { %7893 = vmatpush3.msra.mxu1 %v8739_v19  ;;  %7897 = vmatprep.subr.mxu0 %v9281_v23 }
 0x506   :  { %7904 = vmatprep.subr.mxu1 %v8757_v22 }
 0x579   :  { %v1256_v2 = vpop.f32.mrf.mxu1 }
 0x57a   :  { %v1260_v12 = vadd.f32 %v1256_v2, %v1178_v10  ;;  %v10369_v10 = vld [vmem:[#allocation13_spill] sm:$0xff] }
 0x57b   :  { %v7711_v3 = vpop.f32.mrf.mxu1  ;;  %v1338_v4 = vpop.f32.mrf.mxu0 }
 0x57c   :  { %v1342_v15 = vadd.f32 %v1338_v4, %v1260_v12 }
 0x57d   :  { %v7730_v5 = vpop.f32.mrf.mxu0 }
 0x589   :  { %v1420_v6 = vpop.f32.mrf.mxu1 }
 0x58a   :  { %v1424_v17 = vadd.f32 %v1420_v6, %v1342_v15 }
 0x58b   :  { %v7749_v7 = vpop.f32.mrf.mxu1 }
 0x58c   :  { %v1502_v8 = vpop.f32.mrf.mxu0 }
 0x58d   :  { %v1506_v18 = vadd.f32 %v1502_v8, %v1424_v17 }
 0x58e   :  { %v7768_v9 = vpop.f32.mrf.mxu0 }
 0x59b   :  { %v1584_v11 = vpop.f32.mrf.mxu1 }
 0x59c   :  { %v1588_v19 = vadd.f32 %v1584_v11, %v1506_v18  ;;  %v10370_v18 = vld [vmem:[#allocation14_spill] sm:$0xff] }
 0x59d   :  { %v7787_v13 = vpop.f32.mrf.mxu1 }
 0x59e   :  { %v1666_v14 = vpop.f32.mrf.mxu0 }
 0x59f   :  { %v1670_v20 = vadd.f32 %v1666_v14, %v1588_v19  ;;  %v10372_v19 = vld [vmem:[#allocation16_spill] sm:$0xff] }
 0x5a0   :  { %v7806_v16 = vpop.f32.mrf.mxu0 }
 0x5ad   :  { %v1748_v21 = vpop.f32.mrf.mxu1 }
 0x5ae   :  { %v1752_v40 = vadd.f32 %v1748_v21, %v1670_v20  ;;  %v10373_v20 = vld [vmem:[#allocation17_spill] sm:$0xff]  ;;  %v10375_v21 = vld [vmem:[#allocation19_spill] sm:$0xff] }
 0x5af   :  { %v7825_v57 = vpop.f32.mrf.mxu1 }
 0x5b0   :  { %v1830_v56 = vpop.f32.mrf.mxu0  ;;  %v10377_v57 = vld [vmem:[#allocation21_spill] sm:$0xff] }
 0x5b1   :  { %v1834_v3 = vadd.f32 %v1830_v56, %v1752_v40  ;;  %v10376_v40 = vld [vmem:[#allocation20_spill] sm:$0xff]  ;;  %v10378_v56 = vld [vmem:[#allocation22_spill] sm:$0xff] }
 0x5b2   :  { %v7844_v5 = vpop.f32.mrf.mxu0  ;;  %v7851_v7 = vpop.f32.mrf.mxu1 }
 0x5b3   :  { %1836 = vst.msk [vmem:[#allocation2] sm:$0x1] %vm1835_vm7, %v1834_v3  ;;  %v10379_v3 = vld [vmem:[#allocation23_spill] sm:$0xff]  ;;  %v10380_v5 = vld [vmem:[#allocation24_spill] sm:$0xff] }
 0x5b4   :  { %v1921_v9 = vpop.f32.mrf.mxu1 }
 0x5b5   :  { %7894 = vmatprep.mubr.msk.f32.mxu1 %vm360_vm1, %v1921_v9 }
 0x5b6   :  { %v7858_v2 = vpop.f32.mrf.mxu1  ;;  %7895 = vmatmul.mubr.msk.f32.vlgmr.msra.gmra.mxu1 %vm360_vm1, %v7851_v7  ;;  %v10381_v7 = vld [vmem:[#allocation25_spill] sm:$0xff] }
 0x5b7   :  { %7905 = vmatpush3.msra.mxu1 %v8757_v22 }
 0x5b8   :  { %v2012_v4 = vpop.f32.mrf.mxu1  ;;  %7906 = vmatprep.subr.mxu1 %v8762_v25 }
 0x5b9   :  { %7875 = vmatprep.mubr.msk.f32.mxu0 %vm360_vm1, %v2012_v4  ;;  %7907 = vmatpush3.msra.mxu1 %v8762_v25  ;;  %v10383_v4 = vld [vmem:[#allocation27_spill] sm:$0xff] }
 0x5ba   :  { %7876 = vmatmul.mubr.msk.f32.vlgmr.msra.gmra.mxu0 %vm360_vm1, %v7858_v2  ;;  %7908 = vmatprep.subr.mxu1 %v8784_v30  ;;  %v10382_v2 = vld [vmem:[#allocation26_spill] sm:$0xff] }
 0x5bb   :  { %7898 = vmatpush3.msra.mxu0 %v9281_v23  ;;  %7901 = vmatprep.mubr.msk.f32.mxu0 %vm187_vm0, %v8767_v28 }
 0x5bc   :  { %7899 = vmatprep.subr.mxu0 %v9292_v52  ;;  %7909 = vmatpush3.msra.mxu1 %v8784_v30 }
 0x5bd   :  { %7900 = vmatpush3.msra.mxu0 %v9292_v52  ;;  %7910 = vmatprep.subr.mxu1 %v8789_v31 }
 0x5be   :  { %7902 = vmatmul.mubr.msk.f32.vlgmr.msra.gmra.mxu0 %vm187_vm0, %v8777_v29  ;;  %7911 = vmatpush3.msra.mxu1 %v8789_v31 }
 0x5bf   :  { %7912 = vmatprep.subr.mxu1 %v8794_v32  ;;  %7923 = vmatprep.subr.mxu0 %v10318_v26 }
 0x5c0   :  { %7913 = vmatpush3.msra.mxu1 %v8794_v32  ;;  %7927 = vmatprep.mubr.msk.f32.mxu0 %vm8579_vm2, %v10318_v26 }
 0x5c1   :  { %7914 = vmatprep.subr.mxu1 %v8799_v33 }
 0x5c2   :  { %7915 = vmatpush3.msra.mxu1 %v8799_v33 }
 0x5c3   :  { %7916 = vmatprep.subr.mxu1 %v8804_v34 }
 0x5c4   :  { %7917 = vmatpush3.msra.mxu1 %v8804_v34 }
 0x5c5   :  { %7918 = vmatprep.subr.mxu1 %v8809_v35 }
 0x5c6   :  { %7919 = vmatpush3.msra.mxu1 %v8809_v35 }
 0x5c7   :  { %7948 = vmatprep.subr.mxu1 %v10318_v26 }
 0x676   :  { %v7896_v30 = vpop.f32.mrf.mxu1 }
 0x678   :  { %v2174_v31 = vpop.f32.mrf.mxu1 }
 0x67a   :  { %v7877_v22 = vpop.f32.mrf.mxu0 }
 0x67b   :  { %v2180_v32 = vadd.f32 %v7896_v30, %v7877_v22  ;;  %v10384_v22 = vld [vmem:[#allocation28_spill] sm:$0xff]  ;;  %v10387_v30 = vld [vmem:[#allocation31_spill] sm:$0xff] }
 0x67c   :  { %v2093_v25 = vpop.f32.mrf.mxu0 }
 0x67d   :  { %v2175_v34 = vadd.f32 %v2174_v31, %v2093_v25  ;;  %v10388_v31 = vld [vmem:[#allocation32_spill] sm:$0xff] }
 0x67e   :  { %v7903_v28 = vpop.f32.mrf.mxu0 }
 0x680   :  { %v2265_v29 = vpop.f32.mrf.mxu0 }
 0x681   :  { %7920 = vmatprep.mubr.msk.f32.mxu1 %vm360_vm1, %v2265_v29  ;;  %v10386_v29 = vld [vmem:[#allocation30_spill] sm:$0xff] }
 0x682   :  { %7921 = vmatmul.mubr.msk.f32.vlgmr.msra.gmra.mxu1 %vm360_vm1, %v7903_v28  ;;  %v10385_v28 = vld [vmem:[#allocation29_spill] sm:$0xff] }
 0x683   :  { %7949 = vmatpush3.msra.mxu1 %v8827_v41  ;;  %7956 = vmatprep.mubr.msk.f32.mxu1 %vm8579_vm2, %v10318_v26 }
 0x684   :  { %7950 = vmatprep.subr.mxu1 %v10318_v26 }
 0x685   :  { %7951 = vmatpush3.msra.mxu1 %v8830_v42 }
 0x686   :  { %7952 = vmatprep.subr.mxu1 %v10318_v26 }
 0x687   :  { %7953 = vmatpush3.msra.mxu1 %v8835_v43 }
 0x688   :  { %7954 = vmatprep.subr.mxu1 %v10318_v26 }
 0x689   :  { %7955 = vmatpush3.msra.mxu1 %v8882_v63 }
 0x68a   :  { %7977 = vmatprep.subr.mxu1 %v10318_v26 }
 0x742   :  { %v7922_v33 = vpop.f32.mrf.mxu1 }
 0x743   :  { %v2356_v35 = vadd.f32 %v7922_v33, %v2180_v32  ;;  %v10389_v32 = vld [vmem:[#allocation33_spill] sm:$0xff]  ;;  %v10390_v33 = vld [vmem:[#allocation34_spill] sm:$0xff] }
 0x744   :  { %v2346_v41 = vpop.f32.mrf.mxu1 }
 0x745   :  { %v2365_v23 = vadd.f32 %v8844_v48, %v2356_v35  ;;  %v2355_v42 = vadd.f32 %v2346_v41, %v2175_v34  ;;  %v10391_v34 = vld [vmem:[#allocation35_spill] sm:$0xff]  ;;  %v10392_v35 = vld [vmem:[#allocation36_spill] sm:$0xff]  ;;  %v10393_v41 = vld [vmem:[#allocation37_spill] sm:$0xff] }
 0x747   :  { %v2369_v52 = vmul.f32 0.2, %v2365_v23  ;;  %v2364_v6 = vadd.f32 %v8844_v48, %v2355_v42  ;;  %vm2367_vm8 = vcmp.ge.f32.partialorder %v2365_v23, 0.0  ;;  %v10395_v42 = vld [vmem:[#allocation39_spill] sm:$0xff] }
 0x749   :  { %v2368_v43 = vmul.f32 0.2, %v2364_v6  ;;  %v2371_v8 = vsel %vm2367_vm8, %v2365_v23, %v2369_v52  ;;  %vm2366_vm9 = vcmp.ge.f32.partialorder %v2364_v6, 0.0  ;;  %v10394_v23 = vld [vmem:[#allocation38_spill] sm:$0xff]  ;;  %v10396_v52 = vld [vmem:[#allocation40_spill] sm:$0xff] }
 0x74a   :  { %7924 = vmatpush3.msra.mxu0 %v2371_v8 }
 0x74b   :  { %7925 = vmatprep.subr.mxu0 %v10318_v26  ;;  %v2370_v63 = vsel %vm2366_vm9, %v2364_v6, %v2368_v43  ;;  %v10397_v6 = vld [vmem:[#allocation41_spill] sm:$0xff]  ;;  %v10398_v43 = vld [vmem:[#allocation42_spill] sm:$0xff]  ;;  %vm4191_vm9 = vcmask 1024  }
 0x74c   :  { %7926 = vmatpush3.msra.mxu0 %v2370_v63 }
 0x74d   :  { %7928 = vmatmul.mubr.msk.f32.vlgmr.msra.gmra.mxu0 %vm187_vm0, %v8854_v58  ;;  %7930 = vmatprep.subr.mxu0 %v10318_v26 }
 0x74e   :  { %7931 = vmatpush3.msra.mxu0 %v2371_v8  ;;  %7934 = vmatprep.mubr.msk.f32.mxu0 %vm8579_vm2, %v10318_v26 }
 0x74f   :  { %7932 = vmatprep.subr.mxu0 %v10318_v26 }
 0x750   :  { %7933 = vmatpush3.msra.mxu0 %v2370_v63 }
 0x751   :  { %7935 = vmatmul.mubr.msk.f32.vlgmr.msra.gmra.mxu0 %vm187_vm0, %v8863_v60  ;;  %7937 = vmatprep.subr.mxu0 %v10318_v26 }
 0x752   :  { %7938 = vmatpush3.msra.mxu0 %v8867_v61  ;;  %7945 = vmatprep.mubr.msk.f32.mxu0 %vm8579_vm2, %v10318_v26 }
 0x753   :  { %7939 = vmatprep.subr.mxu0 %v10318_v26 }
 0x754   :  { %7940 = vmatpush3.msra.mxu0 %v8873_v62  ;;  %v10361_v62 = vld [vmem:[#allocation11_spill] sm:$0xff] }
 0x755   :  { %7941 = vmatprep.subr.mxu0 %v10318_v26 }
 0x756   :  { %7942 = vmatpush3.msra.mxu0 %v8886_v0 }
 0x757   :  { %7943 = vmatprep.subr.mxu0 %v10318_v26 }
 0x758   :  { %7944 = vmatpush3.msra.mxu0 %v8892_v1 }
 0x759   :  { %7959 = vmatprep.subr.mxu0 %v10318_v26 }
 0x80d   :  { %v2446_v48 = vpop.f32.mrf.mxu0 }
 0x80e   :  { %7957 = vmatmul.mubr.msk.f32.vlgmr.msra.gmra.mxu1 %vm868_vm5, %v2446_v48  ;;  %v10400_v48 = vld [vmem:[#allocation44_spill] sm:$0xff] }
 0x80f   :  { %v7929_v58 = vpop.f32.mrf.mxu0  ;;  %7978 = vmatpush3.msra.mxu1 %v8937_v45  ;;  %7993 = vmatprep.mubr.msk.f32.mxu1 %vm8579_vm2, %v10318_v26  ;;  %v10362_v45 = vld [vmem:[#allocation5_spill] sm:$0xff] }
 0x810   :  { %7979 = vmatprep.subr.mxu1 %v10318_v26 }
 0x811   :  { %v2524_v60 = vpop.f32.mrf.mxu0  ;;  %7980 = vmatpush3.msra.mxu1 %v8940_v46  ;;  %v10363_v46 = vld [vmem:[#allocation6_spill] sm:$0xff] }
 0x812   :  { %7946 = vmatmul.mubr.msk.f32.vlgmr.msra.gmra.mxu0 %vm868_vm5, %v2524_v60  ;;  %7981 = vmatprep.subr.mxu1 %v10318_v26  ;;  %v10401_v60 = vld [vmem:[#allocation45_spill] sm:$0xff] }
 0x813   :  { %7960 = vmatpush3.msra.mxu0 %v2371_v8  ;;  %v7936_v61 = vpop.f32.mrf.mxu0  ;;  %7963 = vmatprep.mubr.msk.f32.mxu0 %vm8579_vm2, %v10318_v26 }
 0x814   :  { %7961 = vmatprep.subr.mxu0 %v10318_v26  ;;  %7982 = vmatpush3.msra.mxu1 %v8945_v47  ;;  %v10364_v47 = vld [vmem:[#allocation7_spill] sm:$0xff]  ;;  %v10402_v61 = vld [vmem:[#allocation46_spill] sm:$0xff] }
 0x815   :  { %7962 = vmatpush3.msra.mxu0 %v2370_v63  ;;  %7983 = vmatprep.subr.mxu1 %v10318_v26  ;;  %v10399_v63 = vld [vmem:[#allocation43_spill] sm:$0xff] }
 0x816   :  { %7964 = vmatmul.mubr.msk.f32.vlgmr.msra.gmra.mxu0 %vm187_vm0, %v8903_v36  ;;  %7966 = vmatprep.subr.mxu0 %v10318_v26 }
 0x817   :  { %7967 = vmatpush3.msra.mxu0 %v8912_v37  ;;  %7974 = vmatprep.mubr.msk.f32.mxu0 %vm8579_vm2, %v10318_v26 }
 0x818   :  { %7968 = vmatprep.subr.mxu0 %v10318_v26  ;;  %7984 = vmatpush3.msra.mxu1 %v8950_v49  ;;  %v10365_v49 = vld [vmem:[#allocation8_spill] sm:$0xff] }
 0x819   :  { %7969 = vmatpush3.msra.mxu0 %v8917_v38  ;;  %7985 = vmatprep.subr.mxu1 %v10318_v26 }
 0x81a   :  { %7970 = vmatprep.subr.mxu0 %v10318_v26  ;;  %7986 = vmatpush3.msra.mxu1 %v8975_v24  ;;  %v10366_v24 = vld [vmem:[#allocation9_spill] sm:$0xff] }
 0x81b   :  { %7971 = vmatpush3.msra.mxu0 %v8922_v39  ;;  %7987 = vmatprep.subr.mxu1 %v10318_v26 }
 0x81c   :  { %7972 = vmatprep.subr.mxu0 %v10318_v26  ;;  %7988 = vmatpush3.msra.mxu1 %v8985_v27  ;;  %v10367_v27 = vld [vmem:[#allocation10_spill] sm:$0xff] }
 0x81d   :  { %7973 = vmatpush3.msra.mxu0 %v8927_v44  ;;  %7989 = vmatprep.subr.mxu1 %v10318_v26 }
 0x81e   :  { %7996 = vmatprep.subr.mxu0 %v10318_v26  ;;  %7990 = vmatpush3.msra.mxu1 %v8995_v51  ;;  %v10368_v51 = vld [vmem:[#allocation12_spill] sm:$0xff] }
 0x81f   :  { %7991 = vmatprep.subr.mxu1 %v10318_v26 }
 0x820   :  { %7992 = vmatpush3.msra.mxu1 %v10361_v62  ;;  %v10403_v62 = vld [vmem:[#allocation47_spill] sm:$0xff] }
 0x821   :  { %8015 = vmatprep.subr.mxu1 %v10318_v26 }
 0x8ce   :  { %v2670_v0 = vpop.f32.mrf.mxu1 }
 0x8d0   :  { %v7958_v1 = vpop.f32.mrf.mxu1 }
 0x8d1   :  { %v10405_v1 = vld [vmem:[#allocation49_spill] sm:$0xff] }
 0x8d2   :  { %v2597_v36 = vpop.f32.mrf.mxu0 }
 0x8d3   :  { %v2671_v37 = vadd.f32 %v2670_v0, %v2597_v36  ;;  %v10404_v0 = vld [vmem:[#allocation48_spill] sm:$0xff]  ;;  %v10406_v36 = vld [vmem:[#allocation50_spill] sm:$0xff] }
 0x8d4   :  { %v7947_v38 = vpop.f32.mrf.mxu0 }
 0x8d5   :  { %v10408_v38 = vld [vmem:[#allocation52_spill] sm:$0xff] }
 0x8d6   :  { %v2748_v39 = vpop.f32.mrf.mxu0 }
 0x8d7   :  { %7975 = vmatmul.mubr.msk.f32.vlgmr.msra.gmra.mxu0 %vm868_vm5, %v2748_v39  ;;  %v10409_v39 = vld [vmem:[#allocation53_spill] sm:$0xff] }
 0x8d8   :  { %v7965_v44 = vpop.f32.mrf.mxu0  ;;  %7997 = vmatpush3.msra.mxu0 %v10362_v45  ;;  %8012 = vmatprep.mubr.msk.f32.mxu0 %vm8579_vm2, %v10318_v26  ;;  %v10411_v45 = vld [vmem:[#allocation55_spill] sm:$0xff] }
 0x8d9   :  { %7998 = vmatprep.subr.mxu0 %v10318_v26  ;;  %v10410_v44 = vld [vmem:[#allocation54_spill] sm:$0xff] }
 0x8da   :  { %7999 = vmatpush3.msra.mxu0 %v10363_v46  ;;  %v10412_v46 = vld [vmem:[#allocation56_spill] sm:$0xff] }
 0x8db   :  { %8000 = vmatprep.subr.mxu0 %v10318_v26 }
 0x8dc   :  { %8001 = vmatpush3.msra.mxu0 %v10364_v47  ;;  %v10413_v47 = vld [vmem:[#allocation57_spill] sm:$0xff] }
 0x8dd   :  { %8002 = vmatprep.subr.mxu0 %v10318_v26 }
 0x8de   :  { %8003 = vmatpush3.msra.mxu0 %v10365_v49 }
 0x8df   :  { %8004 = vmatprep.subr.mxu0 %v10318_v26 }
 0x8e0   :  { %8005 = vmatpush3.msra.mxu0 %v10366_v24  ;;  %v3504_v24 = vld [vmem:[%s6920_s11 + $0x28] sm:$0xff] }
 0x8e1   :  { %8006 = vmatprep.subr.mxu0 %v10318_v26 }
 0x8e2   :  { %8007 = vmatpush3.msra.mxu0 %v10367_v27  ;;  %v3503_v27 = vld [vmem:[%s6920_s11 + $0x20] sm:$0xff] }
 0x8e3   :  { %8008 = vmatprep.subr.mxu0 %v10318_v26 }
 0x8e4   :  { %8009 = vmatpush3.msra.mxu0 %v10368_v51  ;;  %v3502_v51 = vld [vmem:[%s6920_s11 + $0x18] sm:$0xff] }
 0x8e5   :  { %8010 = vmatprep.subr.mxu0 %v10318_v26 }
 0x8e6   :  { %8011 = vmatpush3.msra.mxu0 %v10369_v10  ;;  %v3501_v10 = vld [vmem:[%s6920_s11 + $0x10] sm:$0xff] }
 0x8e7   :  { %8034 = vmatprep.subr.mxu0 %v10318_v26 }
 0x997   :  { %v2821_v11 = vpop.f32.mrf.mxu0 }
 0x998   :  { %v2825_v12 = vadd.f32 %v2821_v11, %v2671_v37  ;;  %v10407_v37 = vld [vmem:[#allocation51_spill] sm:$0xff]  ;;  %v3500_v11 = vld [vmem:[%s6920_s11 + $0x8] sm:$0xff] }
 0x999   :  { %v7976_v13 = vpop.f32.mrf.mxu0 }
 0x99a   :  { %v2833_v14 = vadd.f32 %v9022_v50, %v2825_v12  ;;  %v10371_v50 = vld [vmem:[#allocation15_spill] sm:$0xff] }
 0x99b   :  { %v3499_v12 = vld [vmem:[%s6920_s11] sm:$0xff]  ;;  %v3593_v13 = vld [vmem:[%s9620_s15 + $0x18] sm:$0xff] }
 0x99c   :  { %vm2834_vm10 = vcmp.ge.f32.partialorder %v2833_v14, 0.0  ;;  %v2835_v15 = vmul.f32 0.2, %v2833_v14 }
 0x99e   :  { %v9476_v16 = vsel %vm2834_vm10, %v2833_v14, %v2835_v15 }
 0x99f   :  { %7994 = vmatmul.mubr.msk.f32.vlgmr.msra.gmra.mxu1 %vm360_vm1, %v9476_v16  ;;  %v2928_v17 = vrot.slane %v9476_v16, 1  ;;  %v3010_v9 = vrot.slane %v9476_v16, 2  ;;  %v3092_v25 = vrot.slane %v9476_v16, 3  ;;  %v3174_v8 = vrot.slane %v9476_v16, 4 }
 0x9a0   :  { %8016 = vmatpush3.msra.mxu1 %v9026_v59  ;;  %8031 = vmatprep.mubr.msk.f32.mxu1 %vm8579_vm2, %v10318_v26  ;;  %v10374_v59 = vld [vmem:[#allocation18_spill] sm:$0xff]  ;;  %v3256_v58 = vrot.slane %v9476_v16, 5  ;;  %v3338_v49 = vrot.slane %v9476_v16, 6 }
 0x9a1   :  { %8017 = vmatprep.subr.mxu1 %v10318_v26  ;;  %8013 = vmatmul.mubr.msk.f32.vlgmr.msra.gmra.mxu0 %vm360_vm1, %v2928_v17 }
 0x9a2   :  { %8018 = vmatpush3.msra.mxu1 %v10370_v18  ;;  %8035 = vmatpush3.msra.mxu0 %v10371_v50 }
 0x9a3   :  { %8019 = vmatprep.subr.mxu1 %v10318_v26  ;;  %8036 = vmatprep.subr.mxu0 %v10318_v26 }
 0x9a4   :  { %8020 = vmatpush3.msra.mxu1 %v10372_v19  ;;  %8037 = vmatpush3.msra.mxu0 %v10373_v20 }
 0x9a5   :  { %8021 = vmatprep.subr.mxu1 %v10318_v26  ;;  %8038 = vmatprep.subr.mxu0 %v10318_v26 }
 0x9a6   :  { %8022 = vmatpush3.msra.mxu1 %v10374_v59  ;;  %8039 = vmatpush3.msra.mxu0 %v10375_v21  ;;  %v2837_v59 = vld [vmem:[%s9352_s7] sm:$0x1]  ;;  %s6950_s7 = sld [smem:[%s10251_s0 + %s8600_s4]]  }
 0x9a7   :  { %8023 = vmatprep.subr.mxu1 %v10318_v26  ;;  %8040 = vmatprep.subr.mxu0 %v10318_v26 }
 0x9a8   :  { %8024 = vmatpush3.msra.mxu1 %v10376_v40  ;;  %8041 = vmatpush3.msra.mxu0 %v10377_v57 }
 0x9a9   :  { %8025 = vmatprep.subr.mxu1 %v10318_v26  ;;  %8042 = vmatprep.subr.mxu0 %v10318_v26 }
 0x9aa   :  { %8026 = vmatpush3.msra.mxu1 %v10378_v56  ;;  %8043 = vmatpush3.msra.mxu0 %v10379_v3 }
 0x9ab   :  { %8027 = vmatprep.subr.mxu1 %v10318_v26  ;;  %8044 = vmatprep.subr.mxu0 %v10318_v26 }
 0x9ac   :  { %8028 = vmatpush3.msra.mxu1 %v10380_v5  ;;  %8045 = vmatpush3.msra.mxu0 %v10381_v7 }
 0x9ad   :  { %8029 = vmatprep.subr.mxu1 %v10318_v26  ;;  %8046 = vmatprep.subr.mxu0 %v10318_v26 }
 0x9ae   :  { %8030 = vmatpush3.msra.mxu1 %v10382_v2  ;;  %8047 = vmatpush3.msra.mxu0 %v10383_v4 }
 0x9af   :  { %8032 = vmatmul.mubr.msk.f32.vlgmr.msra.gmra.mxu1 %vm360_vm1, %v3010_v9  ;;  %8048 = vmatprep.subr.mxu0 %v10318_v26 }
 0x9b0   :  { %8053 = vmatprep.subr.mxu1 %v10318_v26  ;;  %8049 = vmatpush3.msra.mxu0 %v10384_v22 }
 0x9b1   :  { %8050 = vmatprep.mubr.msk.f32.mxu0 %vm8579_vm2, %v10318_v26  ;;  %8054 = vmatpush3.msra.mxu1 %v10385_v28 }
 0x9b2   :  { %8051 = vmatmul.mubr.msk.f32.vlgmr.msra.gmra.mxu0 %vm360_vm1, %v3092_v25  ;;  %8055 = vmatprep.subr.mxu1 %v10318_v26 }
 0x9b3   :  { %8072 = vmatprep.subr.mxu0 %v10318_v26  ;;  %8056 = vmatpush3.msra.mxu1 %v10386_v29 }
 0x9b4   :  { %8073 = vmatpush3.msra.mxu0 %v10387_v30  ;;  %8057 = vmatprep.subr.mxu1 %v10318_v26 }
 0x9b5   :  { %8074 = vmatprep.subr.mxu0 %v10318_v26  ;;  %8058 = vmatpush3.msra.mxu1 %v10388_v31 }
 0x9b6   :  { %8075 = vmatpush3.msra.mxu0 %v10389_v32  ;;  %8059 = vmatprep.subr.mxu1 %v10318_v26 }
 0x9b7   :  { %8076 = vmatprep.subr.mxu0 %v10318_v26  ;;  %8060 = vmatpush3.msra.mxu1 %v10390_v33 }
 0x9b8   :  { %8077 = vmatpush3.msra.mxu0 %v10391_v34  ;;  %8061 = vmatprep.subr.mxu1 %v10318_v26 }
 0x9b9   :  { %8078 = vmatprep.subr.mxu0 %v10318_v26  ;;  %8062 = vmatpush3.msra.mxu1 %v10392_v35  ;;  %v3592_v35 = vld [vmem:[%s9620_s15 + $0x10] sm:$0xff] }
 0x9ba   :  { %8079 = vmatpush3.msra.mxu0 %v10393_v41  ;;  %8063 = vmatprep.subr.mxu1 %v10318_v26  ;;  %v3591_v41 = vld [vmem:[%s9620_s15 + $0x8] sm:$0xff] }
 0x9bb   :  { %8080 = vmatprep.subr.mxu0 %v10318_v26  ;;  %8064 = vmatpush3.msra.mxu1 %v10394_v23  ;;  %v3590_v23 = vld [vmem:[%s9620_s15] sm:$0xff]  ;;  %s6949_s15 = sld [smem:[%s10251_s0 + %s8602_s12]]  }
 0x9bc   :  { %8081 = vmatpush3.msra.mxu0 %v10395_v42  ;;  %8065 = vmatprep.subr.mxu1 %v10318_v26  ;;  %v7010_v42 = vld [vmem:[%s6921_s19] ss:$0 sm:$0xff]  ;;  %s6930_s19 = sld [smem:[%s10251_s0 + %s8603_s16]]  }
 0x9bd   :  { %8082 = vmatprep.subr.mxu0 %v10318_v26  ;;  %8066 = vmatpush3.msra.mxu1 %v10396_v52 }
 0x9be   :  { %8083 = vmatpush3.msra.mxu0 %v10397_v6  ;;  %8067 = vmatprep.subr.mxu1 %v10318_v26 }
 0x9bf   :  { %8084 = vmatprep.subr.mxu0 %v10318_v26  ;;  %8068 = vmatpush3.msra.mxu1 %v10398_v43 }
 0x9c0   :  { %8069 = vmatprep.mubr.msk.f32.mxu1 %vm8579_vm2, %v10318_v26  ;;  %8085 = vmatpush3.msra.mxu0 %v10399_v63  ;;  %v3680_v63 = vld [vmem:[%s6924_s23 + $0x18] sm:$0xff] }
 0x9c1   :  { %8070 = vmatmul.mubr.msk.f32.vlgmr.msra.gmra.mxu1 %vm360_vm1, %v3174_v8  ;;  %8086 = vmatprep.subr.mxu0 %v10318_v26 }
 0x9c2   :  { %8091 = vmatprep.subr.mxu1 %v10318_v26  ;;  %8087 = vmatpush3.msra.mxu0 %v10400_v48 }
 0x9c3   :  { %8088 = vmatprep.mubr.msk.f32.mxu0 %vm8579_vm2, %v10318_v26  ;;  %8092 = vmatpush3.msra.mxu1 %v10401_v60  ;;  %v3678_v60 = vld [vmem:[%s6924_s23 + $0x8] sm:$0xff] }
 0x9c4   :  { %8089 = vmatmul.mubr.msk.f32.vlgmr.msra.gmra.mxu0 %vm360_vm1, %v3256_v58  ;;  %8093 = vmatprep.subr.mxu1 %v10318_v26  ;;  %v3679_v58 = vld [vmem:[%s6924_s23 + $0x10] sm:$0xff] }
 0x9c5   :  { %8110 = vmatprep.subr.mxu0 %v10318_v26  ;;  %8094 = vmatpush3.msra.mxu1 %v10402_v61  ;;  %v3677_v61 = vld [vmem:[%s6924_s23] sm:$0xff]  ;;  %s6929_s23 = sld [smem:[%s10251_s0 + %s8604_s20]]  }
 0x9c6   :  { %8111 = vmatpush3.msra.mxu0 %v10403_v62  ;;  %8095 = vmatprep.subr.mxu1 %v10318_v26  ;;  %v3767_v62 = vld [vmem:[%s6926_s27 + $0x18] sm:$0xff] }
 0x9c7   :  { %8112 = vmatprep.subr.mxu0 %v10318_v26  ;;  %8096 = vmatpush3.msra.mxu1 %v10404_v0  ;;  %v7012_v0 = vld [vmem:[%s6923_s1] ss:$0 sm:$0xff]  ;;  %s9749_s1 = sld [smem:[%s10251_s0 + %s8606_s28]]  }
 0x9c8   :  { %8113 = vmatpush3.msra.mxu0 %v10405_v1  ;;  %8097 = vmatprep.subr.mxu1 %v10318_v26 }
 0x9c9   :  { %8114 = vmatprep.subr.mxu0 %v10318_v26  ;;  %8098 = vmatpush3.msra.mxu1 %v10406_v36 }
 0x9ca   :  { %8115 = vmatpush3.msra.mxu0 %v10407_v37  ;;  %8099 = vmatprep.subr.mxu1 %v10318_v26 }
 0x9cb   :  { %8116 = vmatprep.subr.mxu0 %v10318_v26  ;;  %8100 = vmatpush3.msra.mxu1 %v10408_v38 }
 0x9cc   :  { %8117 = vmatpush3.msra.mxu0 %v10409_v39  ;;  %8101 = vmatprep.subr.mxu1 %v10318_v26 }
 0x9cd   :  { %8118 = vmatprep.subr.mxu0 %v10318_v26  ;;  %8102 = vmatpush3.msra.mxu1 %v10410_v44  ;;  %v3766_v44 = vld [vmem:[%s6926_s27 + $0x10] sm:$0xff] }
 0x9ce   :  { %8119 = vmatpush3.msra.mxu0 %v10411_v45  ;;  %8103 = vmatprep.subr.mxu1 %v10318_v26  ;;  %v3765_v45 = vld [vmem:[%s6926_s27 + $0x8] sm:$0xff] }
 0x9cf   :  { %8120 = vmatprep.subr.mxu0 %v10318_v26  ;;  %8104 = vmatpush3.msra.mxu1 %v9258_v54  ;;  %v3420_v54 = vrot.slane %v9476_v16, 7 }
 0x9d0   :  { %8121 = vmatpush3.msra.mxu0 %v10412_v46  ;;  %8105 = vmatprep.subr.mxu1 %v10318_v26  ;;  %v3764_v46 = vld [vmem:[%s6926_s27] sm:$0xff]  ;;  %s6932_s27 = sld [smem:[%s10251_s0 + %s8605_s24]]  }
 0x9d1   :  { %8122 = vmatprep.subr.mxu0 %v10318_v26  ;;  %8106 = vmatpush3.msra.mxu1 %v10413_v47  ;;  %v7014_v47 = vld [vmem:[%s6925_s5] ss:$0 sm:$0xff]  ;;  %s6931_s5 = sld [smem:[%s10251_s0 + %s8607_s2]]  }
 0x9d2   :  { %8107 = vmatprep.mubr.msk.f32.mxu1 %vm8579_vm2, %v10318_v26  ;;  %8123 = vmatpush3.msra.mxu0 %v9273_v53  ;;  %v3506_v53 = vld [vmem:[%s6920_s11 + $0x38] sm:$0xff] }
 0x9d3   :  { %8108 = vmatmul.mubr.msk.f32.vlgmr.msra.gmra.mxu1 %vm360_vm1, %v3338_v49  ;;  %8124 = vmatprep.subr.mxu0 %v10318_v26 }
 0x9d4   :  { %8125 = vmatpush3.msra.mxu0 %v9284_v55  ;;  %8126 = vmatprep.mubr.msk.f32.mxu0 %vm8579_vm2, %v10318_v26  ;;  %v3505_v55 = vld [vmem:[%s6920_s11 + $0x30] sm:$0xff]  ;;  %s6951_s11 = sld [smem:[%s10251_s0 + %s8601_s8]]  }
 0x9d5   :  { %8127 = vmatmul.mubr.msk.f32.vlgmr.msra.gmra.mxu0 %vm360_vm1, %v3420_v54  ;;  %8129 = vmatprep.subr.mxu1 %v10318_v26 }
 0x9d6   :  { %8145 = vmatprep.mubr.msk.f32.mxu1 %vm8579_vm2, %v10318_v26  ;;  %8148 = vmatprep.subr.mxu0 %v10318_v26 }
 0x9d7   :  { %8156 = vmatprep.mubr.msk.f32.mxu0 %vm8579_vm2, %v10318_v26  ;;  %8130 = vmatpush3.msra.mxu1 %v3506_v53 }
 0x9d8   :  { %8131 = vmatprep.subr.mxu1 %v10318_v26  ;;  %8149 = vmatpush3.msra.mxu0 %v3593_v13  ;;  %v7016_v13 = vld [vmem:[%s6927_s17] ss:$0 sm:$0xff]  ;;  %s6933_s17 = sld [smem:[%s10251_s0 + %s8610_s14]]  }
 0x9d9   :  { %8132 = vmatpush3.msra.mxu1 %v3505_v55  ;;  %8150 = vmatprep.subr.mxu0 %v10318_v26 }
 0x9da   :  { %8133 = vmatprep.subr.mxu1 %v10318_v26  ;;  %8151 = vmatpush3.msra.mxu0 %v3592_v35 }
 0x9db   :  { %8134 = vmatpush3.msra.mxu1 %v3504_v24  ;;  %8152 = vmatprep.subr.mxu0 %v10318_v26 }
 0x9dc   :  { %8135 = vmatprep.subr.mxu1 %v10318_v26  ;;  %8153 = vmatpush3.msra.mxu0 %v3591_v41 }
 0x9dd   :  { %8136 = vmatpush3.msra.mxu1 %v3503_v27  ;;  %8154 = vmatprep.subr.mxu0 %v10318_v26  ;;  %v3852_v27 = vld [vmem:[%s6944_s9 + $0x18] sm:$0xff] }
 0x9de   :  { %8137 = vmatprep.subr.mxu1 %v10318_v26  ;;  %8155 = vmatpush3.msra.mxu0 %v3590_v23 }
 0x9df   :  { %8138 = vmatpush3.msra.mxu1 %v3502_v51  ;;  %8159 = vmatprep.subr.mxu0 %v10318_v26  ;;  %v3851_v51 = vld [vmem:[%s6944_s9 + $0x10] sm:$0xff] }
 0x9e0   :  { %8139 = vmatprep.subr.mxu1 %v10318_v26 }
 0x9e1   :  { %8140 = vmatpush3.msra.mxu1 %v3501_v10  ;;  %v3850_v10 = vld [vmem:[%s6944_s9 + $0x8] sm:$0xff] }
 0x9e2   :  { %8141 = vmatprep.subr.mxu1 %v10318_v26 }
 0x9e3   :  { %8142 = vmatpush3.msra.mxu1 %v3500_v11  ;;  %v3849_v11 = vld [vmem:[%s6944_s9] sm:$0xff]  ;;  %s6953_s9 = sld [smem:[%s10251_s0 + %s8608_s6]]  }
 0x9e4   :  { %8143 = vmatprep.subr.mxu1 %v10318_v26 }
 0x9e5   :  { %8144 = vmatpush3.msra.mxu1 %v3499_v12  ;;  %v3939_v12 = vld [vmem:[%s6946_s13 + $0x18] sm:$0xff] }
 0x9e6   :  { %8170 = vmatprep.subr.mxu1 %v10318_v26 }
 0xa5f   :  { %v2915_v14 = vpop.f32.mrf.mxu1 }
 0xa60   :  { %v2919_v40 = vadd.f32 %v2915_v14, %v2837_v59 }
 0xa61   :  { %v7995_v15 = vpop.f32.mrf.mxu1  ;;  %v2997_v16 = vpop.f32.mrf.mxu0 }
 0xa62   :  { %v3001_v3 = vadd.f32 %v2997_v16, %v2919_v40 }
 0xa63   :  { %v8014_v17 = vpop.f32.mrf.mxu0 }
 0xa6f   :  { %v3079_v18 = vpop.f32.mrf.mxu1 }
 0xa70   :  { %v3083_v7 = vadd.f32 %v3079_v18, %v3001_v3  ;;  %v3938_v18 = vld [vmem:[%s6946_s13 + $0x10] sm:$0xff]  ;;  %v4024_v3 = vld [vmem:[%s6948_s25 + $0x8] sm:$0xff] }
 0xa71   :  { %v8033_v50 = vpop.f32.mrf.mxu1 }
 0xa72   :  { %v3161_v19 = vpop.f32.mrf.mxu0  ;;  %v3937_v50 = vld [vmem:[%s6946_s13 + $0x8] sm:$0xff] }
 0xa73   :  { %v3165_v9 = vadd.f32 %v3161_v19, %v3083_v7  ;;  %v3936_v19 = vld [vmem:[%s6946_s13] sm:$0xff]  ;;  %s9769_s13 = sld [smem:[%s10251_s0 + %s8609_s10]]  }
 0xa74   :  { %v8052_v20 = vpop.f32.mrf.mxu0  ;;  %v7020_v7 = vld [vmem:[%s6947_s29] ss:$0 sm:$0xff]  ;;  %s9819_s29 = sld [smem:[%s10251_s0 + %s8613_s26]]  }
 0xa75   :  { %v7018_v20 = vld [vmem:[%s6945_s21] ss:$0 sm:$0xff]  ;;  %s6935_s21 = sld [smem:[%s10251_s0 + %s8611_s18]]  }
 0xa81   :  { %v3243_v21 = vpop.f32.mrf.mxu1 }
 0xa82   :  { %v3247_v2 = vadd.f32 %v3243_v21, %v3165_v9 }
 0xa83   :  { %v8071_v57 = vpop.f32.mrf.mxu1 }
 0xa84   :  { %v3325_v56 = vpop.f32.mrf.mxu0 }
 0xa85   :  { %v3329_v4 = vadd.f32 %v3325_v56, %v3247_v2 }
 0xa86   :  { %v8090_v5 = vpop.f32.mrf.mxu0 }
 0xa87   :  { %v4023_v5 = vld [vmem:[%s6948_s25] sm:$0xff]  ;;  %s6937_s25 = sld [smem:[%s10251_s0 + %s8612_s22]]  }
 0xa93   :  { %v3407_v22 = vpop.f32.mrf.mxu1 }
 0xa94   :  { %v3411_v25 = vadd.f32 %v3407_v22, %v3329_v4 }
 0xa95   :  { %v8109_v28 = vpop.f32.mrf.mxu1  ;;  %v3489_v29 = vpop.f32.mrf.mxu0 }
 0xa96   :  { %v3493_v30 = vadd.f32 %v3489_v29, %v3411_v25  ;;  %v4196_v25 = vld [vmem:[%s6928_s3 + $0x18] sm:$0xff]  ;;  %v4195_v29 = vld [vmem:[%s6928_s3 + $0x10] sm:$0xff] }
 0xa97   :  { %v8128_v31 = vpop.f32.mrf.mxu0 }
 0xa98   :  { %3494 = vst.msk [vmem:[#allocation2 + $0x1] sm:$0x1] %vm1835_vm7, %v3493_v30  ;;  %v4194_v30 = vld [vmem:[%s6928_s3 + $0x8] sm:$0xff]  ;;  %v4193_v31 = vld [vmem:[%s6928_s3] sm:$0xff] }
 0xa9f   :  { %v3495_v32 = vld [vmem:[#allocation2] sm:$0x3] }
 0xaa0   :  { %vm3496_vm11 = vcmp.ge.f32.partialorder %v3495_v32, 0.0  ;;  %v3497_v33 = vmul.f32 0.2, %v3495_v32 }
 0xaa2   :  { %v3498_v34 = vsel %vm3496_vm11, %v3495_v32, %v3497_v33  ;;  %v4108_v32 = vld [vmem:[%s6950_s7] sm:$0xff]  ;;  %v91_v33 = vstv %s6951_s11 }
 0xaa3   :  { %8146 = vmatmul.mubr.msk.f32.vlgmr.msra.gmra.mxu1 %vm360_vm1, %v3498_v34  ;;  %92 = vst [vmem:[#allocation4] sm:$0x1] %v91_v33  ;;  %v7022_v34 = vld [vmem:[%s6949_s15] ss:$0 sm:$0xff] }
 0xaa4   :  { %8178 = vmatprep.mubr.msk.f32.mxu1 %vm8579_vm2, %v10318_v26  ;;  %8171 = vmatpush3.msra.mxu1 %v3767_v62  ;;  %v4546_v33 = vld [vmem:[%s9769_s13 + $0x40] sm:$0xff] }
 0xaa5   :  { %8172 = vmatprep.subr.mxu1 %v10318_v26 }
 0xaa6   :  { %8173 = vmatpush3.msra.mxu1 %v3766_v44 }
 0xaa7   :  { %8174 = vmatprep.subr.mxu1 %v10318_v26 }
 0xaa8   :  { %8175 = vmatpush3.msra.mxu1 %v3765_v45 }
 0xaa9   :  { %8176 = vmatprep.subr.mxu1 %v10318_v26 }
 0xaaa   :  { %8177 = vmatpush3.msra.mxu1 %v3764_v46  ;;  %v7024_v44 = vld [vmem:[#allocation4] ss:$0 sm:$0xff] }
 0xaab   :  { %8192 = vmatprep.subr.mxu1 %v10318_v26 }
 0xb63   :  { %v3583_v52 = vpop.f32.mrf.mxu1 }
 0xb64   :  { %v3584_v6 = vadd.f32 %v7010_v42, %v3583_v52  ;;  %v4280_v52 = vld [vmem:[%s6930_s19 + $0x18] sm:$0xff] }
 0xb65   :  { %v8147_v43 = vpop.f32.mrf.mxu1 }
 0xb66   :  { %vm3587_vm12 = vcmp.ge.f32.partialorder %v3584_v6, 0.0  ;;  %v3588_v8 = vmul.f32 0.2, %v3584_v6  ;;  %v7026_v43 = vld [vmem:[%s6929_s23] ss:$0 sm:$0xff] }
 0xb68   :  { %v3589_v48 = vsel %vm3587_vm12, %v3584_v6, %v3588_v8  ;;  %v4279_v8 = vld [vmem:[%s6930_s19 + $0x10] sm:$0xff] }
 0xb69   :  { %8157 = vmatmul.mubr.msk.f32.vlgmr.msra.gmra.mxu0 %vm868_vm5, %v3589_v48  ;;  %v4278_v48 = vld [vmem:[%s6930_s19 + $0x8] sm:$0xff] }
 0xb6a   :  { %8160 = vmatpush3.msra.mxu0 %v3680_v63  ;;  %8167 = vmatprep.mubr.msk.f32.mxu0 %vm8579_vm2, %v10318_v26 }
 0xb6b   :  { %8161 = vmatprep.subr.mxu0 %v10318_v26 }
 0xb6c   :  { %8162 = vmatpush3.msra.mxu0 %v3679_v58 }
 0xb6d   :  { %8163 = vmatprep.subr.mxu0 %v10318_v26 }
 0xb6e   :  { %8164 = vmatpush3.msra.mxu0 %v3678_v60 }
 0xb6f   :  { %8165 = vmatprep.subr.mxu0 %v10318_v26 }
 0xb70   :  { %8166 = vmatpush3.msra.mxu0 %v3677_v61  ;;  %v4277_v61 = vld [vmem:[%s6930_s19] sm:$0xff] }
 0xb71   :  { %8181 = vmatprep.subr.mxu0 %v10318_v26 }
 0xc29   :  { %v3670_v1 = vpop.f32.mrf.mxu0 }
 0xc2a   :  { %v3671_v36 = vadd.f32 %v7012_v0, %v3670_v1  ;;  %v4367_v1 = vld [vmem:[%s6932_s27 + $0x18] sm:$0xff] }
 0xc2b   :  { %v8158_v37 = vpop.f32.mrf.mxu0 }
 0xc2c   :  { %vm3674_vm13 = vcmp.ge.f32.partialorder %v3671_v36, 0.0  ;;  %v3675_v38 = vmul.f32 0.2, %v3671_v36  ;;  %v4365_v37 = vld [vmem:[%s6932_s27 + $0x8] sm:$0xff] }
 0xc2e   :  { %v3676_v39 = vsel %vm3674_vm13, %v3671_v36, %v3675_v38  ;;  %v4366_v36 = vld [vmem:[%s6932_s27 + $0x10] sm:$0xff]  ;;  %v4364_v38 = vld [vmem:[%s6932_s27] sm:$0xff] }
 0xc2f   :  { %8168 = vmatmul.mubr.msk.f32.vlgmr.msra.gmra.mxu0 %vm868_vm5, %v3676_v39  ;;  %v4454_v39 = vld [vmem:[%s9749_s1 + $0x18] sm:$0xff] }
 0xc30   :  { %8189 = vmatprep.mubr.msk.f32.mxu0 %vm8579_vm2, %v10318_v26  ;;  %8182 = vmatpush3.msra.mxu0 %v3852_v27 }
 0xc31   :  { %8183 = vmatprep.subr.mxu0 %v10318_v26 }
 0xc32   :  { %8184 = vmatpush3.msra.mxu0 %v3851_v51 }
 0xc33   :  { %8185 = vmatprep.subr.mxu0 %v10318_v26 }
 0xc34   :  { %8186 = vmatpush3.msra.mxu0 %v3850_v10  ;;  %v4453_v10 = vld [vmem:[%s9749_s1 + $0x10] sm:$0xff] }
 0xc35   :  { %8187 = vmatprep.subr.mxu0 %v10318_v26 }
 0xc36   :  { %8188 = vmatpush3.msra.mxu0 %v3849_v11  ;;  %v4452_v11 = vld [vmem:[%s9749_s1 + $0x8] sm:$0xff] }
 0xc37   :  { %8203 = vmatprep.subr.mxu0 %v10318_v26 }
 0xcef   :  { %v3757_v49 = vpop.f32.mrf.mxu0 }
 0xcf0   :  { %v3758_v54 = vadd.f32 %v7014_v47, %v3757_v49  ;;  %v7028_v49 = vld [vmem:[%s6931_s5] ss:$0 sm:$0xff]  ;;  %s8616_s5 = smov 31  }
 0xcf1   :  { %v8169_v53 = vpop.f32.mrf.mxu0  ;;  %s9987_s8 = sld [smem:[%s10251_s0 + %s8616_s5]]  }
 0xcf2   :  { %vm3761_vm14 = vcmp.ge.f32.partialorder %v3758_v54, 0.0  ;;  %v3762_v55 = vmul.f32 0.2, %v3758_v54 }
 0xcf4   :  { %v3763_v24 = vsel %vm3761_vm14, %v3758_v54, %v3762_v55 }
 0xcf5   :  { %8179 = vmatmul.mubr.msk.f32.vlgmr.msra.gmra.mxu1 %vm868_vm5, %v3763_v24 }
 0xcf6   :  { %8200 = vmatprep.mubr.msk.f32.mxu1 %vm8579_vm2, %v10318_v26  ;;  %8193 = vmatpush3.msra.mxu1 %v3939_v12  ;;  %v4451_v12 = vld [vmem:[%s9749_s1] sm:$0xff]  ;;  %s8615_s1 = smov 28  }
 0xcf7   :  { %8194 = vmatprep.subr.mxu1 %v10318_v26  ;;  %s9842_s4 = sld [smem:[%s10251_s0 + %s8615_s1]]  }
 0xcf8   :  { %8195 = vmatpush3.msra.mxu1 %v3938_v18  ;;  %v4559_v18 = vld [vmem:[%s9769_s13 + $0xa8] sm:$0xff] }
 0xcf9   :  { %8196 = vmatprep.subr.mxu1 %v10318_v26 }
 0xcfa   :  { %8197 = vmatpush3.msra.mxu1 %v3937_v50  ;;  %v4558_v50 = vld [vmem:[%s9769_s13 + $0xa0] sm:$0xff] }
 0xcfb   :  { %8198 = vmatprep.subr.mxu1 %v10318_v26 }
 0xcfc   :  { %8199 = vmatpush3.msra.mxu1 %v3936_v19  ;;  %v4555_v19 = vld [vmem:[%s9769_s13 + $0x88] sm:$0xff] }
 0xcfd   :  { %8210 = vmatprep.subr.mxu1 %v10318_v26 }
 0xdb5   :  { %v3844_v14 = vpop.f32.mrf.mxu1 }
 0xdb6   :  { %v3845_v15 = vadd.f32 %v7016_v13, %v3844_v14  ;;  %v4567_v13 = vld [vmem:[%s9769_s13 + $0xe8] sm:$0xff]  ;;  %v4569_v14 = vld [vmem:[%s9769_s13 + $0xf8] sm:$0xff] }
 0xdb7   :  { %v8180_v16 = vpop.f32.mrf.mxu1 }
 0xdb8   :  { %8556 = vtanh.f32 %v3845_v15  ;;  %v4566_v15 = vld [vmem:[%s9769_s13 + $0xe0] sm:$0xff]  ;;  %v4563_v16 = vld [vmem:[%s9769_s13 + $0xc8] sm:$0xff] }
 0xdc5   :  { %v8557_v17 = vpop.eup %8556 }
 0xdc6   :  { %8190 = vmatmul.mubr.msk.f32.vlgmr.msra.gmra.mxu0 %vm868_vm5, %v8557_v17 }
 0xdc7   :  { %8207 = vmatprep.mubr.msk.f32.mxu0 %vm8579_vm2, %v10318_v26  ;;  %8204 = vmatpush3.msra.mxu0 %v4024_v3 }
 0xdc8   :  { %8205 = vmatprep.subr.mxu0 %v10318_v26 }
 0xdc9   :  { %8206 = vmatpush3.msra.mxu0 %v4023_v5 }
 0xdca   :  { %8215 = vmatprep.subr.mxu0 %v10318_v26 }
 0xe86   :  { %v3929_v59 = vpop.f32.mrf.mxu0 }
 0xe87   :  { %v3930_v21 = vadd.f32 %v7018_v20, %v3929_v59  ;;  %v4554_v20 = vld [vmem:[%s9769_s13 + $0x80] sm:$0xff]  ;;  %v4551_v59 = vld [vmem:[%s9769_s13 + $0x68] sm:$0xff] }
 0xe88   :  { %v8191_v40 = vpop.f32.mrf.mxu0 }
 0xe89   :  { %vm3933_vm15 = vcmp.ge.f32.partialorder %v3930_v21, 0.0  ;;  %v3934_v57 = vmul.f32 0.2, %v3930_v21  ;;  %v7030_v40 = vld [vmem:[%s6933_s17] ss:$0 sm:$0xff]  ;;  %s8619_s17 = smov 32  }
 0xe8a   :  { %s6943_s20 = sld [smem:[%s10251_s0 + %s8619_s17]]  }
 0xe8b   :  { %v3935_v56 = vsel %vm3933_vm15, %v3930_v21, %v3934_v57  ;;  %v4550_v21 = vld [vmem:[%s9769_s13 + $0x60] sm:$0xff] }
 0xe8c   :  { %8201 = vmatmul.mubr.msk.f32.vlgmr.msra.gmra.mxu1 %vm868_vm5, %v3935_v56 }
 0xe8d   :  { %8212 = vmatprep.mubr.msk.f32.mxu1 %vm8579_vm2, %v10318_v26  ;;  %8211 = vmatpush3.msra.mxu1 %v4108_v32  ;;  %v4549_v32 = vld [vmem:[%s9769_s13 + $0x58] sm:$0xff] }
 0xe8e   :  { %8226 = vmatprep.subr.mxu1 %v10318_v26 }
 0xf4c   :  { %v4016_v9 = vpop.f32.mrf.mxu1 }
 0xf4d   :  { %v4017_v2 = vadd.f32 %v7020_v7, %v4016_v9  ;;  %v4568_v7 = vld [vmem:[%s9769_s13 + $0xf0] sm:$0xff] }
 0xf4e   :  { %v8202_v4 = vpop.f32.mrf.mxu1 }
 0xf4f   :  { %vm4020_vm3 = vcmp.ge.f32.partialorder %v4017_v2, 0.0  ;;  %v4021_v22 = vmul.f32 0.2, %v4017_v2  ;;  %v4564_v4 = vld [vmem:[%s9769_s13 + $0xd0] sm:$0xff] }
 0xf51   :  { %v4022_v28 = vsel %vm4020_vm3, %v4017_v2, %v4021_v22  ;;  %v4565_v2 = vld [vmem:[%s9769_s13 + $0xd8] sm:$0xff]  ;;  %vm5834_vm3 = vcmask 517121  }
 0xf52   :  { %8208 = vmatmul.mubr.msk.f32.vlgmr.msra.gmra.mxu0 %vm187_vm0, %v4022_v28  ;;  %v4561_v22 = vld [vmem:[%s9769_s13 + $0xb8] sm:$0xff] }
 0xf53   :  { %8216 = vmatpush3.msra.mxu0 %v4196_v25  ;;  %8223 = vmatprep.mubr.msk.f32.mxu0 %vm8579_vm2, %v10318_v26  ;;  %v4560_v25 = vld [vmem:[%s9769_s13 + $0xb0] sm:$0xff]  ;;  %v4557_v28 = vld [vmem:[%s9769_s13 + $0x98] sm:$0xff] }
 0xf54   :  { %8217 = vmatprep.subr.mxu0 %v10318_v26 }
 0xf55   :  { %8218 = vmatpush3.msra.mxu0 %v4195_v29  ;;  %v4556_v29 = vld [vmem:[%s9769_s13 + $0x90] sm:$0xff] }
 0xf56   :  { %8219 = vmatprep.subr.mxu0 %v10318_v26 }
 0xf57   :  { %8220 = vmatpush3.msra.mxu0 %v4194_v30  ;;  %v4553_v30 = vld [vmem:[%s9769_s13 + $0x78] sm:$0xff] }
 0xf58   :  { %8221 = vmatprep.subr.mxu0 %v10318_v26 }
 0xf59   :  { %8222 = vmatpush3.msra.mxu0 %v4193_v31  ;;  %v4552_v31 = vld [vmem:[%s9769_s13 + $0x70] sm:$0xff] }
 0xf5a   :  { %8224 = vmatmul.mubr.msk.f32.vlgmr.msra.gmra.mxu0 %vm868_vm5, %v8557_v17  ;;  %8237 = vmatprep.subr.mxu0 %v10318_v26  ;;  %v4562_v17 = vld [vmem:[%s9769_s13 + $0xc0] sm:$0xff] }
 0xf5b   :  { %8245 = vmatprep.mubr.msk.f32.mxu0 %vm8579_vm2, %v10318_v26  ;;  %8238 = vmatpush3.msra.mxu0 %v4367_v1 }
 0xf5c   :  { %8239 = vmatprep.subr.mxu0 %v10318_v26 }
 0xf5d   :  { %8240 = vmatpush3.msra.mxu0 %v4366_v36 }
 0xf5e   :  { %8241 = vmatprep.subr.mxu0 %v10318_v26 }
 0xf5f   :  { %8242 = vmatpush3.msra.mxu0 %v4365_v37 }
 0xf60   :  { %8243 = vmatprep.subr.mxu0 %v10318_v26 }
 0xf61   :  { %8244 = vmatpush3.msra.mxu0 %v4364_v38  ;;  %v4570_v38 = vld [vmem:[%s6937_s25] sm:$0xf] }
 0xf62   :  { %4611 = vmatprep.subr.mxu0 %v4567_v13 }
0x1012   :  { %v4101_v35 = vpop.f32.mrf.mxu0 }
0x1013   :  { %v4102_v41 = vadd.f32 %v7022_v34, %v4101_v35  ;;  %v4548_v34 = vld [vmem:[%s9769_s13 + $0x50] sm:$0xff]  ;;  %v4543_v35 = vld [vmem:[%s9769_s13 + $0x28] sm:$0xff] }
0x1014   :  { %v8209_v23 = vpop.f32.mrf.mxu0 }
0x1015   :  { %vm4105_vm4 = vcmp.ge.f32.partialorder %v4102_v41, 0.0  ;;  %v4106_v42 = vmul.f32 0.2, %v4102_v41  ;;  %v4542_v23 = vld [vmem:[%s9769_s13 + $0x20] sm:$0xff] }
0x1017   :  { %v4107_v6 = vsel %vm4105_vm4, %v4102_v41, %v4106_v42  ;;  %v4545_v41 = vld [vmem:[%s9769_s13 + $0x38] sm:$0xff]  ;;  %v4544_v42 = vld [vmem:[%s9769_s13 + $0x30] sm:$0xff] }
0x1018   :  { %8213 = vmatmul.mubr.msk.f32.vlgmr.msra.gmra.mxu1 %vm4116_vm6, %v4107_v6  ;;  %v4541_v6 = vld [vmem:[%s9769_s13 + $0x18] sm:$0xff] }
0x1019   :  { %8227 = vmatpush3.msra.mxu1 %v4280_v52  ;;  %8234 = vmatprep.mubr.msk.f32.mxu1 %vm8579_vm2, %v10318_v26  ;;  %v4539_v52 = vld [vmem:[%s9769_s13 + $0x8] sm:$0xff] }
0x101a   :  { %v4270_v63 = vpop.f32.mrf.mxu0  ;;  %8228 = vmatprep.subr.mxu1 %v10318_v26 }
0x101b   :  { %v4271_v58 = vadd.f32 %v7026_v43, %v4270_v63  ;;  %8229 = vmatpush3.msra.mxu1 %v4279_v8  ;;  %v4538_v43 = vld [vmem:[%s9769_s13] sm:$0xff]  ;;  %v4540_v8 = vld [vmem:[%s9769_s13 + $0x10] sm:$0xff] }
0x101c   :  { %v8225_v60 = vpop.f32.mrf.mxu0  ;;  %8230 = vmatprep.subr.mxu1 %v10318_v26  ;;  %v7032_v63 = vld [vmem:[%s6935_s21] ss:$0 sm:$0xff]  ;;  %s8620_s21 = smov 41  }
0x101d   :  { %vm4274_vm8 = vcmp.ge.f32.partialorder %v4271_v58, 0.0  ;;  %v4275_v62 = vmul.f32 0.2, %v4271_v58  ;;  %8231 = vmatpush3.msra.mxu1 %v4278_v48  ;;  %s10204_s24 = sld [smem:[%s10251_s0 + %s8620_s21]]  }
0x101e   :  { %8232 = vmatprep.subr.mxu1 %v10318_v26 }
0x101f   :  { %v4276_v0 = vsel %vm4274_vm8, %v4271_v58, %v4275_v62  ;;  %8233 = vmatpush3.msra.mxu1 %v4277_v61 }
0x1020   :  { %8235 = vmatmul.mubr.msk.f32.vlgmr.msra.gmra.mxu1 %vm868_vm5, %v4276_v0  ;;  %8248 = vmatprep.subr.mxu1 %v10318_v26  ;;  %v4572_v0 = vlaneseq }
0x1021   :  { %8256 = vmatprep.mubr.msk.f32.mxu1 %vm8579_vm2, %v10318_v26  ;;  %8249 = vmatpush3.msra.mxu1 %v4454_v39 }
0x1022   :  { %8250 = vmatprep.subr.mxu1 %v10318_v26  ;;  %v4573_v1 = vshrl.u32 %v4572_v0, 7  ;;  %v9992_v0 = vld [vmem:[%s9842_s4 + $0x88] sm:$0xff] }
0x1023   :  { %8251 = vmatpush3.msra.mxu1 %v4453_v10 }
0x1024   :  { %8252 = vmatprep.subr.mxu1 %v10318_v26  ;;  %v4574_v36 = vsub.s32 0, %v4573_v1  ;;  %v4582_v37 = vsub.s32 2, %v4573_v1  ;;  %v4578_v39 = vsub.s32 1, %v4573_v1 }
0x1025   :  { %8253 = vmatpush3.msra.mxu1 %v4452_v11 }
0x1026   :  { %8254 = vmatprep.subr.mxu1 %v10318_v26 }
0x1027   :  { %8255 = vmatpush3.msra.mxu1 %v4451_v12 }
0x1028   :  { %4682 = vmatprep.subr.mxu1 %v4569_v14 }
0x10d8   :  { %v4186_v45 = vpop.f32.mrf.mxu1 }
0x10d9   :  { %v4187_v46 = vadd.f32 %v7024_v44, %v4186_v45  ;;  %v4586_v44 = vsub.s32 3, %v4573_v1  ;;  %v4575_v45 = vrot.slane %v4570_v38, %v4574_v36  ;;  %v9996_v1 = vld [vmem:[%s9842_s4 + $0x80] sm:$0xff]  ;;  %v10002_v36 = vld [vmem:[%s9987_s8 + $0x18] sm:$0xff] }
0x10da   :  { %v8214_v47 = vpop.f32.mrf.mxu1 }
0x10db   :  { %8558 = vtanh.f32 %v4187_v46  ;;  %v4583_v46 = vrot.slane %v4570_v38, %v4582_v37  ;;  %v4579_v47 = vrot.slane %v4570_v38, %v4578_v39 }
0x10e0   :  { %v4357_v54 = vpop.f32.mrf.mxu1 }
0x10e1   :  { %v4358_v53 = vadd.f32 %v7028_v49, %v4357_v54  ;;  %v4587_v49 = vrot.slane %v4570_v38, %v4586_v44 }
0x10e2   :  { %v8236_v55 = vpop.f32.mrf.mxu1 }
0x10e3   :  { %vm4361_vm2 = vcmp.ge.f32.partialorder %v4358_v53, 0.0  ;;  %v4362_v24 = vmul.f32 0.2, %v4358_v53 }
0x10e5   :  { %v4363_v27 = vsel %vm4361_vm2, %v4358_v53, %v4362_v24 }
0x10e6   :  { %8246 = vmatmul.mubr.msk.f32.vlgmr.msra.gmra.mxu0 %vm868_vm5, %v4363_v27 }
0x10e7   :  { %4659 = vmatprep.mubr.f32.mxu0 %v10318_v26  ;;  %4612 = vmatpush1.msra.mxu0 %v4566_v15 }
0x10e8   :  { %v8559_v51 = vpop.eup %8558  ;;  %4613 = vmatprep.subr.mxu0 %v4563_v16 }
0x10e9   :  { %4192 = vst.msk [vmem:[%s6953_s9] sm:$0x3] %vm4191_vm9, %v8559_v51  ;;  %4614 = vmatpush1.msra.mxu0 %v4562_v17  ;;  %s8617_s9 = smov 30  }
0x10ea   :  { %4615 = vmatprep.subr.mxu0 %v4559_v18  ;;  %v9824_v18 = vld [vmem:[%s9819_s29] sm:$0xff]  ;;  %s10029_s12 = sld [smem:[%s10251_s0 + %s8617_s9]]  }
0x10eb   :  { %4616 = vmatpush1.msra.mxu0 %v4558_v50  ;;  %v9827_v50 = vld [vmem:[%s9819_s29 + $0x10] sm:$0xff] }
0x10ec   :  { %4617 = vmatprep.subr.mxu0 %v4555_v19 }
0x10ed   :  { %4618 = vmatpush1.msra.mxu0 %v4554_v20 }
0x10ee   :  { %4619 = vmatprep.subr.mxu0 %v4551_v59 }
0x10ef   :  { %4620 = vmatpush1.msra.mxu0 %v4550_v21 }
0x11a6   :  { %v4444_v57 = vpop.f32.mrf.mxu0 }
0x11a7   :  { %v4445_v56 = vadd.f32 %v7030_v40, %v4444_v57 }
0x11a8   :  { %v8247_v3 = vpop.f32.mrf.mxu0 }
0x11a9   :  { %vm4448_vm10 = vcmp.ge.f32.partialorder %v4445_v56, 0.0  ;;  %v4449_v5 = vmul.f32 0.2, %v4445_v56  ;;  %v9847_v3 = vld [vmem:[%s9819_s29 + $0x8] sm:$0xff] }
0x11ab   :  { %v4450_v9 = vsel %vm4448_vm10, %v4445_v56, %v4449_v5  ;;  %v9850_v5 = vld [vmem:[%s9819_s29 + $0x18] sm:$0xff] }
0x11ac   :  { %8257 = vmatmul.mubr.msk.f32.vlgmr.msra.gmra.mxu1 %vm868_vm5, %v4450_v9  ;;  %v9858_v9 = vld [vmem:[%s9842_s4 + $0x38] sm:$0xff] }
0x11ad   :  { %4683 = vmatpush1.msra.mxu1 %v4568_v7  ;;  %4730 = vmatprep.mubr.f32.mxu1 %v10318_v26  ;;  %v4547_v26 = vld [vmem:[%s9769_s13 + $0x48] sm:$0xff]  ;;  %v9855_v7 = vld [vmem:[%s9842_s4 + $0x78] sm:$0xff]  ;;  %s8618_s13 = smov 29  }
0x11ae   :  { %4684 = vmatprep.subr.mxu1 %v4565_v2  ;;  %4621 = vmatprep.subr.mxu0 %v4547_v26  ;;  %v9867_v2 = vld [vmem:[%s9842_s4 + $0x70] sm:$0xff]  ;;  %s6940_s16 = sld [smem:[%s10251_s0 + %s8618_s13]]  }
0x11af   :  { %4685 = vmatpush1.msra.mxu1 %v4564_v4  ;;  %4622 = vmatpush1.msra.mxu0 %v4546_v33  ;;  %v9870_v4 = vld [vmem:[%s9842_s4 + $0x30] sm:$0xff]  ;;  %v9916_v33 = vld [vmem:[%s9842_s4 + $0x48] sm:$0xff] }
0x11b0   :  { %4686 = vmatprep.subr.mxu1 %v4561_v22  ;;  %4623 = vmatprep.subr.mxu0 %v4543_v35  ;;  %v9876_v22 = vld [vmem:[%s9842_s4 + $0x68] sm:$0xff]  ;;  %v9906_v26 = vld [vmem:[%s9842_s4 + $0x50] sm:$0xff] }
0x11b1   :  { %4687 = vmatpush1.msra.mxu1 %v4560_v25  ;;  %4624 = vmatpush1.msra.mxu0 %v4542_v23  ;;  %v9880_v25 = vld [vmem:[%s9842_s4 + $0x28] sm:$0xff]  ;;  %v9942_v23 = vld [vmem:[%s9842_s4 + $0xb8] sm:$0xff] }
0x11b2   :  { %4688 = vmatprep.subr.mxu1 %v4557_v28  ;;  %4625 = vmatprep.subr.mxu0 %v4539_v52  ;;  %v9886_v28 = vld [vmem:[%s9842_s4 + $0x60] sm:$0xff]  ;;  %v9932_v35 = vld [vmem:[%s9842_s4 + $0x8] sm:$0xff] }
0x11b3   :  { %4689 = vmatpush1.msra.mxu1 %v4556_v29  ;;  %4626 = vmatpush1.msra.mxu0 %v4538_v43  ;;  %v9890_v29 = vld [vmem:[%s9842_s4 + $0x20] sm:$0xff] }
0x11b4   :  { %4690 = vmatprep.subr.mxu1 %v4553_v30  ;;  %v9896_v30 = vld [vmem:[%s9842_s4 + $0x58] sm:$0xff] }
0x11b5   :  { %4691 = vmatpush1.msra.mxu1 %v4552_v31  ;;  %v9900_v31 = vld [vmem:[%s9842_s4 + $0x18] sm:$0xff] }
0x11b6   :  { %4692 = vmatprep.subr.mxu1 %v4549_v32  ;;  %v9910_v32 = vld [vmem:[%s9842_s4 + $0x10] sm:$0xff] }
0x11b7   :  { %4693 = vmatpush1.msra.mxu1 %v4548_v34  ;;  %v9923_v34 = vld [vmem:[%s9842_s4 + $0x40] sm:$0xff] }
0x11b8   :  { %4694 = vmatprep.subr.mxu1 %v4545_v41  ;;  %v9937_v41 = vld [vmem:[%s9842_s4] sm:$0xff] }
0x11b9   :  { %4695 = vmatpush1.msra.mxu1 %v4544_v42 }
0x11ba   :  { %4696 = vmatprep.subr.mxu1 %v4541_v6 }
0x11bb   :  { %4697 = vmatpush1.msra.mxu1 %v4540_v8  ;;  %v9946_v8 = vld [vmem:[%s9819_s29 + $0x20] sm:$0xff] }
0x126c   :  { %v4531_v48 = vpop.f32.mrf.mxu1 }
0x126d   :  { %v4532_v58 = vadd.f32 %v7032_v63, %v4531_v48  ;;  %v9953_v63 = vld [vmem:[%s9842_s4 + $0xb0] sm:$0xff]  ;;  %v9959_v48 = vld [vmem:[%s9819_s29 + $0x28] sm:$0xff] }
0x126e   :  { %v8258_v60 = vpop.f32.mrf.mxu1 }
0x126f   :  { %vm4535_vm11 = vcmp.ge.f32.partialorder %v4532_v58, 0.0  ;;  %v4536_v61 = vmul.f32 0.2, %v4532_v58  ;;  %v9970_v60 = vld [vmem:[%s9842_s4 + $0xa0] sm:$0xff] }
0x1271   :  { %v4537_v62 = vsel %vm4535_vm11, %v4532_v58, %v4536_v61  ;;  %v9963_v58 = vld [vmem:[%s9842_s4 + $0xa8] sm:$0xff]  ;;  %v9975_v61 = vld [vmem:[%s9842_s4 + $0x98] sm:$0xff] }
0x1272   :  { %7034 = vmatmul.mubr.msk.f32.vlgmr.msra.gmra.mxu0 %vm360_vm1, %v4537_v62  ;;  %7035 = vmatmul.mubr.msk.f32.vlgmr.msra.gmra.mxu1 %vm360_vm1, %v4537_v62  ;;  %v9982_v62 = vld [vmem:[%s9842_s4 + $0x90] sm:$0xff] }
0x1273   :  { %8261 = vmatprep.mubr.msk.f32.mxu0 %vm4116_vm6, %v9824_v18  ;;  %8266 = vmatprep.mubr.msk.f32.mxu1 %vm4116_vm6, %v9827_v50 }
0x1332   :  { %v4661_v54 = vpop.f32.mrf.mxu0  ;;  %v4732_v53 = vpop.f32.mrf.mxu1 }
0x1333   :  { %v4662_v55 = vadd.f32 %v4661_v54, %v4575_v45  ;;  %v4733_v24 = vadd.f32 %v4732_v53, %v4583_v46  ;;  %v10007_v45 = vld [vmem:[%s9987_s8 + $0x10] sm:$0xff]  ;;  %v10012_v46 = vld [vmem:[%s9987_s8 + $0x8] sm:$0xff]  ;;  %v10032_v54 = vld [vmem:[%s10029_s12] sm:$0xff] }
0x1334   :  { %v4663_v27 = vpop.f32.mrf.mxu0  ;;  %v4734_v51 = vpop.f32.mrf.mxu1 }
0x1335   :  { %v4741_v10 = vmul.f32 0.2, %v4662_v55  ;;  %v4743_v11 = vmul.f32 0.2, %v4733_v24  ;;  %v4664_v12 = vadd.f32 %v4663_v27, %v4579_v47  ;;  %v4735_v13 = vadd.f32 %v4734_v51, %v4587_v49  ;;  %v10017_v47 = vld [vmem:[%s9987_s8] sm:$0xff] }
0x1336   :  { %vm4739_vm12 = vcmp.ge.f32.partialorder %v4733_v24, 0.0  ;;  %vm4737_vm13 = vcmp.ge.f32.partialorder %v4662_v55, 0.0  ;;  %v10039_v51 = vld [vmem:[%s6940_s16] ss:$0 sm:$0xff] }
0x1337   :  { %v4742_v14 = vmul.f32 0.2, %v4664_v12  ;;  %v4744_v15 = vmul.f32 0.2, %v4735_v13  ;;  %v4747_v16 = vsel %vm4739_vm12, %v4733_v24, %v4743_v11  ;;  %v4745_v17 = vsel %vm4737_vm13, %v4662_v55, %v4741_v10 }
0x1338   :  { %4763 = vrot.lane.b32.xlu1 %v4747_v16, %s8614_s30  ;;  %4761 = vst.msk [vmem:[#allocation3 + $0x4] sm:$0x1] %vm1835_vm7, %v4747_v16  ;;  %4751 = vrot.lane.b32.xlu0 %v4745_v17, %s8614_s30  ;;  %4749 = vst.msk [vmem:[#allocation3] sm:$0x1] %vm1835_vm7, %v4745_v17  ;;  %vm4740_vm14 = vcmp.ge.f32.partialorder %v4735_v13, 0.0  ;;  %vm4738_vm15 = vcmp.ge.f32.partialorder %v4664_v12, 0.0 }
0x1339   :  { %v4748_v19 = vsel %vm4740_vm14, %v4735_v13, %v4744_v15  ;;  %v4746_v20 = vsel %vm4738_vm15, %v4664_v12, %v4742_v14 }
0x133a   :  { %4767 = vst.msk [vmem:[#allocation3 + $0x6] sm:$0x1] %vm1835_vm7, %v4748_v19  ;;  %4755 = vst.msk [vmem:[#allocation3 + $0x2] sm:$0x1] %vm1835_vm7, %v4746_v20 }
0x133c   :  { %4769 = vrot.lane.b32.xlu1 %v4748_v19, %s8614_s30  ;;  %4757 = vrot.lane.b32.xlu0 %v4746_v20, %s8614_s30 }
0x13aa   :  { %v4764_v59 = vpop.permute.xlu1 %4763  ;;  %v4752_v21 = vpop.permute.xlu0 %4751 }
0x13ab   :  { %4766 = vst.msk [vmem:[#allocation3 + $0x5] sm:$0x1] %vm1835_vm7, %v4764_v59  ;;  %4754 = vst.msk [vmem:[#allocation3 + $0x1] sm:$0x1] %vm1835_vm7, %v4752_v21 }
0x13ae   :  { %v4770_v40 = vpop.permute.xlu1 %4769  ;;  %v4758_v57 = vpop.permute.xlu0 %4757 }
0x13af   :  { %4772 = vst.msk [vmem:[#allocation3 + $0x7] sm:$0x1] %vm1835_vm7, %v4770_v40  ;;  %4760 = vst.msk [vmem:[#allocation3 + $0x3] sm:$0x1] %vm1835_vm7, %v4758_v57 }
0x13b6   :  { %v9844_v56 = vld [vmem:[#allocation3] sm:$0xff] }
0x13b7   :  { %5835 = vst.msk [vmem:[#allocation3 - $0x1] sm:$0x2] %vm5834_vm3, %v4745_v17  ;;  %5836 = vst.msk [vmem:[#allocation3] sm:$0x2] %vm5834_vm3, %v4752_v21  ;;  %8259 = vmatprep.subr.mxu0 %v9844_v56  ;;  %8264 = vmatprep.subr.mxu1 %v9844_v56  ;;  %v10047_v21 = vld [vmem:[%s10029_s12 + $0x10] sm:$0xff] }
0x13b8   :  { %5837 = vst.msk [vmem:[#allocation3 + $0x1] sm:$0x2] %vm5834_vm3, %v4746_v20  ;;  %5838 = vst.msk [vmem:[#allocation3 + $0x2] sm:$0x2] %vm5834_vm3, %v4758_v57  ;;  %8260 = vmatpush3.msra.mxu0 %v9844_v56  ;;  %8265 = vmatpush3.msra.mxu1 %v9844_v56  ;;  %v10057_v57 = vld [vmem:[%s9987_s8 + $0x38] sm:$0xff] }
0x13b9   :  { %5839 = vst.msk [vmem:[#allocation3 + $0x3] sm:$0x2] %vm5834_vm3, %v4747_v16  ;;  %5840 = vst.msk [vmem:[#allocation3 + $0x4] sm:$0x2] %vm5834_vm3, %v4764_v59  ;;  %8262 = vmatmul.mubr.msk.f32.vlgmr.msra.gmra.mxu0 %vm4116_vm6, %v9847_v3  ;;  %8267 = vmatmul.mubr.msk.f32.vlgmr.msra.gmra.mxu1 %vm4116_vm6, %v9850_v5  ;;  %v10044_v59 = vld [vmem:[%s10029_s12 + $0x8] sm:$0xff] }
0x13ba   :  { %5841 = vst.msk [vmem:[#allocation3 + $0x5] sm:$0x2] %vm5834_vm3, %v4748_v19  ;;  %5842 = vst.msk [vmem:[#allocation3 + $0x6] sm:$0x2] %vm5834_vm3, %v4770_v40  ;;  %8269 = vmatprep.subr.mxu0 %v9855_v7  ;;  %8288 = vmatprep.subr.mxu1 %v9858_v9  ;;  %v10054_v40 = vld [vmem:[%s10029_s12 + $0x18] sm:$0xff] }
0x13bb   :  { %8270 = vmatpush3.msra.mxu0 %v9855_v7  ;;  %8289 = vmatpush3.msra.mxu1 %v9858_v9 }
0x13bc   :  { %8271 = vmatprep.subr.mxu0 %v9867_v2  ;;  %8290 = vmatprep.subr.mxu1 %v9870_v4 }
0x13bd   :  { %8272 = vmatpush3.msra.mxu0 %v9867_v2  ;;  %8291 = vmatpush3.msra.mxu1 %v9870_v4 }
0x13be   :  { %8273 = vmatprep.subr.mxu0 %v9876_v22  ;;  %8292 = vmatprep.subr.mxu1 %v9880_v25 }
0x13bf   :  { %8274 = vmatpush3.msra.mxu0 %v9876_v22  ;;  %8293 = vmatpush3.msra.mxu1 %v9880_v25 }
0x13c0   :  { %8275 = vmatprep.subr.mxu0 %v9886_v28  ;;  %8294 = vmatprep.subr.mxu1 %v9890_v29 }
0x13c1   :  { %8276 = vmatpush3.msra.mxu0 %v9886_v28  ;;  %8295 = vmatpush3.msra.mxu1 %v9890_v29  ;;  %v10023_v49 = vld [vmem:[#allocation3] sm:$0xff] }
0x13c2   :  { %8277 = vmatprep.subr.mxu0 %v9896_v30  ;;  %8296 = vmatprep.subr.mxu1 %v9900_v31 }
0x13c3   :  { %8278 = vmatpush3.msra.mxu0 %v9896_v30  ;;  %8297 = vmatpush3.msra.mxu1 %v9900_v31 }
0x13c4   :  { %8279 = vmatprep.subr.mxu0 %v9906_v26  ;;  %8298 = vmatprep.subr.mxu1 %v9910_v32 }
0x13c5   :  { %8280 = vmatpush3.msra.mxu0 %v9906_v26  ;;  %8299 = vmatpush3.msra.mxu1 %v9910_v32 }
0x13c6   :  { %8281 = vmatprep.subr.mxu0 %v9916_v33  ;;  %8300 = vmatprep.subr.mxu1 %v9932_v35 }
0x13c7   :  { %8282 = vmatpush3.msra.mxu0 %v9916_v33  ;;  %8301 = vmatpush3.msra.mxu1 %v9932_v35 }
0x13c8   :  { %8283 = vmatprep.subr.mxu0 %v9923_v34  ;;  %8302 = vmatprep.subr.mxu1 %v9937_v41 }
0x13c9   :  { %8284 = vmatpush3.msra.mxu0 %v9923_v34  ;;  %8303 = vmatpush3.msra.mxu1 %v9937_v41 }
0x13ca   :  { %8307 = vmatprep.subr.mxu0 %v9844_v56  ;;  %8312 = vmatprep.subr.mxu1 %v9942_v23 }
0x1479   :  { %v8263_v42 = vpop.f32.mrf.mxu0  ;;  %v8268_v52 = vpop.f32.mrf.mxu1 }
0x147b   :  { %v4856_v6 = vpop.f32.mrf.mxu0  ;;  %v4947_v43 = vpop.f32.mrf.mxu1 }
0x147c   :  { %8285 = vmatprep.mubr.msk.f32.mxu0 %vm360_vm1, %v4947_v43  ;;  %8304 = vmatprep.mubr.msk.f32.mxu1 %vm360_vm1, %v4856_v6 }
0x147d   :  { %8286 = vmatmul.mubr.msk.f32.vlgmr.msra.gmra.mxu0 %vm360_vm1, %v8268_v52  ;;  %8305 = vmatmul.mubr.msk.f32.vlgmr.msra.gmra.mxu1 %vm360_vm1, %v8263_v42  ;;  %v10067_v42 = vld [vmem:[%s9987_s8 + $0x28] sm:$0xff]  ;;  %v10072_v52 = vld [vmem:[%s9987_s8 + $0x20] sm:$0xff] }
0x147e   :  { %8308 = vmatpush3.msra.mxu0 %v9844_v56  ;;  %8309 = vmatprep.mubr.msk.f32.mxu0 %vm4116_vm6, %v9946_v8  ;;  %v10060_v56 = vld [vmem:[%s9987_s8 + $0x30] sm:$0xff] }
0x147f   :  { %8313 = vmatpush3.msra.mxu1 %v9942_v23 }
0x1480   :  { %8314 = vmatprep.subr.mxu1 %v9953_v63 }
0x1481   :  { %8310 = vmatmul.mubr.msk.f32.vlgmr.msra.gmra.mxu0 %vm4116_vm6, %v9959_v48  ;;  %8315 = vmatpush3.msra.mxu1 %v9953_v63 }
0x1482   :  { %8316 = vmatprep.subr.mxu1 %v9963_v58  ;;  %8335 = vmatprep.mubr.msk.f32.mxu0 %vm187_vm0, %v10032_v54 }
0x1483   :  { %8317 = vmatpush3.msra.mxu1 %v9963_v58 }
0x1484   :  { %8318 = vmatprep.subr.mxu1 %v9970_v60 }
0x1485   :  { %8319 = vmatpush3.msra.mxu1 %v9970_v60 }
0x1486   :  { %8320 = vmatprep.subr.mxu1 %v9975_v61 }
0x1487   :  { %8321 = vmatpush3.msra.mxu1 %v9975_v61 }
0x1488   :  { %8322 = vmatprep.subr.mxu1 %v9982_v62 }
0x1489   :  { %8323 = vmatpush3.msra.mxu1 %v9982_v62 }
0x148a   :  { %8324 = vmatprep.subr.mxu1 %v9992_v0 }
0x148b   :  { %8325 = vmatpush3.msra.mxu1 %v9992_v0 }
0x148c   :  { %8326 = vmatprep.subr.mxu1 %v9996_v1 }
0x148d   :  { %8327 = vmatpush3.msra.mxu1 %v9996_v1 }
0x148e   :  { %8356 = vmatprep.subr.mxu1 %v10002_v36 }
0x153d   :  { %v8287_v37 = vpop.f32.mrf.mxu0  ;;  %v8306_v53 = vpop.f32.mrf.mxu1 }
0x153e   :  { %v5115_v24 = vadd.f32 %v8306_v53, %v8287_v37 }
0x153f   :  { %v5028_v38 = vpop.f32.mrf.mxu0  ;;  %v5109_v55 = vpop.f32.mrf.mxu1 }
0x1540   :  { %v5110_v10 = vadd.f32 %v5109_v55, %v5028_v38 }
0x1541   :  { %v8311_v39 = vpop.f32.mrf.mxu0 }
0x1543   :  { %v5200_v44 = vpop.f32.mrf.mxu0 }
0x1544   :  { %8328 = vmatprep.mubr.msk.f32.mxu1 %vm360_vm1, %v5200_v44  ;;  %v10093_v44 = vld [vmem:[%s10029_s12 + $0x28] sm:$0xff] }
0x1545   :  { %8329 = vmatmul.mubr.msk.f32.vlgmr.msra.gmra.mxu1 %vm360_vm1, %v8311_v39  ;;  %v10086_v39 = vld [vmem:[%s10029_s12 + $0x20] sm:$0xff] }
0x1546   :  { %8357 = vmatpush3.msra.mxu1 %v10002_v36 }
0x1547   :  { %8358 = vmatprep.subr.mxu1 %v10007_v45 }
0x1548   :  { %8359 = vmatpush3.msra.mxu1 %v10007_v45 }
0x1549   :  { %8360 = vmatprep.subr.mxu1 %v10012_v46 }
0x154a   :  { %8361 = vmatpush3.msra.mxu1 %v10012_v46 }
0x154b   :  { %8362 = vmatprep.subr.mxu1 %v10017_v47 }
0x154c   :  { %8363 = vmatpush3.msra.mxu1 %v10017_v47 }
0x154d   :  { %8385 = vmatprep.subr.mxu1 %v10023_v49 }
0x1605   :  { %v8330_v27 = vpop.f32.mrf.mxu1 }
0x1606   :  { %v5291_v11 = vadd.f32 %v8330_v27, %v5115_v24 }
0x1607   :  { %v5281_v12 = vpop.f32.mrf.mxu1 }
0x1608   :  { %v5300_v13 = vadd.f32 %v10039_v51, %v5291_v11  ;;  %v5290_v14 = vadd.f32 %v5281_v12, %v5110_v10 }
0x160a   :  { %vm5302_vm7 = vcmp.ge.f32.partialorder %v5300_v13, 0.0  ;;  %v5304_v15 = vmul.f32 0.2, %v5300_v13  ;;  %v5299_v16 = vadd.f32 %v10039_v51, %v5290_v14 }
0x160c   :  { %v5306_v17 = vsel %vm5302_vm7, %v5300_v13, %v5304_v15  ;;  %vm5301_vm4 = vcmp.ge.f32.partialorder %v5299_v16, 0.0  ;;  %v5303_v19 = vmul.f32 0.2, %v5299_v16 }
0x160d   :  { %8331 = vmatprep.subr.mxu0 %v5306_v17 }
0x160e   :  { %v5305_v20 = vsel %vm5301_vm4, %v5299_v16, %v5303_v19  ;;  %8332 = vmatpush3.msra.mxu0 %v5306_v17 }
0x160f   :  { %8333 = vmatprep.subr.mxu0 %v5305_v20 }
0x1610   :  { %8334 = vmatpush3.msra.mxu0 %v5305_v20 }
0x1611   :  { %8336 = vmatmul.mubr.msk.f32.vlgmr.msra.gmra.mxu0 %vm187_vm0, %v10044_v59  ;;  %8338 = vmatprep.subr.mxu0 %v5306_v17 }
0x1612   :  { %8339 = vmatpush3.msra.mxu0 %v5306_v17  ;;  %8342 = vmatprep.mubr.msk.f32.mxu0 %vm187_vm0, %v10047_v21 }
0x1613   :  { %8340 = vmatprep.subr.mxu0 %v5305_v20 }
0x1614   :  { %8341 = vmatpush3.msra.mxu0 %v5305_v20 }
0x1615   :  { %8343 = vmatmul.mubr.msk.f32.vlgmr.msra.gmra.mxu0 %vm187_vm0, %v10054_v40  ;;  %8345 = vmatprep.subr.mxu0 %v10057_v57 }
0x1616   :  { %8346 = vmatpush3.msra.mxu0 %v10057_v57 }
0x1617   :  { %8347 = vmatprep.subr.mxu0 %v10060_v56 }
0x1618   :  { %8348 = vmatpush3.msra.mxu0 %v10060_v56 }
0x1619   :  { %8349 = vmatprep.subr.mxu0 %v10067_v42 }
0x161a   :  { %8350 = vmatpush3.msra.mxu0 %v10067_v42 }
0x161b   :  { %8351 = vmatprep.subr.mxu0 %v10072_v52 }
0x161c   :  { %8352 = vmatpush3.msra.mxu0 %v10072_v52 }
0x161d   :  { %8367 = vmatprep.subr.mxu0 %v5306_v17 }
0x16d1   :  { %v8337_v6 = vpop.f32.mrf.mxu0 }
0x16d3   :  { %v5385_v43 = vpop.f32.mrf.mxu0 }
0x16d4   :  { %8364 = vmatprep.mubr.msk.f32.mxu1 %vm868_vm5, %v5385_v43 }
0x16d5   :  { %v8344_v37 = vpop.f32.mrf.mxu0  ;;  %8365 = vmatmul.mubr.msk.f32.vlgmr.msra.gmra.mxu1 %vm868_vm5, %v8337_v6 }
0x16d6   :  { %8386 = vmatpush3.msra.mxu1 %v10023_v49  ;;  %8387 = vmatprep.mubr.msk.f32.mxu1 %vm4116_vm6, %v9824_v18  ;;  %v10121_v18 = vld [vmem:[%s9987_s8 + $0x58] sm:$0xff] }
0x16d7   :  { %8390 = vmatprep.subr.mxu1 %v10023_v49  ;;  %v5472_v38 = vpop.f32.mrf.mxu0 }
0x16d8   :  { %8353 = vmatprep.mubr.msk.f32.mxu0 %vm868_vm5, %v5472_v38 }
0x16d9   :  { %8354 = vmatmul.mubr.msk.f32.vlgmr.msra.gmra.mxu0 %vm868_vm5, %v8344_v37  ;;  %8388 = vmatmul.mubr.msk.f32.vlgmr.msra.gmra.mxu1 %vm4116_vm6, %v9847_v3  ;;  %v10131_v3 = vld [vmem:[%s9987_s8 + $0x48] sm:$0xff] }
0x16da   :  { %8368 = vmatpush3.msra.mxu0 %v5306_v17  ;;  %8391 = vmatpush3.msra.mxu1 %v10023_v49 }
0x16db   :  { %8369 = vmatprep.subr.mxu0 %v5305_v20  ;;  %8371 = vmatprep.mubr.msk.f32.mxu0 %vm187_vm0, %v10086_v39 }
0x16dc   :  { %8370 = vmatpush3.msra.mxu0 %v5305_v20  ;;  %8392 = vmatprep.mubr.msk.f32.mxu1 %vm4116_vm6, %v9827_v50  ;;  %v10126_v50 = vld [vmem:[%s9987_s8 + $0x50] sm:$0xff] }
0x16dd   :  { %8372 = vmatmul.mubr.msk.f32.vlgmr.msra.gmra.mxu0 %vm187_vm0, %v10093_v44  ;;  %8393 = vmatmul.mubr.msk.f32.vlgmr.msra.gmra.mxu1 %vm4116_vm6, %v9850_v5  ;;  %v10135_v5 = vld [vmem:[%s9987_s8 + $0x40] sm:$0xff] }
0x16de   :  { %8414 = vmatprep.subr.mxu1 %v9858_v9  ;;  %8374 = vmatprep.subr.mxu0 %v10121_v18 }
0x16df   :  { %8415 = vmatpush3.msra.mxu1 %v9858_v9  ;;  %8375 = vmatpush3.msra.mxu0 %v10121_v18 }
0x16e0   :  { %8416 = vmatprep.subr.mxu1 %v9870_v4  ;;  %8376 = vmatprep.subr.mxu0 %v10126_v50 }
0x16e1   :  { %8417 = vmatpush3.msra.mxu1 %v9870_v4  ;;  %8377 = vmatpush3.msra.mxu0 %v10126_v50 }
0x16e2   :  { %8418 = vmatprep.subr.mxu1 %v9880_v25  ;;  %8378 = vmatprep.subr.mxu0 %v10131_v3 }
0x16e3   :  { %8419 = vmatpush3.msra.mxu1 %v9880_v25  ;;  %8379 = vmatpush3.msra.mxu0 %v10131_v3 }
0x16e4   :  { %8420 = vmatprep.subr.mxu1 %v9890_v29  ;;  %8380 = vmatprep.subr.mxu0 %v10135_v5 }
0x16e5   :  { %8421 = vmatpush3.msra.mxu1 %v9890_v29  ;;  %8381 = vmatpush3.msra.mxu0 %v10135_v5 }
0x16e6   :  { %8422 = vmatprep.subr.mxu1 %v9900_v31  ;;  %8395 = vmatprep.subr.mxu0 %v9855_v7 }
0x16e7   :  { %8423 = vmatpush3.msra.mxu1 %v9900_v31 }
0x16e8   :  { %8424 = vmatprep.subr.mxu1 %v9910_v32 }
0x16e9   :  { %8425 = vmatpush3.msra.mxu1 %v9910_v32 }
0x16ea   :  { %8426 = vmatprep.subr.mxu1 %v9932_v35 }
0x16eb   :  { %8427 = vmatpush3.msra.mxu1 %v9932_v35 }
0x16ec   :  { %8428 = vmatprep.subr.mxu1 %v9937_v41 }
0x16ed   :  { %8429 = vmatpush3.msra.mxu1 %v9937_v41 }
0x16ee   :  { %8438 = vmatprep.subr.mxu1 %v9942_v23 }
0x1795   :  { %v8366_v9 = vpop.f32.mrf.mxu1 }
0x1797   :  { %v5634_v4 = vpop.f32.mrf.mxu1 }
0x1799   :  { %v8355_v25 = vpop.f32.mrf.mxu0  ;;  %v8389_v29 = vpop.f32.mrf.mxu1 }
0x179a   :  { %v5640_v31 = vadd.f32 %v8366_v9, %v8355_v25 }
0x179b   :  { %v5553_v32 = vpop.f32.mrf.mxu0  ;;  %v5926_v35 = vpop.f32.mrf.mxu1 }
0x179c   :  { %v5635_v41 = vadd.f32 %v5634_v4, %v5553_v32  ;;  %8430 = vmatprep.mubr.msk.f32.mxu1 %vm360_vm1, %v5926_v35 }
0x179d   :  { %v8373_v53 = vpop.f32.mrf.mxu0  ;;  %8431 = vmatmul.mubr.msk.f32.vlgmr.msra.gmra.mxu1 %vm360_vm1, %v8389_v29  ;;  %v8394_v55 = vpop.f32.mrf.mxu1 }
0x179e   :  { %8439 = vmatpush3.msra.mxu1 %v9942_v23 }
0x179f   :  { %v5721_v24 = vpop.f32.mrf.mxu0  ;;  %v6017_v27 = vpop.f32.mrf.mxu1  ;;  %8440 = vmatprep.subr.mxu1 %v9953_v63 }
0x17a0   :  { %8382 = vmatprep.mubr.msk.f32.mxu0 %vm868_vm5, %v5721_v24  ;;  %8441 = vmatpush3.msra.mxu1 %v9953_v63 }
0x17a1   :  { %8383 = vmatmul.mubr.msk.f32.vlgmr.msra.gmra.mxu0 %vm868_vm5, %v8373_v53  ;;  %8442 = vmatprep.subr.mxu1 %v9963_v58 }
0x17a2   :  { %8396 = vmatpush3.msra.mxu0 %v9855_v7  ;;  %8411 = vmatprep.mubr.msk.f32.mxu0 %vm360_vm1, %v6017_v27 }
0x17a3   :  { %8397 = vmatprep.subr.mxu0 %v9867_v2  ;;  %8443 = vmatpush3.msra.mxu1 %v9963_v58 }
0x17a4   :  { %8398 = vmatpush3.msra.mxu0 %v9867_v2  ;;  %8444 = vmatprep.subr.mxu1 %v9970_v60  ;;  %v10189_v2 = vld [vmem:[%s6943_s20] ss:$0 sm:$0xff] }
0x17a5   :  { %8399 = vmatprep.subr.mxu0 %v9876_v22  ;;  %8445 = vmatpush3.msra.mxu1 %v9970_v60 }
0x17a6   :  { %8400 = vmatpush3.msra.mxu0 %v9876_v22  ;;  %8446 = vmatprep.subr.mxu1 %v9975_v61 }
0x17a7   :  { %8401 = vmatprep.subr.mxu0 %v9886_v28  ;;  %8447 = vmatpush3.msra.mxu1 %v9975_v61 }
0x17a8   :  { %8402 = vmatpush3.msra.mxu0 %v9886_v28  ;;  %8448 = vmatprep.subr.mxu1 %v9982_v62 }
0x17a9   :  { %8403 = vmatprep.subr.mxu0 %v9896_v30  ;;  %8449 = vmatpush3.msra.mxu1 %v9982_v62 }
0x17aa   :  { %8404 = vmatpush3.msra.mxu0 %v9896_v30  ;;  %8450 = vmatprep.subr.mxu1 %v9992_v0 }
0x17ab   :  { %8405 = vmatprep.subr.mxu0 %v9906_v26  ;;  %8451 = vmatpush3.msra.mxu1 %v9992_v0 }
0x17ac   :  { %8406 = vmatpush3.msra.mxu0 %v9906_v26  ;;  %8452 = vmatprep.subr.mxu1 %v9996_v1 }
0x17ad   :  { %8407 = vmatprep.subr.mxu0 %v9916_v33  ;;  %8453 = vmatpush3.msra.mxu1 %v9996_v1 }
0x17ae   :  { %8408 = vmatpush3.msra.mxu0 %v9916_v33  ;;  %8482 = vmatprep.subr.mxu1 %v10002_v36 }
0x17af   :  { %8409 = vmatprep.subr.mxu0 %v9923_v34 }
0x17b0   :  { %8410 = vmatpush3.msra.mxu0 %v9923_v34 }
0x17b1   :  { %8412 = vmatmul.mubr.msk.f32.vlgmr.msra.gmra.mxu0 %vm360_vm1, %v8394_v55  ;;  %8433 = vmatprep.subr.mxu0 %v10023_v49 }
0x17b2   :  { %8434 = vmatpush3.msra.mxu0 %v10023_v49  ;;  %8435 = vmatprep.mubr.msk.f32.mxu0 %vm4116_vm6, %v9946_v8 }
0x17b5   :  { %8436 = vmatmul.mubr.msk.f32.vlgmr.msra.gmra.mxu0 %vm4116_vm6, %v9959_v48 }
0x17b6   :  { %8461 = vmatprep.mubr.msk.f32.mxu0 %vm187_vm0, %v10032_v54 }
0x185d   :  { %v8432_v54 = vpop.f32.mrf.mxu1 }
0x1861   :  { %v8384_v7 = vpop.f32.mrf.mxu0 }
0x1862   :  { %v5812_v22 = vadd.f32 %v8384_v7, %v5640_v31 }
0x1863   :  { %v5802_v28 = vpop.f32.mrf.mxu0 }
0x1864   :  { %v5821_v30 = vadd.f32 %v10189_v2, %v5812_v22  ;;  %v5811_v26 = vadd.f32 %v5802_v28, %v5635_v41 }
0x1866   :  { %v5823_v33 = vsub.f32 0.0, %v5821_v30  ;;  %v5820_v34 = vadd.f32 %v10189_v2, %v5811_v26 }
0x1868   :  { %v5826_v23 = vmul.f32 1.442695, %v5823_v33  ;;  %v5822_v8 = vsub.f32 0.0, %v5820_v34 }
0x186a   :  { %8560 = vpow2.f32 %v5826_v23  ;;  %v5824_v63 = vmul.f32 1.442695, %v5822_v8 }
0x186c   :  { %8562 = vpow2.f32 %v5824_v63 }
0x1871   :  { %v8413_v48 = vpop.f32.mrf.mxu0 }
0x1872   :  { %v6185_v10 = vadd.f32 %v8432_v54, %v8413_v48 }
0x1873   :  { %v6098_v58 = vpop.f32.mrf.mxu0 }
0x1875   :  { %v8437_v60 = vpop.f32.mrf.mxu0 }
0x1877   :  { %v8561_v61 = vpop.eup %8560  ;;  %v6270_v62 = vpop.f32.mrf.mxu0 }
0x1878   :  { %v5829_v0 = vadd.f32 1.0, %v8561_v61  ;;  %8454 = vmatprep.mubr.msk.f32.mxu1 %vm360_vm1, %v6270_v62 }
0x1879   :  { %v8563_v1 = vpop.eup %8562  ;;  %8455 = vmatmul.mubr.msk.f32.vlgmr.msra.gmra.mxu1 %vm360_vm1, %v8437_v60 }
0x187a   :  { %8564 = vrcp.f32 %v5829_v0  ;;  %v5828_v49 = vadd.f32 1.0, %v8563_v1  ;;  %8483 = vmatpush3.msra.mxu1 %v10002_v36 }
0x187b   :  { %8484 = vmatprep.subr.mxu1 %v10007_v45 }
0x187c   :  { %8566 = vrcp.f32 %v5828_v49  ;;  %8485 = vmatpush3.msra.mxu1 %v10007_v45 }
0x187d   :  { %8486 = vmatprep.subr.mxu1 %v10012_v46 }
0x187e   :  { %8487 = vmatpush3.msra.mxu1 %v10012_v46  ;;  %v6179_v46 = vpop.f32.mrf.mxu1 }
0x187f   :  { %8488 = vmatprep.subr.mxu1 %v10017_v47  ;;  %v6180_v12 = vadd.f32 %v6179_v46, %v6098_v58 }
0x1880   :  { %8489 = vmatpush3.msra.mxu1 %v10017_v47 }
0x1887   :  { %v8565_v36 = vpop.eup %8564 }
0x1888   :  { %5833 = vst.msk [vmem:[%s10204_s24 + $0x8] sm:$0xff] %vm360_vm1, %v8565_v36 }
0x1889   :  { %v8567_v45 = vpop.eup %8566 }
0x188a   :  { %5832 = vst.msk [vmem:[%s10204_s24] sm:$0xff] %vm360_vm1, %v8567_v45 }
0x1939   :  { %v8456_v11 = vpop.f32.mrf.mxu1 }
0x193a   :  { %v6361_v13 = vadd.f32 %v8456_v11, %v6185_v10 }
0x193b   :  { %v6351_v14 = vpop.f32.mrf.mxu1 }
0x193c   :  { %v6370_v15 = vadd.f32 %v10039_v51, %v6361_v13  ;;  %v6360_v16 = vadd.f32 %v6351_v14, %v6180_v12 }
0x193e   :  { %vm6372_vm6 = vcmp.ge.f32.partialorder %v6370_v15, 0.0  ;;  %v6374_v17 = vmul.f32 0.2, %v6370_v15  ;;  %v6369_v47 = vadd.f32 %v10039_v51, %v6360_v16 }
0x1940   :  { %v6376_v19 = vsel %vm6372_vm6, %v6370_v15, %v6374_v17  ;;  %vm6371_vm8 = vcmp.ge.f32.partialorder %v6369_v47, 0.0  ;;  %v6373_v20 = vmul.f32 0.2, %v6369_v47 }
0x1941   :  { %8457 = vmatprep.subr.mxu0 %v6376_v19 }
0x1942   :  { %v6375_v6 = vsel %vm6371_vm8, %v6369_v47, %v6373_v20  ;;  %8458 = vmatpush3.msra.mxu0 %v6376_v19 }
0x1943   :  { %8459 = vmatprep.subr.mxu0 %v6375_v6 }
0x1944   :  { %8460 = vmatpush3.msra.mxu0 %v6375_v6 }
0x1945   :  { %8462 = vmatmul.mubr.msk.f32.vlgmr.msra.gmra.mxu0 %vm187_vm0, %v10044_v59  ;;  %8464 = vmatprep.subr.mxu0 %v6376_v19 }
0x1946   :  { %8465 = vmatpush3.msra.mxu0 %v6376_v19  ;;  %8468 = vmatprep.mubr.msk.f32.mxu0 %vm187_vm0, %v10047_v21 }
0x1947   :  { %8466 = vmatprep.subr.mxu0 %v6375_v6 }
0x1948   :  { %8467 = vmatpush3.msra.mxu0 %v6375_v6 }
0x1949   :  { %8469 = vmatmul.mubr.msk.f32.vlgmr.msra.gmra.mxu0 %vm187_vm0, %v10054_v40  ;;  %8471 = vmatprep.subr.mxu0 %v10057_v57 }
0x194a   :  { %8472 = vmatpush3.msra.mxu0 %v10057_v57 }
0x194b   :  { %8473 = vmatprep.subr.mxu0 %v10060_v56 }
0x194c   :  { %8474 = vmatpush3.msra.mxu0 %v10060_v56 }
0x194d   :  { %8475 = vmatprep.subr.mxu0 %v10067_v42 }
0x194e   :  { %8476 = vmatpush3.msra.mxu0 %v10067_v42 }
0x194f   :  { %8477 = vmatprep.subr.mxu0 %v10072_v52 }
0x1950   :  { %8478 = vmatpush3.msra.mxu0 %v10072_v52 }
0x1951   :  { %8493 = vmatprep.subr.mxu0 %v6376_v19 }
0x1a05   :  { %v8463_v51 = vpop.f32.mrf.mxu0 }
0x1a07   :  { %v6455_v59 = vpop.f32.mrf.mxu0 }
0x1a08   :  { %8490 = vmatprep.mubr.msk.f32.mxu1 %vm868_vm5, %v6455_v59 }
0x1a09   :  { %v8470_v21 = vpop.f32.mrf.mxu0  ;;  %8491 = vmatmul.mubr.msk.f32.vlgmr.msra.gmra.mxu1 %vm868_vm5, %v8463_v51 }
0x1a0b   :  { %v6542_v40 = vpop.f32.mrf.mxu0 }
0x1a0c   :  { %8479 = vmatprep.mubr.msk.f32.mxu0 %vm868_vm5, %v6542_v40 }
0x1a0d   :  { %8480 = vmatmul.mubr.msk.f32.vlgmr.msra.gmra.mxu0 %vm868_vm5, %v8470_v21 }
0x1a0e   :  { %8494 = vmatpush3.msra.mxu0 %v6376_v19  ;;  %8497 = vmatprep.mubr.msk.f32.mxu0 %vm187_vm0, %v10086_v39 }
0x1a0f   :  { %8495 = vmatprep.subr.mxu0 %v6375_v6 }
0x1a10   :  { %8496 = vmatpush3.msra.mxu0 %v6375_v6 }
0x1a11   :  { %8498 = vmatmul.mubr.msk.f32.vlgmr.msra.gmra.mxu0 %vm187_vm0, %v10093_v44  ;;  %8500 = vmatprep.subr.mxu0 %v10121_v18 }
0x1a12   :  { %8501 = vmatpush3.msra.mxu0 %v10121_v18 }
0x1a13   :  { %8502 = vmatprep.subr.mxu0 %v10126_v50 }
0x1a14   :  { %8503 = vmatpush3.msra.mxu0 %v10126_v50 }
0x1a15   :  { %8504 = vmatprep.subr.mxu0 %v10131_v3 }
0x1a16   :  { %8505 = vmatpush3.msra.mxu0 %v10131_v3 }
0x1a17   :  { %8506 = vmatprep.subr.mxu0 %v10135_v5 }
0x1a18   :  { %8507 = vmatpush3.msra.mxu0 %v10135_v5 }
0x1ac9   :  { %v8492_v43 = vpop.f32.mrf.mxu1 }
0x1acb   :  { %v6704_v38 = vpop.f32.mrf.mxu1 }
0x1acd   :  { %v8481_v57 = vpop.f32.mrf.mxu0 }
0x1ace   :  { %v6710_v37 = vadd.f32 %v8492_v43, %v8481_v57 }
0x1acf   :  { %v6623_v56 = vpop.f32.mrf.mxu0 }
0x1ad0   :  { %v6705_v44 = vadd.f32 %v6704_v38, %v6623_v56 }
0x1ad1   :  { %v8499_v42 = vpop.f32.mrf.mxu0 }
0x1ad3   :  { %v6791_v52 = vpop.f32.mrf.mxu0 }
0x1ad4   :  { %8508 = vmatprep.mubr.msk.f32.mxu0 %vm868_vm5, %v6791_v52 }
0x1ad5   :  { %8509 = vmatmul.mubr.msk.f32.vlgmr.msra.gmra.mxu0 %vm868_vm5, %v8499_v42 }
0x1b95   :  { %v8510_v39 = vpop.f32.mrf.mxu0 }
0x1b96   :  { %v6882_v18 = vadd.f32 %v8510_v39, %v6710_v37 }
0x1b97   :  { %v6872_v50 = vpop.f32.mrf.mxu0 }
0x1b98   :  { %v6891_v3 = vadd.f32 %v10189_v2, %v6882_v18  ;;  %v6881_v9 = vadd.f32 %v6872_v50, %v6705_v44 }
0x1b9a   :  { %v6893_v5 = vsub.f32 0.0, %v6891_v3  ;;  %v6890_v4 = vadd.f32 %v10189_v2, %v6881_v9 }
0x1b9c   :  { %v6896_v25 = vmul.f32 1.442695, %v6893_v5  ;;  %v6892_v29 = vsub.f32 0.0, %v6890_v4 }
0x1b9e   :  { %8568 = vpow2.f32 %v6896_v25  ;;  %v6894_v31 = vmul.f32 1.442695, %v6892_v29 }
0x1ba0   :  { %8570 = vpow2.f32 %v6894_v31 }
0x1bab   :  { %v8569_v32 = vpop.eup %8568 }
0x1bac   :  { %v6899_v35 = vadd.f32 1.0, %v8569_v32 }
0x1bad   :  { %v8571_v41 = vpop.eup %8570 }
0x1bae   :  { %8572 = vrcp.f32 %v6899_v35  ;;  %v6898_v53 = vadd.f32 1.0, %v8571_v41 }
0x1bb0   :  { %8574 = vrcp.f32 %v6898_v53 }
0x1bbb   :  { %v8573_v55 = vpop.eup %8572 }
0x1bbc   :  { %6903 = vst.msk [vmem:[%s10204_s24 + $0x18] sm:$0xff] %vm360_vm1, %v8573_v55 }
0x1bbd   :  { %v8575_v24 = vpop.eup %8574 }
0x1bbe   :  { %6902 = vst.msk [vmem:[%s10204_s24 + $0x10] sm:$0xff] %vm360_vm1, %v8575_v24 }

</bundles_post_ra>
